<compile_context>
chip_gen: v6e
topology: v6e:2x2x1
jax: 0.10.0
libtpu: 0.0.40
codegen_flags: <defaults>
</compile_context>

<pallas_src>
import math

import jax
import jax.numpy as jnp
from jax.experimental import pallas as pl
from jax.experimental.pallas import tpu as pltpu

_F32 = jnp.float32
_BF16 = jnp.bfloat16


def _sigmoid(x):
    # one EUP transcendental, numerically stable; mirrored in the reference.
    return 0.5 * (jnp.tanh(0.5 * x) + 1.0)


# ----------------------------------------------------------------------------
# Fused decoder-step kernel body (grid over T tiles)
# ----------------------------------------------------------------------------
def _decoder_body(K, tile_t, has_sf, refs):
    if has_sf:
        (x_att_ref, ac_ref, rh_ref, rc_ref, cum3_ref,
         winw_ref, winc_ref, mask_ref, aenc_ref, enc_ref, sf_ref,
         w1_ref, b1_ref, wq_ref, wcl_ref, v_ref,
         w2a_ref, w2c_ref, w2s_ref, w2h_ref, b2_ref,
         wpr_ref, wpc_ref, bp_ref,
         proj_ref, ah_ref, aco_ref, ctxo_ref, w3o_ref, cumo_ref, rho_ref,
         rco_ref,
         atth_s, attc_s, pq_s, m_s, l_s, ctx_s, e_s) = refs
    else:
        (x_att_ref, ac_ref, rh_ref, rc_ref, cum3_ref,
         winw_ref, winc_ref, mask_ref, aenc_ref, enc_ref,
         w1_ref, b1_ref, wq_ref, wcl_ref, v_ref,
         w2a_ref, w2c_ref, w2h_ref, b2_ref,
         wpr_ref, wpc_ref, bp_ref,
         proj_ref, ah_ref, aco_ref, ctxo_ref, w3o_ref, cumo_ref, rho_ref,
         rco_ref,
         atth_s, attc_s, pq_s, m_s, l_s, ctx_s, e_s) = refs
        sf_ref = None
        w2s_ref = None

    t = pl.program_id(0)
    n_t = pl.num_programs(0)
    B = ac_ref.shape[0]
    A = v_ref.shape[1]

    def bdot(a, w_ref):
        # bf16 x bf16 on the MXU with f32 accumulation
        return jnp.dot(a.astype(_BF16), w_ref[...], preferred_element_type=_F32)

    def lstm_from_gates(gates, c):
        # PyTorch LSTMCell gate order: i, f, g, o
        H = c.shape[-1]
        i = _sigmoid(gates[:, 0:H])
        f = _sigmoid(gates[:, H:2 * H])
        g = jnp.tanh(gates[:, 2 * H:3 * H])
        o = _sigmoid(gates[:, 3 * H:4 * H])
        c_new = f * c + i * g
        return o * jnp.tanh(c_new), c_new

    # ---- phase 0 (first tile): attention RNN + online-softmax init ----------
    @pl.when(t == 0)
    def _init():
        g1 = bdot(x_att_ref[...], w1_ref) + b1_ref[...]
        att_h, att_c = lstm_from_gates(g1, ac_ref[...])
        atth_s[...] = att_h
        attc_s[...] = att_c
        pq_s[...] = bdot(att_h, wq_ref)       # query projection, reused by all tiles
        m_s[...] = jnp.full(m_s.shape, -1e30, _F32)
        l_s[...] = jnp.zeros(l_s.shape, _F32)
        ctx_s[...] = jnp.zeros(ctx_s.shape, _F32)

    # ---- every tile: location conv + scores + online softmax + context ------
    ww = winw_ref[0]                          # (B, tile_t + K - 1) prev weights window
    wc = winc_ref[0]                          # (B, tile_t + K - 1) cumulative window
    wcl = wcl_ref[...]                        # (2K, A)   conv weights (loc dense folded)
    ploc = jnp.zeros((B, tile_t, A), _F32)
    for k in range(K):                        # 31-tap conv built in-kernel (no HBM im2col)
        wk = ww[:, k:k + tile_t]
        ck = wc[:, k:k + tile_t]
        ploc = (ploc
                + wk[:, :, None] * wcl[2 * k][None, None, :]
                + ck[:, :, None] * wcl[2 * k + 1][None, None, :])

    s = jnp.tanh(pq_s[...][:, None, :] + ploc + aenc_ref[...].astype(_F32))
    e = jnp.sum(s * v_ref[...][None, :, :], axis=-1) + mask_ref[0]   # (B, tile_t)
    e_s[t] = e                                # keep raw scores for final renorm

    m_prev = m_s[...]
    m_new = jnp.maximum(m_prev, jnp.max(e, axis=-1, keepdims=True))
    alpha = jnp.exp(m_prev - m_new)
    p = jnp.exp(e - m_new)
    l_s[...] = alpha * l_s[...] + jnp.sum(p, axis=-1, keepdims=True)
    ctx_s[...] = alpha * ctx_s[...] + jnp.sum(
        p[:, :, None] * enc_ref[...].astype(_F32), axis=1)
    m_s[...] = m_new

    # ---- final tile: normalize, decoder LSTM, fused mel|gate projection -----
    @pl.when(t == n_t - 1)
    def _finalize():
        inv_l = pl.reciprocal(l_s[...], approx=True)          # (B, 1), EUP
        ctx = ctx_s[...] * inv_l
        att_h = atth_s[...]

        w_all = jnp.exp(e_s[...] - m_s[...][None, :, :]) * inv_l[None, :, :]
        w3o_ref[...] = w_all
        cumo_ref[...] = cum3_ref[...] + w_all

        g2 = (bdot(att_h, w2a_ref) + bdot(ctx, w2c_ref)
              + bdot(rh_ref[...], w2h_ref) + b2_ref[...])
        if has_sf:
            g2 = g2 + bdot(sf_ref[...], w2s_ref)
        rnn_h, rnn_c = lstm_from_gates(g2, rc_ref[...])

        proj_ref[...] = bdot(rnn_h, wpr_ref) + bdot(ctx, wpc_ref) + bp_ref[...]
        ah_ref[...] = att_h
        aco_ref[...] = attc_s[...]
        ctxo_ref[...] = ctx
        rho_ref[...] = rnn_h
        rco_ref[...] = rnn_c


def make_decoder_kernel(K, tile_t, has_sf):
    def kernel(*refs):
        _decoder_body(K, tile_t, has_sf, refs)
    return kernel


# ----------------------------------------------------------------------------
# Decoder forward wrapper
# ----------------------------------------------------------------------------
def decoder_forward(params, prev_mel_prenet, att_rnn_hidden, att_context,
                    att_weights, att_weights_cum, rnn_hidden,
                    encoded, att_encoded, encoded_mask, speech_features=None,
                    tile_t=None):
    B, T, E = encoded.shape
    A = att_encoded.shape[-1]
    att_h0, att_c0 = att_rnn_hidden
    rnn_h0, rnn_c0 = rnn_hidden
    H1 = att_c0.shape[1]
    H2 = rnn_c0.shape[1]
    pa = params["attention"]
    K = pa["wconvloc"].shape[0] // 2
    padw = (K - 1) // 2
    has_sf = speech_features is not None

    if tile_t is None:
        tile_t = T
        for cand in (256, 128, 64, 32, 16):
            if T >= cand and T % cand == 0:
                tile_t = cand
                break
    assert T % tile_t == 0, "T must be divisible by tile_t"
    n_t = T // tile_t
    W = tile_t + K - 1

    # --- cheap wrapper glue (tiny vs. the encoder memory) ---------------------
    x_att = jnp.concatenate([prev_mel_prenet, att_context, att_h0], -1).astype(_F32)
    wpad = jnp.pad(att_weights.astype(_F32), ((0, 0), (padw, padw)))
    cpad = jnp.pad(att_weights_cum.astype(_F32), ((0, 0), (padw, padw)))
    win_w = jnp.stack([wpad[:, i * tile_t:i * tile_t + W] for i in range(n_t)], 0)
    win_c = jnp.stack([cpad[:, i * tile_t:i * tile_t + W] for i in range(n_t)], 0)
    add_mask = jnp.where(encoded_mask, jnp.float32(-1e30), jnp.float32(0.0))
    mask3 = jnp.transpose(add_mask.reshape(B, n_t, tile_t), (1, 0, 2))
    cum3 = jnp.transpose(att_weights_cum.astype(_F32).reshape(B, n_t, tile_t), (1, 0, 2))

    enc_bf = encoded.astype(_BF16)
    aenc_bf = att_encoded.astype(_BF16)

    num_mels = params["proj"]["b"].shape[1] - 1
    nm1 = num_mels + 1

    def res(shape):
        n = len(shape)

        def im(i):
            return (0,) * n
        return pl.BlockSpec(shape, im)

    args = [x_att, att_c0.astype(_F32), rnn_h0.astype(_F32), rnn_c0.astype(_F32),
            cum3, win_w, win_c, mask3, aenc_bf, enc_bf]
    in_specs = [res((B, x_att.shape[1])), res((B, H1)), res((B, H2)), res((B, H2)),
                res((n_t, B, tile_t)),
                pl.BlockSpec((1, B, W), lambda i: (i, 0, 0)),
                pl.BlockSpec((1, B, W), lambda i: (i, 0, 0)),
                pl.BlockSpec((1, B, tile_t), lambda i: (i, 0, 0)),
                pl.BlockSpec((B, tile_t, A), lambda i: (0, i, 0)),
                pl.BlockSpec((B, tile_t, E), lambda i: (0, i, 0))]
    if has_sf:
        sf = speech_features.astype(_F32)
        args.append(sf)
        in_specs.append(res(sf.shape))

    weights = [params["att_rnn"]["w_all"], params["att_rnn"]["b"],
               pa["wq_t"], pa["wconvloc"], pa["v_row"],
               params["lstm1"]["w_h1"], params["lstm1"]["w_ctx"]]
    if has_sf:
        weights.append(params["lstm1"]["w_sf"])
    weights += [params["lstm1"]["w_hh"], params["lstm1"]["b"],
                params["proj"]["w_rnn"], params["proj"]["w_ctx"],
                params["proj"]["b"]]
    args += weights
    in_specs += [res(tuple(w.shape)) for w in weights]

    out_shapes = (
        jax.ShapeDtypeStruct((B, nm1), _F32),           # fused [mel | gate]
        jax.ShapeDtypeStruct((B, H1), _F32),            # att_h
        jax.ShapeDtypeStruct((B, H1), _F32),            # att_c
        jax.ShapeDtypeStruct((B, E), _F32),             # context
        jax.ShapeDtypeStruct((n_t, B, tile_t), _F32),   # att weights (tile-major)
        jax.ShapeDtypeStruct((n_t, B, tile_t), _F32),   # cumulative weights
        jax.ShapeDtypeStruct((B, H2), _F32),            # rnn_h
        jax.ShapeDtypeStruct((B, H2), _F32),            # rnn_c
    )
    out_specs = [res(s.shape) for s in out_shapes]

    scratch = [pltpu.VMEM((B, H1), _F32), pltpu.VMEM((B, H1), _F32),
               pltpu.VMEM((B, A), _F32), pltpu.VMEM((B, 1), _F32),
               pltpu.VMEM((B, 1), _F32), pltpu.VMEM((B, E), _F32),
               pltpu.VMEM((n_t, B, tile_t), _F32)]

    # VMEM budget (generous over-estimate, capped to the smallest physical VMEM)
    vmem_bytes = sum(int(a.size) * a.dtype.itemsize for a in args)
    vmem_bytes += sum(math.prod(s.shape) * 4 for s in out_shapes)
    vmem_bytes += 4 * (2 * B * H1 + B * A + 2 * B + B * E + n_t * B * tile_t)
    vmem_limit = int(min(64 * 2 ** 20, max(32 * 2 ** 20, 2 * vmem_bytes)))

    sf_dim = speech_features.shape[1] if has_sf else 0
    in1 = x_att.shape[1]
    flops = 2 * B * (in1 * 4 * H1 + H1 * A + (H1 + E + sf_dim + H2) * 4 * H2
                     + (H2 + E) * nm1) + 2 * B * T * (2 * K * A + A + E)
    transcendentals = B * T * (A + 2) + 10 * B * (H1 + H2)
    bytes_accessed = (sum(int(a.size) * a.dtype.itemsize for a in args)
                      + sum(math.prod(s.shape) * 4 for s in out_shapes))

    grid_spec = pltpu.PrefetchScalarGridSpec(
        num_scalar_prefetch=0, grid=(n_t,),
        in_specs=in_specs, out_specs=out_specs, scratch_shapes=scratch)

    outs = pl.pallas_call(
        make_decoder_kernel(K, tile_t, has_sf),
        out_shape=out_shapes,
        grid_spec=grid_spec,
        input_output_aliases={1: 2, 2: 6, 3: 7, 4: 5},
        compiler_params=pltpu.CompilerParams(
            dimension_semantics=("arbitrary",),
            vmem_limit_bytes=vmem_limit),
        cost_estimate=pl.CostEstimate(flops=int(flops),
                                      transcendentals=int(transcendentals),
                                      bytes_accessed=int(bytes_accessed)),
    )(*args)

    proj, att_h, att_c, ctx, w3, cum3_o, rnn_h, rnn_c = outs
    w = jnp.transpose(w3, (1, 0, 2)).reshape(B, T)
    cum = jnp.transpose(cum3_o, (1, 0, 2)).reshape(B, T)
    mel = proj[:, :num_mels]
    gate = proj[:, num_mels:]
    return (mel, gate, (att_h, att_c), ctx, w, cum, (rnn_h, rnn_c))


# ----------------------------------------------------------------------------
# Deterministic parameter init (kernel-friendly, pre-fused, bf16 weights)
# ----------------------------------------------------------------------------
def init_params(key, *, num_mels, embedding_dim, prenet_dim, att_rnn_dim,
                att_dim, rnn_hidden_dim, speech_feature_dim,
                loc_filters=32, loc_kernel=31):
    ks = iter(jax.random.split(key, 24))

    def u(shape, scale=0.2):
        return jax.random.uniform(next(ks), shape, _F32, -scale, scale)

    H1, H2 = att_rnn_dim, rnn_hidden_dim
    sf_dim = 0 if speech_feature_dim is None else speech_feature_dim

    # attention RNN (torch LSTMCell rows [i;f;g;o]) -> fused [x|ctx|h] weight
    in1 = prenet_dim + embedding_dim
    w1_ih = u((4 * H1, in1))
    w1_hh = u((4 * H1, H1))
    b1 = u((4 * H1,)) + u((4 * H1,))
    att_rnn = dict(w_all=jnp.concatenate([w1_ih.T, w1_hh.T], 0).astype(_BF16),
                   b=b1.reshape(1, 4 * H1))

    # decoder RNN: input = [att_h | ctx | speech]; partial weights kept split
    in2 = att_rnn_dim + embedding_dim + sf_dim
    w2_ih = u((4 * H2, in2))
    w2_hh = u((4 * H2, H2))
    b2 = u((4 * H2,)) + u((4 * H2,))
    w2x = w2_ih.T
    lstm1 = dict(
        w_h1=w2x[:att_rnn_dim].astype(_BF16),
        w_ctx=w2x[att_rnn_dim:att_rnn_dim + embedding_dim].astype(_BF16),
        w_sf=(w2x[att_rnn_dim + embedding_dim:].astype(_BF16) if sf_dim > 0 else None),
        w_hh=w2_hh.T.astype(_BF16),
        b=b2.reshape(1, 4 * H2))

    # attention: query proj, location conv folded with location dense, v
    wq = u((att_dim, att_rnn_dim))
    wconv = u((loc_filters, 2, loc_kernel))          # torch Conv1d (out, in, k)
    wloc = u((att_dim, loc_filters))
    v = u((1, att_dim))
    wconv_r = jnp.transpose(wconv, (2, 1, 0))        # (K, 2, nf)
    wconvloc = wconv_r.reshape(2 * loc_kernel, loc_filters) @ wloc.T   # (2K, A), f32
    attention = dict(wq_t=wq.T.astype(_BF16), wconvloc=wconvloc, v_row=v)

    # output projections fused: columns [mel | gate]
    wm = u((num_mels, rnn_hidden_dim + embedding_dim))
    bm = u((num_mels,))
    wg = u((1, rnn_hidden_dim + embedding_dim))
    bg = u((1,))
    wmg = jnp.concatenate([wm, wg], 0).T
    proj = dict(w_rnn=wmg[:rnn_hidden_dim].astype(_BF16),
                w_ctx=wmg[rnn_hidden_dim:].astype(_BF16),
                b=jnp.concatenate([bm, bg]).reshape(1, num_mels + 1))

    return dict(att_rnn=att_rnn, lstm1=lstm1, attention=attention, proj=proj)


# ----------------------------------------------------------------------------
# Pure-JAX reference (same math / same bf16 storage) for validation
# ----------------------------------------------------------------------------
def reference_forward(params, prev_mel_prenet, att_rnn_hidden, att_context,
                      att_weights, att_weights_cum, rnn_hidden,
                      encoded, att_encoded, encoded_mask, speech_features=None):
    def bdot(a, w):
        return jnp.dot(a.astype(_BF16), w, preferred_element_type=_F32)

    def lstm_from_gates(gates, c):
        H = c.shape[-1]
        i = _sigmoid(gates[:, :H])
        f = _sigmoid(gates[:, H:2 * H])
        g = jnp.tanh(gates[:, 2 * H:3 * H])
        o = _sigmoid(gates[:, 3 * H:])
        c2 = f * c + i * g
        return o * jnp.tanh(c2), c2

    B, T, E = encoded.shape
    att_h0, att_c0 = att_rnn_hidden
    rnn_h0, rnn_c0 = rnn_hidden
    encoded = encoded.astype(_BF16).astype(_F32)       # matches kernel storage
    att_encoded = att_encoded.astype(_BF16).astype(_F32)

    x_att = jnp.concatenate([prev_mel_prenet, att_context, att_h0], -1)
    g1 = bdot(x_att, params["att_rnn"]["w_all"]) + params["att_rnn"]["b"]
    att_h, att_c = lstm_from_gates(g1, att_c0)

    pa = params["attention"]
    K = pa["wconvloc"].shape[0] // 2
    padw = (K - 1) // 2
    wcat = jnp.stack([att_weights, att_weights_cum], -1)
    wcat_pad = jnp.pad(wcat, ((0, 0), (padw, padw), (0, 0)))
    taps = jnp.concatenate([wcat_pad[:, k:k + T, :] for k in range(K)], -1)
    pq = bdot(att_h, pa["wq_t"])
    ploc = jnp.dot(taps.reshape(B * T, 2 * K), pa["wconvloc"],
                   precision=jax.lax.Precision.HIGHEST).reshape(B, T, -1)
    s = jnp.tanh(pq[:, None, :] + ploc + att_encoded)
    e = jnp.sum(s * pa["v_row"][None], -1) + jnp.where(encoded_mask, -1e30, 0.0)
    w = jax.nn.softmax(e, axis=-1)
    ctx = jnp.einsum('bt,bte->be', w, encoded, precision=jax.lax.Precision.HIGHEST)
    cum = att_weights_cum + w

    p1 = params["lstm1"]
    g2 = (bdot(att_h, p1["w_h1"]) + bdot(ctx, p1["w_ctx"])
          + bdot(rnn_h0, p1["w_hh"]) + p1["b"])
    if speech_features is not None:
        g2 = g2 + bdot(speech_features, p1["w_sf"])
    rnn_h, rnn_c = lstm_from_gates(g2, rnn_c0)

    pp = params["proj"]
    proj = bdot(rnn_h, pp["w_rnn"]) + bdot(ctx, pp["w_ctx"]) + pp["b"]
    nm = pp["b"].shape[1] - 1
    return (proj[:, :nm], proj[:, nm:], (att_h, att_c), ctx, w, cum,
            (rnn_h, rnn_c))


# ----------------------------------------------------------------------------
if __name__ == "__main__":
    B, T = 2, 32
    num_mels, embedding_dim, prenet_dim = 8, 32, 16
    att_rnn_dim, att_dim, rnn_hidden_dim = 32, 16, 32
    speech_feature_dim = 4
    tile_t = 16                                   # 2 T-tiles -> exercises online softmax

    key = jax.random.PRNGKey(0)
    pkey, dkey = jax.random.split(key)
    params = init_params(pkey, num_mels=num_mels, embedding_dim=embedding_dim,
                         prenet_dim=prenet_dim, att_rnn_dim=att_rnn_dim,
                         att_dim=att_dim, rnn_hidden_dim=rnn_hidden_dim,
                         speech_feature_dim=speech_feature_dim)

    dk = jax.random.split(dkey, 12)
    prev_mel_prenet = jax.random.normal(dk[0], (B, prenet_dim), _F32)
    att_h0 = 0.1 * jax.random.normal(dk[1], (B, att_rnn_dim), _F32)
    att_c0 = 0.1 * jax.random.normal(dk[2], (B, att_rnn_dim), _F32)
    att_context = 0.1 * jax.random.normal(dk[3], (B, embedding_dim), _F32)
    att_weights = jax.nn.softmax(jax.random.normal(dk[4], (B, T), _F32), -1)
    att_weights_cum = jax.nn.softmax(jax.random.normal(dk[5], (B, T), _F32), -1)
    rnn_h0 = 0.1 * jax.random.normal(dk[6], (B, rnn_hidden_dim), _F32)
    rnn_c0 = 0.1 * jax.random.normal(dk[7], (B, rnn_hidden_dim), _F32)
    encoded = 0.5 * jax.random.normal(dk[8], (B, T, embedding_dim), _F32)
    att_encoded = 0.5 * jax.random.normal(dk[9], (B, T, att_dim), _F32)
    lengths = jnp.array([T, 20])
    encoded_mask = jnp.arange(T)[None, :] >= lengths[:, None]      # True => padded
    speech_features = 0.1 * jax.random.normal(dk[10], (B, speech_feature_dim), _F32)

    # pure-JAX reference (computed first; same bf16 weight / encoder storage)
    refs = reference_forward(params, prev_mel_prenet, (att_h0, att_c0), att_context,
                             att_weights, att_weights_cum, (rnn_h0, rnn_c0),
                             encoded, att_encoded, encoded_mask, speech_features)

    fwd = jax.jit(decoder_forward, static_argnames=("tile_t",))
    outs = fwd(params, prev_mel_prenet, (att_h0, att_c0), att_context,
               att_weights, att_weights_cum, (rnn_h0, rnn_c0),
               encoded, att_encoded, encoded_mask, speech_features,
               tile_t=tile_t)
    outs = jax.block_until_ready(outs)

    for a, r in zip(jax.tree_util.tree_leaves(outs), jax.tree_util.tree_leaves(refs)):
        assert a.shape == r.shape, (a.shape, r.shape)
        err = float(jnp.max(jnp.abs(a - r)))
        assert jnp.allclose(a, r, atol=2e-2, rtol=2e-2), err

    print("KERNEL_OK")
</pallas_src>

<mosaic_0001>
module attributes {stable_mosaic.version = 11 : i64} {
  func.func @kernel(%arg0: i32, %arg1: memref<2x80xf32, #tpu.memory_space<vmem>>, %arg2: memref<2x32xf32, #tpu.memory_space<vmem>>, %arg3: memref<2x32xf32, #tpu.memory_space<vmem>>, %arg4: memref<2x32xf32, #tpu.memory_space<vmem>>, %arg5: memref<2x2x16xf32, #tpu.memory_space<vmem>>, %arg6: memref<1x2x46xf32, #tpu.memory_space<vmem>>, %arg7: memref<1x2x46xf32, #tpu.memory_space<vmem>>, %arg8: memref<1x2x16xf32, #tpu.memory_space<vmem>>, %arg9: memref<2x16x16xbf16, #tpu.memory_space<vmem>>, %arg10: memref<2x16x32xbf16, #tpu.memory_space<vmem>>, %arg11: memref<2x4xf32, #tpu.memory_space<vmem>>, %arg12: memref<80x128xbf16, #tpu.memory_space<vmem>>, %arg13: memref<1x128xf32, #tpu.memory_space<vmem>>, %arg14: memref<32x16xbf16, #tpu.memory_space<vmem>>, %arg15: memref<62x16xf32, #tpu.memory_space<vmem>>, %arg16: memref<1x16xf32, #tpu.memory_space<vmem>>, %arg17: memref<32x128xbf16, #tpu.memory_space<vmem>>, %arg18: memref<32x128xbf16, #tpu.memory_space<vmem>>, %arg19: memref<4x128xbf16, #tpu.memory_space<vmem>>, %arg20: memref<32x128xbf16, #tpu.memory_space<vmem>>, %arg21: memref<1x128xf32, #tpu.memory_space<vmem>>, %arg22: memref<32x9xbf16, #tpu.memory_space<vmem>>, %arg23: memref<32x9xbf16, #tpu.memory_space<vmem>>, %arg24: memref<1x9xf32, #tpu.memory_space<vmem>>, %arg25: memref<2x9xf32, #tpu.memory_space<vmem>>, %arg26: memref<2x32xf32, #tpu.memory_space<vmem>>, %arg27: memref<2x32xf32, #tpu.memory_space<vmem>>, %arg28: memref<2x32xf32, #tpu.memory_space<vmem>>, %arg29: memref<2x2x16xf32, #tpu.memory_space<vmem>>, %arg30: memref<2x2x16xf32, #tpu.memory_space<vmem>>, %arg31: memref<2x32xf32, #tpu.memory_space<vmem>>, %arg32: memref<2x32xf32, #tpu.memory_space<vmem>>, %arg33: memref<2x32xf32, #tpu.memory_space<vmem>>, %arg34: memref<2x32xf32, #tpu.memory_space<vmem>>, %arg35: memref<2x16xf32, #tpu.memory_space<vmem>>, %arg36: memref<2x1xf32, #tpu.memory_space<vmem>>, %arg37: memref<2x1xf32, #tpu.memory_space<vmem>>, %arg38: memref<2x32xf32, #tpu.memory_space<vmem>>, %arg39: memref<2x2x16xf32, #tpu.memory_space<vmem>>) attributes {dimension_semantics = [#tpu.dimension_semantics<arbitrary>], iteration_bounds = array<i64: 2>, scalar_prefetch = 0 : i64, scratch_operands = 7 : i64, tpu.core_type = #tpu.core_type<tc>, window_params = [{pipeline_mode = #tpu.pipeline_mode<synchronous>, transform_indices = @transform_0, window_bounds = array<i64: 2, 80>}, {pipeline_mode = #tpu.pipeline_mode<synchronous>, transform_indices = @transform_1, window_bounds = array<i64: 2, 32>}, {pipeline_mode = #tpu.pipeline_mode<synchronous>, transform_indices = @transform_2, window_bounds = array<i64: 2, 32>}, {pipeline_mode = #tpu.pipeline_mode<synchronous>, transform_indices = @transform_3, window_bounds = array<i64: 2, 32>}, {pipeline_mode = #tpu.pipeline_mode<synchronous>, transform_indices = @transform_4, window_bounds = array<i64: 2, 2, 16>}, {transform_indices = @transform_5, window_bounds = array<i64: 1, 2, 46>}, {transform_indices = @transform_6, window_bounds = array<i64: 1, 2, 46>}, {transform_indices = @transform_7, window_bounds = array<i64: 1, 2, 16>}, {transform_indices = @transform_8, window_bounds = array<i64: 2, 16, 16>}, {transform_indices = @transform_9, window_bounds = array<i64: 2, 16, 32>}, {pipeline_mode = #tpu.pipeline_mode<synchronous>, transform_indices = @transform_10, window_bounds = array<i64: 2, 4>}, {pipeline_mode = #tpu.pipeline_mode<synchronous>, transform_indices = @transform_11, window_bounds = array<i64: 80, 128>}, {pipeline_mode = #tpu.pipeline_mode<synchronous>, transform_indices = @transform_12, window_bounds = array<i64: 1, 128>}, {pipeline_mode = #tpu.pipeline_mode<synchronous>, transform_indices = @transform_13, window_bounds = array<i64: 32, 16>}, {pipeline_mode = #tpu.pipeline_mode<synchronous>, transform_indices = @transform_14, window_bounds = array<i64: 62, 16>}, {pipeline_mode = #tpu.pipeline_mode<synchronous>, transform_indices = @transform_15, window_bounds = array<i64: 1, 16>}, {pipeline_mode = #tpu.pipeline_mode<synchronous>, transform_indices = @transform_16, window_bounds = array<i64: 32, 128>}, {pipeline_mode = #tpu.pipeline_mode<synchronous>, transform_indices = @transform_17, window_bounds = array<i64: 32, 128>}, {pipeline_mode = #tpu.pipeline_mode<synchronous>, transform_indices = @transform_18, window_bounds = array<i64: 4, 128>}, {pipeline_mode = #tpu.pipeline_mode<synchronous>, transform_indices = @transform_19, window_bounds = array<i64: 32, 128>}, {pipeline_mode = #tpu.pipeline_mode<synchronous>, transform_indices = @transform_20, window_bounds = array<i64: 1, 128>}, {pipeline_mode = #tpu.pipeline_mode<synchronous>, transform_indices = @transform_21, window_bounds = array<i64: 32, 9>}, {pipeline_mode = #tpu.pipeline_mode<synchronous>, transform_indices = @transform_22, window_bounds = array<i64: 32, 9>}, {pipeline_mode = #tpu.pipeline_mode<synchronous>, transform_indices = @transform_23, window_bounds = array<i64: 1, 9>}, {pipeline_mode = #tpu.pipeline_mode<synchronous>, transform_indices = @transform_24, window_bounds = array<i64: 2, 9>}, {pipeline_mode = #tpu.pipeline_mode<synchronous>, transform_indices = @transform_25, window_bounds = array<i64: 2, 32>}, {pipeline_mode = #tpu.pipeline_mode<synchronous>, transform_indices = @transform_26, window_bounds = array<i64: 2, 32>}, {pipeline_mode = #tpu.pipeline_mode<synchronous>, transform_indices = @transform_27, window_bounds = array<i64: 2, 32>}, {pipeline_mode = #tpu.pipeline_mode<synchronous>, transform_indices = @transform_28, window_bounds = array<i64: 2, 2, 16>}, {pipeline_mode = #tpu.pipeline_mode<synchronous>, transform_indices = @transform_29, window_bounds = array<i64: 2, 2, 16>}, {pipeline_mode = #tpu.pipeline_mode<synchronous>, transform_indices = @transform_30, window_bounds = array<i64: 2, 32>}, {pipeline_mode = #tpu.pipeline_mode<synchronous>, transform_indices = @transform_31, window_bounds = array<i64: 2, 32>}]} {
    %c0_i32 = arith.constant 0 : i32
    %0 = arith.cmpi eq, %arg0, %c0_i32 : i32
    %1 = arith.extui %0 : i1 to i32
    %c0_i32_0 = arith.constant 0 : i32
    %2 = arith.cmpi ne, %1, %c0_i32_0 : i32
    scf.if %2 {
      %c0_40 = arith.constant 0 : index
      %c0_41 = arith.constant 0 : index
      %617 = vector.load %arg1[%c0_40, %c0_41] : memref<2x80xf32, #tpu.memory_space<vmem>>, vector<2x80xf32>
      %618 = arith.truncf %617 : vector<2x80xf32> to vector<2x80xbf16>
      %c0_42 = arith.constant 0 : index
      %c0_43 = arith.constant 0 : index
      %619 = vector.load %arg12[%c0_42, %c0_43] : memref<80x128xbf16, #tpu.memory_space<vmem>>, vector<80x128xbf16>
      %cst_44 = arith.constant dense<0.000000e+00> : vector<2x128xf32>
      %620 = tpu.matmul %618, %619, %cst_44 {dimension_numbers = #tpu.dot_dimension_numbers<[1], [0], [0], [1], [0, 0, 1, 1], [], []>} : vector<2x80xbf16>, vector<80x128xbf16>, vector<2x128xf32> -> vector<2x128xf32>
      %c0_45 = arith.constant 0 : index
      %c0_46 = arith.constant 0 : index
      %621 = vector.load %arg13[%c0_45, %c0_46] : memref<1x128xf32, #tpu.memory_space<vmem>>, vector<1x128xf32>
      %622 = vector.broadcast %621 : vector<1x128xf32> to vector<2x128xf32>
      %623 = arith.addf %620, %622 : vector<2x128xf32>
      %c0_47 = arith.constant 0 : index
      %c0_48 = arith.constant 0 : index
      %624 = vector.load %arg2[%c0_47, %c0_48] : memref<2x32xf32, #tpu.memory_space<vmem>>, vector<2x32xf32>
      %625 = vector.extract_strided_slice %623 {offsets = [0, 0], sizes = [2, 32], strides = [1, 1]} : vector<2x128xf32> to vector<2x32xf32>
      %cst_49 = arith.constant 5.000000e-01 : f32
      %626 = vector.broadcast %cst_49 : f32 to vector<2x32xf32>
      %627 = arith.mulf %626, %625 : vector<2x32xf32>
      %628 = math.tanh %627 : vector<2x32xf32>
      %cst_50 = arith.constant 1.000000e+00 : f32
      %629 = vector.broadcast %cst_50 : f32 to vector<2x32xf32>
      %630 = arith.addf %628, %629 : vector<2x32xf32>
      %cst_51 = arith.constant 5.000000e-01 : f32
      %631 = vector.broadcast %cst_51 : f32 to vector<2x32xf32>
      %632 = arith.mulf %631, %630 : vector<2x32xf32>
      %633 = vector.extract_strided_slice %623 {offsets = [0, 32], sizes = [2, 32], strides = [1, 1]} : vector<2x128xf32> to vector<2x32xf32>
      %cst_52 = arith.constant 5.000000e-01 : f32
      %634 = vector.broadcast %cst_52 : f32 to vector<2x32xf32>
      %635 = arith.mulf %634, %633 : vector<2x32xf32>
      %636 = math.tanh %635 : vector<2x32xf32>
      %cst_53 = arith.constant 1.000000e+00 : f32
      %637 = vector.broadcast %cst_53 : f32 to vector<2x32xf32>
      %638 = arith.addf %636, %637 : vector<2x32xf32>
      %cst_54 = arith.constant 5.000000e-01 : f32
      %639 = vector.broadcast %cst_54 : f32 to vector<2x32xf32>
      %640 = arith.mulf %639, %638 : vector<2x32xf32>
      %641 = vector.extract_strided_slice %623 {offsets = [0, 64], sizes = [2, 32], strides = [1, 1]} : vector<2x128xf32> to vector<2x32xf32>
      %642 = math.tanh %641 : vector<2x32xf32>
      %643 = vector.extract_strided_slice %623 {offsets = [0, 96], sizes = [2, 32], strides = [1, 1]} : vector<2x128xf32> to vector<2x32xf32>
      %cst_55 = arith.constant 5.000000e-01 : f32
      %644 = vector.broadcast %cst_55 : f32 to vector<2x32xf32>
      %645 = arith.mulf %644, %643 : vector<2x32xf32>
      %646 = math.tanh %645 : vector<2x32xf32>
      %cst_56 = arith.constant 1.000000e+00 : f32
      %647 = vector.broadcast %cst_56 : f32 to vector<2x32xf32>
      %648 = arith.addf %646, %647 : vector<2x32xf32>
      %cst_57 = arith.constant 5.000000e-01 : f32
      %649 = vector.broadcast %cst_57 : f32 to vector<2x32xf32>
      %650 = arith.mulf %649, %648 : vector<2x32xf32>
      %651 = arith.mulf %640, %624 : vector<2x32xf32>
      %652 = arith.mulf %632, %642 : vector<2x32xf32>
      %653 = arith.addf %651, %652 : vector<2x32xf32>
      %654 = math.tanh %653 : vector<2x32xf32>
      %655 = arith.mulf %650, %654 : vector<2x32xf32>
      %c0_58 = arith.constant 0 : index
      %c0_59 = arith.constant 0 : index
      %656 = vector.load %arg33[%c0_58, %c0_59] : memref<2x32xf32, #tpu.memory_space<vmem>>, vector<2x32xf32>
      tpu.vector_store %arg33[%c0_58, %c0_59], %655 {strides = array<i32>} : memref<2x32xf32, #tpu.memory_space<vmem>>, vector<2x32xf32>,
      %c0_60 = arith.constant 0 : index
      %c0_61 = arith.constant 0 : index
      %657 = vector.load %arg34[%c0_60, %c0_61] : memref<2x32xf32, #tpu.memory_space<vmem>>, vector<2x32xf32>
      tpu.vector_store %arg34[%c0_60, %c0_61], %653 {strides = array<i32>} : memref<2x32xf32, #tpu.memory_space<vmem>>, vector<2x32xf32>,
      %658 = arith.truncf %655 : vector<2x32xf32> to vector<2x32xbf16>
      %c0_62 = arith.constant 0 : index
      %c0_63 = arith.constant 0 : index
      %659 = vector.load %arg14[%c0_62, %c0_63] : memref<32x16xbf16, #tpu.memory_space<vmem>>, vector<32x16xbf16>
      %cst_64 = arith.constant dense<0.000000e+00> : vector<2x16xf32>
      %660 = tpu.matmul %658, %659, %cst_64 {dimension_numbers = #tpu.dot_dimension_numbers<[1], [0], [0], [1], [0, 0, 1, 1], [], []>} : vector<2x32xbf16>, vector<32x16xbf16>, vector<2x16xf32> -> vector<2x16xf32>
      %c0_65 = arith.constant 0 : index
      %c0_66 = arith.constant 0 : index
      %661 = vector.load %arg35[%c0_65, %c0_66] : memref<2x16xf32, #tpu.memory_space<vmem>>, vector<2x16xf32>
      tpu.vector_store %arg35[%c0_65, %c0_66], %660 {strides = array<i32>} : memref<2x16xf32, #tpu.memory_space<vmem>>, vector<2x16xf32>,
      %cst_67 = arith.constant -1.000000e+30 : f32
      %662 = vector.broadcast %cst_67 : f32 to vector<2x1xf32>
      %c0_68 = arith.constant 0 : index
      %c0_69 = arith.constant 0 : index
      %663 = vector.load %arg36[%c0_68, %c0_69] : memref<2x1xf32, #tpu.memory_space<vmem>>, vector<2x1xf32>
      tpu.vector_store %arg36[%c0_68, %c0_69], %662 {strides = array<i32>} : memref<2x1xf32, #tpu.memory_space<vmem>>, vector<2x1xf32>,
      %cst_70 = arith.constant 0.000000e+00 : f32
      %664 = vector.broadcast %cst_70 : f32 to vector<2x1xf32>
      %c0_71 = arith.constant 0 : index
      %c0_72 = arith.constant 0 : index
      %665 = vector.load %arg37[%c0_71, %c0_72] : memref<2x1xf32, #tpu.memory_space<vmem>>, vector<2x1xf32>
      tpu.vector_store %arg37[%c0_71, %c0_72], %664 {strides = array<i32>} : memref<2x1xf32, #tpu.memory_space<vmem>>, vector<2x1xf32>,
      %cst_73 = arith.constant 0.000000e+00 : f32
      %666 = vector.broadcast %cst_73 : f32 to vector<2x32xf32>
      %c0_74 = arith.constant 0 : index
      %c0_75 = arith.constant 0 : index
      %667 = vector.load %arg38[%c0_74, %c0_75] : memref<2x32xf32, #tpu.memory_space<vmem>>, vector<2x32xf32>
      tpu.vector_store %arg38[%c0_74, %c0_75], %666 {strides = array<i32>} : memref<2x32xf32, #tpu.memory_space<vmem>>, vector<2x32xf32>,
    } else {
    }
    %c0 = arith.constant 0 : index
    %c0_1 = arith.constant 0 : index
    %c0_2 = arith.constant 0 : index
    %3 = vector.load %arg6[%c0, %c0_1, %c0_2] : memref<1x2x46xf32, #tpu.memory_space<vmem>>, vector<1x2x46xf32>
    %4 = vector.shape_cast %3 : vector<1x2x46xf32> to vector<2x46xf32>
    %c0_3 = arith.constant 0 : index
    %c0_4 = arith.constant 0 : index
    %c0_5 = arith.constant 0 : index
    %5 = vector.load %arg7[%c0_3, %c0_4, %c0_5] : memref<1x2x46xf32, #tpu.memory_space<vmem>>, vector<1x2x46xf32>
    %6 = vector.shape_cast %5 : vector<1x2x46xf32> to vector<2x46xf32>
    %c0_6 = arith.constant 0 : index
    %c0_7 = arith.constant 0 : index
    %7 = vector.load %arg15[%c0_6, %c0_7] : memref<62x16xf32, #tpu.memory_space<vmem>>, vector<62x16xf32>
    %cst = arith.constant 0.000000e+00 : f32
    %8 = vector.broadcast %cst : f32 to vector<2x16x16xf32>
    %9 = vector.extract_strided_slice %4 {offsets = [0, 0], sizes = [2, 16], strides = [1, 1]} : vector<2x46xf32> to vector<2x16xf32>
    %10 = vector.extract_strided_slice %6 {offsets = [0, 0], sizes = [2, 16], strides = [1, 1]} : vector<2x46xf32> to vector<2x16xf32>
    %11 = vector.shape_cast %9 : vector<2x16xf32> to vector<2x16x1xf32>
    %12 = vector.extract_strided_slice %7 {offsets = [0, 0], sizes = [1, 16], strides = [1, 1]} : vector<62x16xf32> to vector<1x16xf32>
    %13 = vector.shape_cast %12 : vector<1x16xf32> to vector<16xf32>
    %14 = vector.shape_cast %13 : vector<16xf32> to vector<1x1x16xf32>
    %15 = vector.broadcast %11 : vector<2x16x1xf32> to vector<2x16x16xf32>
    %16 = vector.broadcast %14 : vector<1x1x16xf32> to vector<2x16x16xf32>
    %17 = arith.mulf %15, %16 : vector<2x16x16xf32>
    %18 = arith.addf %8, %17 : vector<2x16x16xf32>
    %19 = vector.shape_cast %10 : vector<2x16xf32> to vector<2x16x1xf32>
    %20 = vector.extract_strided_slice %7 {offsets = [1, 0], sizes = [1, 16], strides = [1, 1]} : vector<62x16xf32> to vector<1x16xf32>
    %21 = vector.shape_cast %20 : vector<1x16xf32> to vector<16xf32>
    %22 = vector.shape_cast %21 : vector<16xf32> to vector<1x1x16xf32>
    %23 = vector.broadcast %19 : vector<2x16x1xf32> to vector<2x16x16xf32>
    %24 = vector.broadcast %22 : vector<1x1x16xf32> to vector<2x16x16xf32>
    %25 = arith.mulf %23, %24 : vector<2x16x16xf32>
    %26 = arith.addf %18, %25 : vector<2x16x16xf32>
    %27 = vector.extract_strided_slice %4 {offsets = [0, 1], sizes = [2, 16], strides = [1, 1]} : vector<2x46xf32> to vector<2x16xf32>
    %28 = vector.extract_strided_slice %6 {offsets = [0, 1], sizes = [2, 16], strides = [1, 1]} : vector<2x46xf32> to vector<2x16xf32>
    %29 = vector.shape_cast %27 : vector<2x16xf32> to vector<2x16x1xf32>
    %30 = vector.extract_strided_slice %7 {offsets = [2, 0], sizes = [1, 16], strides = [1, 1]} : vector<62x16xf32> to vector<1x16xf32>
    %31 = vector.shape_cast %30 : vector<1x16xf32> to vector<16xf32>
    %32 = vector.shape_cast %31 : vector<16xf32> to vector<1x1x16xf32>
    %33 = vector.broadcast %29 : vector<2x16x1xf32> to vector<2x16x16xf32>
    %34 = vector.broadcast %32 : vector<1x1x16xf32> to vector<2x16x16xf32>
    %35 = arith.mulf %33, %34 : vector<2x16x16xf32>
    %36 = arith.addf %26, %35 : vector<2x16x16xf32>
    %37 = vector.shape_cast %28 : vector<2x16xf32> to vector<2x16x1xf32>
    %38 = vector.extract_strided_slice %7 {offsets = [3, 0], sizes = [1, 16], strides = [1, 1]} : vector<62x16xf32> to vector<1x16xf32>
    %39 = vector.shape_cast %38 : vector<1x16xf32> to vector<16xf32>
    %40 = vector.shape_cast %39 : vector<16xf32> to vector<1x1x16xf32>
    %41 = vector.broadcast %37 : vector<2x16x1xf32> to vector<2x16x16xf32>
    %42 = vector.broadcast %40 : vector<1x1x16xf32> to vector<2x16x16xf32>
    %43 = arith.mulf %41, %42 : vector<2x16x16xf32>
    %44 = arith.addf %36, %43 : vector<2x16x16xf32>
    %45 = vector.extract_strided_slice %4 {offsets = [0, 2], sizes = [2, 16], strides = [1, 1]} : vector<2x46xf32> to vector<2x16xf32>
    %46 = vector.extract_strided_slice %6 {offsets = [0, 2], sizes = [2, 16], strides = [1, 1]} : vector<2x46xf32> to vector<2x16xf32>
    %47 = vector.shape_cast %45 : vector<2x16xf32> to vector<2x16x1xf32>
    %48 = vector.extract_strided_slice %7 {offsets = [4, 0], sizes = [1, 16], strides = [1, 1]} : vector<62x16xf32> to vector<1x16xf32>
    %49 = vector.shape_cast %48 : vector<1x16xf32> to vector<16xf32>
    %50 = vector.shape_cast %49 : vector<16xf32> to vector<1x1x16xf32>
    %51 = vector.broadcast %47 : vector<2x16x1xf32> to vector<2x16x16xf32>
    %52 = vector.broadcast %50 : vector<1x1x16xf32> to vector<2x16x16xf32>
    %53 = arith.mulf %51, %52 : vector<2x16x16xf32>
    %54 = arith.addf %44, %53 : vector<2x16x16xf32>
    %55 = vector.shape_cast %46 : vector<2x16xf32> to vector<2x16x1xf32>
    %56 = vector.extract_strided_slice %7 {offsets = [5, 0], sizes = [1, 16], strides = [1, 1]} : vector<62x16xf32> to vector<1x16xf32>
    %57 = vector.shape_cast %56 : vector<1x16xf32> to vector<16xf32>
    %58 = vector.shape_cast %57 : vector<16xf32> to vector<1x1x16xf32>
    %59 = vector.broadcast %55 : vector<2x16x1xf32> to vector<2x16x16xf32>
    %60 = vector.broadcast %58 : vector<1x1x16xf32> to vector<2x16x16xf32>
    %61 = arith.mulf %59, %60 : vector<2x16x16xf32>
    %62 = arith.addf %54, %61 : vector<2x16x16xf32>
    %63 = vector.extract_strided_slice %4 {offsets = [0, 3], sizes = [2, 16], strides = [1, 1]} : vector<2x46xf32> to vector<2x16xf32>
    %64 = vector.extract_strided_slice %6 {offsets = [0, 3], sizes = [2, 16], strides = [1, 1]} : vector<2x46xf32> to vector<2x16xf32>
    %65 = vector.shape_cast %63 : vector<2x16xf32> to vector<2x16x1xf32>
    %66 = vector.extract_strided_slice %7 {offsets = [6, 0], sizes = [1, 16], strides = [1, 1]} : vector<62x16xf32> to vector<1x16xf32>
    %67 = vector.shape_cast %66 : vector<1x16xf32> to vector<16xf32>
    %68 = vector.shape_cast %67 : vector<16xf32> to vector<1x1x16xf32>
    %69 = vector.broadcast %65 : vector<2x16x1xf32> to vector<2x16x16xf32>
    %70 = vector.broadcast %68 : vector<1x1x16xf32> to vector<2x16x16xf32>
    %71 = arith.mulf %69, %70 : vector<2x16x16xf32>
    %72 = arith.addf %62, %71 : vector<2x16x16xf32>
    %73 = vector.shape_cast %64 : vector<2x16xf32> to vector<2x16x1xf32>
    %74 = vector.extract_strided_slice %7 {offsets = [7, 0], sizes = [1, 16], strides = [1, 1]} : vector<62x16xf32> to vector<1x16xf32>
    %75 = vector.shape_cast %74 : vector<1x16xf32> to vector<16xf32>
    %76 = vector.shape_cast %75 : vector<16xf32> to vector<1x1x16xf32>
    %77 = vector.broadcast %73 : vector<2x16x1xf32> to vector<2x16x16xf32>
    %78 = vector.broadcast %76 : vector<1x1x16xf32> to vector<2x16x16xf32>
    %79 = arith.mulf %77, %78 : vector<2x16x16xf32>
    %80 = arith.addf %72, %79 : vector<2x16x16xf32>
    %81 = vector.extract_strided_slice %4 {offsets = [0, 4], sizes = [2, 16], strides = [1, 1]} : vector<2x46xf32> to vector<2x16xf32>
    %82 = vector.extract_strided_slice %6 {offsets = [0, 4], sizes = [2, 16], strides = [1, 1]} : vector<2x46xf32> to vector<2x16xf32>
    %83 = vector.shape_cast %81 : vector<2x16xf32> to vector<2x16x1xf32>
    %84 = vector.extract_strided_slice %7 {offsets = [8, 0], sizes = [1, 16], strides = [1, 1]} : vector<62x16xf32> to vector<1x16xf32>
    %85 = vector.shape_cast %84 : vector<1x16xf32> to vector<16xf32>
    %86 = vector.shape_cast %85 : vector<16xf32> to vector<1x1x16xf32>
    %87 = vector.broadcast %83 : vector<2x16x1xf32> to vector<2x16x16xf32>
    %88 = vector.broadcast %86 : vector<1x1x16xf32> to vector<2x16x16xf32>
    %89 = arith.mulf %87, %88 : vector<2x16x16xf32>
    %90 = arith.addf %80, %89 : vector<2x16x16xf32>
    %91 = vector.shape_cast %82 : vector<2x16xf32> to vector<2x16x1xf32>
    %92 = vector.extract_strided_slice %7 {offsets = [9, 0], sizes = [1, 16], strides = [1, 1]} : vector<62x16xf32> to vector<1x16xf32>
    %93 = vector.shape_cast %92 : vector<1x16xf32> to vector<16xf32>
    %94 = vector.shape_cast %93 : vector<16xf32> to vector<1x1x16xf32>
    %95 = vector.broadcast %91 : vector<2x16x1xf32> to vector<2x16x16xf32>
    %96 = vector.broadcast %94 : vector<1x1x16xf32> to vector<2x16x16xf32>
    %97 = arith.mulf %95, %96 : vector<2x16x16xf32>
    %98 = arith.addf %90, %97 : vector<2x16x16xf32>
    %99 = vector.extract_strided_slice %4 {offsets = [0, 5], sizes = [2, 16], strides = [1, 1]} : vector<2x46xf32> to vector<2x16xf32>
    %100 = vector.extract_strided_slice %6 {offsets = [0, 5], sizes = [2, 16], strides = [1, 1]} : vector<2x46xf32> to vector<2x16xf32>
    %101 = vector.shape_cast %99 : vector<2x16xf32> to vector<2x16x1xf32>
    %102 = vector.extract_strided_slice %7 {offsets = [10, 0], sizes = [1, 16], strides = [1, 1]} : vector<62x16xf32> to vector<1x16xf32>
    %103 = vector.shape_cast %102 : vector<1x16xf32> to vector<16xf32>
    %104 = vector.shape_cast %103 : vector<16xf32> to vector<1x1x16xf32>
    %105 = vector.broadcast %101 : vector<2x16x1xf32> to vector<2x16x16xf32>
    %106 = vector.broadcast %104 : vector<1x1x16xf32> to vector<2x16x16xf32>
    %107 = arith.mulf %105, %106 : vector<2x16x16xf32>
    %108 = arith.addf %98, %107 : vector<2x16x16xf32>
    %109 = vector.shape_cast %100 : vector<2x16xf32> to vector<2x16x1xf32>
    %110 = vector.extract_strided_slice %7 {offsets = [11, 0], sizes = [1, 16], strides = [1, 1]} : vector<62x16xf32> to vector<1x16xf32>
    %111 = vector.shape_cast %110 : vector<1x16xf32> to vector<16xf32>
    %112 = vector.shape_cast %111 : vector<16xf32> to vector<1x1x16xf32>
    %113 = vector.broadcast %109 : vector<2x16x1xf32> to vector<2x16x16xf32>
    %114 = vector.broadcast %112 : vector<1x1x16xf32> to vector<2x16x16xf32>
    %115 = arith.mulf %113, %114 : vector<2x16x16xf32>
    %116 = arith.addf %108, %115 : vector<2x16x16xf32>
    %117 = vector.extract_strided_slice %4 {offsets = [0, 6], sizes = [2, 16], strides = [1, 1]} : vector<2x46xf32> to vector<2x16xf32>
    %118 = vector.extract_strided_slice %6 {offsets = [0, 6], sizes = [2, 16], strides = [1, 1]} : vector<2x46xf32> to vector<2x16xf32>
    %119 = vector.shape_cast %117 : vector<2x16xf32> to vector<2x16x1xf32>
    %120 = vector.extract_strided_slice %7 {offsets = [12, 0], sizes = [1, 16], strides = [1, 1]} : vector<62x16xf32> to vector<1x16xf32>
    %121 = vector.shape_cast %120 : vector<1x16xf32> to vector<16xf32>
    %122 = vector.shape_cast %121 : vector<16xf32> to vector<1x1x16xf32>
    %123 = vector.broadcast %119 : vector<2x16x1xf32> to vector<2x16x16xf32>
    %124 = vector.broadcast %122 : vector<1x1x16xf32> to vector<2x16x16xf32>
    %125 = arith.mulf %123, %124 : vector<2x16x16xf32>
    %126 = arith.addf %116, %125 : vector<2x16x16xf32>
    %127 = vector.shape_cast %118 : vector<2x16xf32> to vector<2x16x1xf32>
    %128 = vector.extract_strided_slice %7 {offsets = [13, 0], sizes = [1, 16], strides = [1, 1]} : vector<62x16xf32> to vector<1x16xf32>
    %129 = vector.shape_cast %128 : vector<1x16xf32> to vector<16xf32>
    %130 = vector.shape_cast %129 : vector<16xf32> to vector<1x1x16xf32>
    %131 = vector.broadcast %127 : vector<2x16x1xf32> to vector<2x16x16xf32>
    %132 = vector.broadcast %130 : vector<1x1x16xf32> to vector<2x16x16xf32>
    %133 = arith.mulf %131, %132 : vector<2x16x16xf32>
    %134 = arith.addf %126, %133 : vector<2x16x16xf32>
    %135 = vector.extract_strided_slice %4 {offsets = [0, 7], sizes = [2, 16], strides = [1, 1]} : vector<2x46xf32> to vector<2x16xf32>
    %136 = vector.extract_strided_slice %6 {offsets = [0, 7], sizes = [2, 16], strides = [1, 1]} : vector<2x46xf32> to vector<2x16xf32>
    %137 = vector.shape_cast %135 : vector<2x16xf32> to vector<2x16x1xf32>
    %138 = vector.extract_strided_slice %7 {offsets = [14, 0], sizes = [1, 16], strides = [1, 1]} : vector<62x16xf32> to vector<1x16xf32>
    %139 = vector.shape_cast %138 : vector<1x16xf32> to vector<16xf32>
    %140 = vector.shape_cast %139 : vector<16xf32> to vector<1x1x16xf32>
    %141 = vector.broadcast %137 : vector<2x16x1xf32> to vector<2x16x16xf32>
    %142 = vector.broadcast %140 : vector<1x1x16xf32> to vector<2x16x16xf32>
    %143 = arith.mulf %141, %142 : vector<2x16x16xf32>
    %144 = arith.addf %134, %143 : vector<2x16x16xf32>
    %145 = vector.shape_cast %136 : vector<2x16xf32> to vector<2x16x1xf32>
    %146 = vector.extract_strided_slice %7 {offsets = [15, 0], sizes = [1, 16], strides = [1, 1]} : vector<62x16xf32> to vector<1x16xf32>
    %147 = vector.shape_cast %146 : vector<1x16xf32> to vector<16xf32>
    %148 = vector.shape_cast %147 : vector<16xf32> to vector<1x1x16xf32>
    %149 = vector.broadcast %145 : vector<2x16x1xf32> to vector<2x16x16xf32>
    %150 = vector.broadcast %148 : vector<1x1x16xf32> to vector<2x16x16xf32>
    %151 = arith.mulf %149, %150 : vector<2x16x16xf32>
    %152 = arith.addf %144, %151 : vector<2x16x16xf32>
    %153 = vector.extract_strided_slice %4 {offsets = [0, 8], sizes = [2, 16], strides = [1, 1]} : vector<2x46xf32> to vector<2x16xf32>
    %154 = vector.extract_strided_slice %6 {offsets = [0, 8], sizes = [2, 16], strides = [1, 1]} : vector<2x46xf32> to vector<2x16xf32>
    %155 = vector.shape_cast %153 : vector<2x16xf32> to vector<2x16x1xf32>
    %156 = vector.extract_strided_slice %7 {offsets = [16, 0], sizes = [1, 16], strides = [1, 1]} : vector<62x16xf32> to vector<1x16xf32>
    %157 = vector.shape_cast %156 : vector<1x16xf32> to vector<16xf32>
    %158 = vector.shape_cast %157 : vector<16xf32> to vector<1x1x16xf32>
    %159 = vector.broadcast %155 : vector<2x16x1xf32> to vector<2x16x16xf32>
    %160 = vector.broadcast %158 : vector<1x1x16xf32> to vector<2x16x16xf32>
    %161 = arith.mulf %159, %160 : vector<2x16x16xf32>
    %162 = arith.addf %152, %161 : vector<2x16x16xf32>
    %163 = vector.shape_cast %154 : vector<2x16xf32> to vector<2x16x1xf32>
    %164 = vector.extract_strided_slice %7 {offsets = [17, 0], sizes = [1, 16], strides = [1, 1]} : vector<62x16xf32> to vector<1x16xf32>
    %165 = vector.shape_cast %164 : vector<1x16xf32> to vector<16xf32>
    %166 = vector.shape_cast %165 : vector<16xf32> to vector<1x1x16xf32>
    %167 = vector.broadcast %163 : vector<2x16x1xf32> to vector<2x16x16xf32>
    %168 = vector.broadcast %166 : vector<1x1x16xf32> to vector<2x16x16xf32>
    %169 = arith.mulf %167, %168 : vector<2x16x16xf32>
    %170 = arith.addf %162, %169 : vector<2x16x16xf32>
    %171 = vector.extract_strided_slice %4 {offsets = [0, 9], sizes = [2, 16], strides = [1, 1]} : vector<2x46xf32> to vector<2x16xf32>
    %172 = vector.extract_strided_slice %6 {offsets = [0, 9], sizes = [2, 16], strides = [1, 1]} : vector<2x46xf32> to vector<2x16xf32>
    %173 = vector.shape_cast %171 : vector<2x16xf32> to vector<2x16x1xf32>
    %174 = vector.extract_strided_slice %7 {offsets = [18, 0], sizes = [1, 16], strides = [1, 1]} : vector<62x16xf32> to vector<1x16xf32>
    %175 = vector.shape_cast %174 : vector<1x16xf32> to vector<16xf32>
    %176 = vector.shape_cast %175 : vector<16xf32> to vector<1x1x16xf32>
    %177 = vector.broadcast %173 : vector<2x16x1xf32> to vector<2x16x16xf32>
    %178 = vector.broadcast %176 : vector<1x1x16xf32> to vector<2x16x16xf32>
    %179 = arith.mulf %177, %178 : vector<2x16x16xf32>
    %180 = arith.addf %170, %179 : vector<2x16x16xf32>
    %181 = vector.shape_cast %172 : vector<2x16xf32> to vector<2x16x1xf32>
    %182 = vector.extract_strided_slice %7 {offsets = [19, 0], sizes = [1, 16], strides = [1, 1]} : vector<62x16xf32> to vector<1x16xf32>
    %183 = vector.shape_cast %182 : vector<1x16xf32> to vector<16xf32>
    %184 = vector.shape_cast %183 : vector<16xf32> to vector<1x1x16xf32>
    %185 = vector.broadcast %181 : vector<2x16x1xf32> to vector<2x16x16xf32>
    %186 = vector.broadcast %184 : vector<1x1x16xf32> to vector<2x16x16xf32>
    %187 = arith.mulf %185, %186 : vector<2x16x16xf32>
    %188 = arith.addf %180, %187 : vector<2x16x16xf32>
    %189 = vector.extract_strided_slice %4 {offsets = [0, 10], sizes = [2, 16], strides = [1, 1]} : vector<2x46xf32> to vector<2x16xf32>
    %190 = vector.extract_strided_slice %6 {offsets = [0, 10], sizes = [2, 16], strides = [1, 1]} : vector<2x46xf32> to vector<2x16xf32>
    %191 = vector.shape_cast %189 : vector<2x16xf32> to vector<2x16x1xf32>
    %192 = vector.extract_strided_slice %7 {offsets = [20, 0], sizes = [1, 16], strides = [1, 1]} : vector<62x16xf32> to vector<1x16xf32>
    %193 = vector.shape_cast %192 : vector<1x16xf32> to vector<16xf32>
    %194 = vector.shape_cast %193 : vector<16xf32> to vector<1x1x16xf32>
    %195 = vector.broadcast %191 : vector<2x16x1xf32> to vector<2x16x16xf32>
    %196 = vector.broadcast %194 : vector<1x1x16xf32> to vector<2x16x16xf32>
    %197 = arith.mulf %195, %196 : vector<2x16x16xf32>
    %198 = arith.addf %188, %197 : vector<2x16x16xf32>
    %199 = vector.shape_cast %190 : vector<2x16xf32> to vector<2x16x1xf32>
    %200 = vector.extract_strided_slice %7 {offsets = [21, 0], sizes = [1, 16], strides = [1, 1]} : vector<62x16xf32> to vector<1x16xf32>
    %201 = vector.shape_cast %200 : vector<1x16xf32> to vector<16xf32>
    %202 = vector.shape_cast %201 : vector<16xf32> to vector<1x1x16xf32>
    %203 = vector.broadcast %199 : vector<2x16x1xf32> to vector<2x16x16xf32>
    %204 = vector.broadcast %202 : vector<1x1x16xf32> to vector<2x16x16xf32>
    %205 = arith.mulf %203, %204 : vector<2x16x16xf32>
    %206 = arith.addf %198, %205 : vector<2x16x16xf32>
    %207 = vector.extract_strided_slice %4 {offsets = [0, 11], sizes = [2, 16], strides = [1, 1]} : vector<2x46xf32> to vector<2x16xf32>
    %208 = vector.extract_strided_slice %6 {offsets = [0, 11], sizes = [2, 16], strides = [1, 1]} : vector<2x46xf32> to vector<2x16xf32>
    %209 = vector.shape_cast %207 : vector<2x16xf32> to vector<2x16x1xf32>
    %210 = vector.extract_strided_slice %7 {offsets = [22, 0], sizes = [1, 16], strides = [1, 1]} : vector<62x16xf32> to vector<1x16xf32>
    %211 = vector.shape_cast %210 : vector<1x16xf32> to vector<16xf32>
    %212 = vector.shape_cast %211 : vector<16xf32> to vector<1x1x16xf32>
    %213 = vector.broadcast %209 : vector<2x16x1xf32> to vector<2x16x16xf32>
    %214 = vector.broadcast %212 : vector<1x1x16xf32> to vector<2x16x16xf32>
    %215 = arith.mulf %213, %214 : vector<2x16x16xf32>
    %216 = arith.addf %206, %215 : vector<2x16x16xf32>
    %217 = vector.shape_cast %208 : vector<2x16xf32> to vector<2x16x1xf32>
    %218 = vector.extract_strided_slice %7 {offsets = [23, 0], sizes = [1, 16], strides = [1, 1]} : vector<62x16xf32> to vector<1x16xf32>
    %219 = vector.shape_cast %218 : vector<1x16xf32> to vector<16xf32>
    %220 = vector.shape_cast %219 : vector<16xf32> to vector<1x1x16xf32>
    %221 = vector.broadcast %217 : vector<2x16x1xf32> to vector<2x16x16xf32>
    %222 = vector.broadcast %220 : vector<1x1x16xf32> to vector<2x16x16xf32>
    %223 = arith.mulf %221, %222 : vector<2x16x16xf32>
    %224 = arith.addf %216, %223 : vector<2x16x16xf32>
    %225 = vector.extract_strided_slice %4 {offsets = [0, 12], sizes = [2, 16], strides = [1, 1]} : vector<2x46xf32> to vector<2x16xf32>
    %226 = vector.extract_strided_slice %6 {offsets = [0, 12], sizes = [2, 16], strides = [1, 1]} : vector<2x46xf32> to vector<2x16xf32>
    %227 = vector.shape_cast %225 : vector<2x16xf32> to vector<2x16x1xf32>
    %228 = vector.extract_strided_slice %7 {offsets = [24, 0], sizes = [1, 16], strides = [1, 1]} : vector<62x16xf32> to vector<1x16xf32>
    %229 = vector.shape_cast %228 : vector<1x16xf32> to vector<16xf32>
    %230 = vector.shape_cast %229 : vector<16xf32> to vector<1x1x16xf32>
    %231 = vector.broadcast %227 : vector<2x16x1xf32> to vector<2x16x16xf32>
    %232 = vector.broadcast %230 : vector<1x1x16xf32> to vector<2x16x16xf32>
    %233 = arith.mulf %231, %232 : vector<2x16x16xf32>
    %234 = arith.addf %224, %233 : vector<2x16x16xf32>
    %235 = vector.shape_cast %226 : vector<2x16xf32> to vector<2x16x1xf32>
    %236 = vector.extract_strided_slice %7 {offsets = [25, 0], sizes = [1, 16], strides = [1, 1]} : vector<62x16xf32> to vector<1x16xf32>
    %237 = vector.shape_cast %236 : vector<1x16xf32> to vector<16xf32>
    %238 = vector.shape_cast %237 : vector<16xf32> to vector<1x1x16xf32>
    %239 = vector.broadcast %235 : vector<2x16x1xf32> to vector<2x16x16xf32>
    %240 = vector.broadcast %238 : vector<1x1x16xf32> to vector<2x16x16xf32>
    %241 = arith.mulf %239, %240 : vector<2x16x16xf32>
    %242 = arith.addf %234, %241 : vector<2x16x16xf32>
    %243 = vector.extract_strided_slice %4 {offsets = [0, 13], sizes = [2, 16], strides = [1, 1]} : vector<2x46xf32> to vector<2x16xf32>
    %244 = vector.extract_strided_slice %6 {offsets = [0, 13], sizes = [2, 16], strides = [1, 1]} : vector<2x46xf32> to vector<2x16xf32>
    %245 = vector.shape_cast %243 : vector<2x16xf32> to vector<2x16x1xf32>
    %246 = vector.extract_strided_slice %7 {offsets = [26, 0], sizes = [1, 16], strides = [1, 1]} : vector<62x16xf32> to vector<1x16xf32>
    %247 = vector.shape_cast %246 : vector<1x16xf32> to vector<16xf32>
    %248 = vector.shape_cast %247 : vector<16xf32> to vector<1x1x16xf32>
    %249 = vector.broadcast %245 : vector<2x16x1xf32> to vector<2x16x16xf32>
    %250 = vector.broadcast %248 : vector<1x1x16xf32> to vector<2x16x16xf32>
    %251 = arith.mulf %249, %250 : vector<2x16x16xf32>
    %252 = arith.addf %242, %251 : vector<2x16x16xf32>
    %253 = vector.shape_cast %244 : vector<2x16xf32> to vector<2x16x1xf32>
    %254 = vector.extract_strided_slice %7 {offsets = [27, 0], sizes = [1, 16], strides = [1, 1]} : vector<62x16xf32> to vector<1x16xf32>
    %255 = vector.shape_cast %254 : vector<1x16xf32> to vector<16xf32>
    %256 = vector.shape_cast %255 : vector<16xf32> to vector<1x1x16xf32>
    %257 = vector.broadcast %253 : vector<2x16x1xf32> to vector<2x16x16xf32>
    %258 = vector.broadcast %256 : vector<1x1x16xf32> to vector<2x16x16xf32>
    %259 = arith.mulf %257, %258 : vector<2x16x16xf32>
    %260 = arith.addf %252, %259 : vector<2x16x16xf32>
    %261 = vector.extract_strided_slice %4 {offsets = [0, 14], sizes = [2, 16], strides = [1, 1]} : vector<2x46xf32> to vector<2x16xf32>
    %262 = vector.extract_strided_slice %6 {offsets = [0, 14], sizes = [2, 16], strides = [1, 1]} : vector<2x46xf32> to vector<2x16xf32>
    %263 = vector.shape_cast %261 : vector<2x16xf32> to vector<2x16x1xf32>
    %264 = vector.extract_strided_slice %7 {offsets = [28, 0], sizes = [1, 16], strides = [1, 1]} : vector<62x16xf32> to vector<1x16xf32>
    %265 = vector.shape_cast %264 : vector<1x16xf32> to vector<16xf32>
    %266 = vector.shape_cast %265 : vector<16xf32> to vector<1x1x16xf32>
    %267 = vector.broadcast %263 : vector<2x16x1xf32> to vector<2x16x16xf32>
    %268 = vector.broadcast %266 : vector<1x1x16xf32> to vector<2x16x16xf32>
    %269 = arith.mulf %267, %268 : vector<2x16x16xf32>
    %270 = arith.addf %260, %269 : vector<2x16x16xf32>
    %271 = vector.shape_cast %262 : vector<2x16xf32> to vector<2x16x1xf32>
    %272 = vector.extract_strided_slice %7 {offsets = [29, 0], sizes = [1, 16], strides = [1, 1]} : vector<62x16xf32> to vector<1x16xf32>
    %273 = vector.shape_cast %272 : vector<1x16xf32> to vector<16xf32>
    %274 = vector.shape_cast %273 : vector<16xf32> to vector<1x1x16xf32>
    %275 = vector.broadcast %271 : vector<2x16x1xf32> to vector<2x16x16xf32>
    %276 = vector.broadcast %274 : vector<1x1x16xf32> to vector<2x16x16xf32>
    %277 = arith.mulf %275, %276 : vector<2x16x16xf32>
    %278 = arith.addf %270, %277 : vector<2x16x16xf32>
    %279 = vector.extract_strided_slice %4 {offsets = [0, 15], sizes = [2, 16], strides = [1, 1]} : vector<2x46xf32> to vector<2x16xf32>
    %280 = vector.extract_strided_slice %6 {offsets = [0, 15], sizes = [2, 16], strides = [1, 1]} : vector<2x46xf32> to vector<2x16xf32>
    %281 = vector.shape_cast %279 : vector<2x16xf32> to vector<2x16x1xf32>
    %282 = vector.extract_strided_slice %7 {offsets = [30, 0], sizes = [1, 16], strides = [1, 1]} : vector<62x16xf32> to vector<1x16xf32>
    %283 = vector.shape_cast %282 : vector<1x16xf32> to vector<16xf32>
    %284 = vector.shape_cast %283 : vector<16xf32> to vector<1x1x16xf32>
    %285 = vector.broadcast %281 : vector<2x16x1xf32> to vector<2x16x16xf32>
    %286 = vector.broadcast %284 : vector<1x1x16xf32> to vector<2x16x16xf32>
    %287 = arith.mulf %285, %286 : vector<2x16x16xf32>
    %288 = arith.addf %278, %287 : vector<2x16x16xf32>
    %289 = vector.shape_cast %280 : vector<2x16xf32> to vector<2x16x1xf32>
    %290 = vector.extract_strided_slice %7 {offsets = [31, 0], sizes = [1, 16], strides = [1, 1]} : vector<62x16xf32> to vector<1x16xf32>
    %291 = vector.shape_cast %290 : vector<1x16xf32> to vector<16xf32>
    %292 = vector.shape_cast %291 : vector<16xf32> to vector<1x1x16xf32>
    %293 = vector.broadcast %289 : vector<2x16x1xf32> to vector<2x16x16xf32>
    %294 = vector.broadcast %292 : vector<1x1x16xf32> to vector<2x16x16xf32>
    %295 = arith.mulf %293, %294 : vector<2x16x16xf32>
    %296 = arith.addf %288, %295 : vector<2x16x16xf32>
    %297 = vector.extract_strided_slice %4 {offsets = [0, 16], sizes = [2, 16], strides = [1, 1]} : vector<2x46xf32> to vector<2x16xf32>
    %298 = vector.extract_strided_slice %6 {offsets = [0, 16], sizes = [2, 16], strides = [1, 1]} : vector<2x46xf32> to vector<2x16xf32>
    %299 = vector.shape_cast %297 : vector<2x16xf32> to vector<2x16x1xf32>
    %300 = vector.extract_strided_slice %7 {offsets = [32, 0], sizes = [1, 16], strides = [1, 1]} : vector<62x16xf32> to vector<1x16xf32>
    %301 = vector.shape_cast %300 : vector<1x16xf32> to vector<16xf32>
    %302 = vector.shape_cast %301 : vector<16xf32> to vector<1x1x16xf32>
    %303 = vector.broadcast %299 : vector<2x16x1xf32> to vector<2x16x16xf32>
    %304 = vector.broadcast %302 : vector<1x1x16xf32> to vector<2x16x16xf32>
    %305 = arith.mulf %303, %304 : vector<2x16x16xf32>
    %306 = arith.addf %296, %305 : vector<2x16x16xf32>
    %307 = vector.shape_cast %298 : vector<2x16xf32> to vector<2x16x1xf32>
    %308 = vector.extract_strided_slice %7 {offsets = [33, 0], sizes = [1, 16], strides = [1, 1]} : vector<62x16xf32> to vector<1x16xf32>
    %309 = vector.shape_cast %308 : vector<1x16xf32> to vector<16xf32>
    %310 = vector.shape_cast %309 : vector<16xf32> to vector<1x1x16xf32>
    %311 = vector.broadcast %307 : vector<2x16x1xf32> to vector<2x16x16xf32>
    %312 = vector.broadcast %310 : vector<1x1x16xf32> to vector<2x16x16xf32>
    %313 = arith.mulf %311, %312 : vector<2x16x16xf32>
    %314 = arith.addf %306, %313 : vector<2x16x16xf32>
    %315 = vector.extract_strided_slice %4 {offsets = [0, 17], sizes = [2, 16], strides = [1, 1]} : vector<2x46xf32> to vector<2x16xf32>
    %316 = vector.extract_strided_slice %6 {offsets = [0, 17], sizes = [2, 16], strides = [1, 1]} : vector<2x46xf32> to vector<2x16xf32>
    %317 = vector.shape_cast %315 : vector<2x16xf32> to vector<2x16x1xf32>
    %318 = vector.extract_strided_slice %7 {offsets = [34, 0], sizes = [1, 16], strides = [1, 1]} : vector<62x16xf32> to vector<1x16xf32>
    %319 = vector.shape_cast %318 : vector<1x16xf32> to vector<16xf32>
    %320 = vector.shape_cast %319 : vector<16xf32> to vector<1x1x16xf32>
    %321 = vector.broadcast %317 : vector<2x16x1xf32> to vector<2x16x16xf32>
    %322 = vector.broadcast %320 : vector<1x1x16xf32> to vector<2x16x16xf32>
    %323 = arith.mulf %321, %322 : vector<2x16x16xf32>
    %324 = arith.addf %314, %323 : vector<2x16x16xf32>
    %325 = vector.shape_cast %316 : vector<2x16xf32> to vector<2x16x1xf32>
    %326 = vector.extract_strided_slice %7 {offsets = [35, 0], sizes = [1, 16], strides = [1, 1]} : vector<62x16xf32> to vector<1x16xf32>
    %327 = vector.shape_cast %326 : vector<1x16xf32> to vector<16xf32>
    %328 = vector.shape_cast %327 : vector<16xf32> to vector<1x1x16xf32>
    %329 = vector.broadcast %325 : vector<2x16x1xf32> to vector<2x16x16xf32>
    %330 = vector.broadcast %328 : vector<1x1x16xf32> to vector<2x16x16xf32>
    %331 = arith.mulf %329, %330 : vector<2x16x16xf32>
    %332 = arith.addf %324, %331 : vector<2x16x16xf32>
    %333 = vector.extract_strided_slice %4 {offsets = [0, 18], sizes = [2, 16], strides = [1, 1]} : vector<2x46xf32> to vector<2x16xf32>
    %334 = vector.extract_strided_slice %6 {offsets = [0, 18], sizes = [2, 16], strides = [1, 1]} : vector<2x46xf32> to vector<2x16xf32>
    %335 = vector.shape_cast %333 : vector<2x16xf32> to vector<2x16x1xf32>
    %336 = vector.extract_strided_slice %7 {offsets = [36, 0], sizes = [1, 16], strides = [1, 1]} : vector<62x16xf32> to vector<1x16xf32>
    %337 = vector.shape_cast %336 : vector<1x16xf32> to vector<16xf32>
    %338 = vector.shape_cast %337 : vector<16xf32> to vector<1x1x16xf32>
    %339 = vector.broadcast %335 : vector<2x16x1xf32> to vector<2x16x16xf32>
    %340 = vector.broadcast %338 : vector<1x1x16xf32> to vector<2x16x16xf32>
    %341 = arith.mulf %339, %340 : vector<2x16x16xf32>
    %342 = arith.addf %332, %341 : vector<2x16x16xf32>
    %343 = vector.shape_cast %334 : vector<2x16xf32> to vector<2x16x1xf32>
    %344 = vector.extract_strided_slice %7 {offsets = [37, 0], sizes = [1, 16], strides = [1, 1]} : vector<62x16xf32> to vector<1x16xf32>
    %345 = vector.shape_cast %344 : vector<1x16xf32> to vector<16xf32>
    %346 = vector.shape_cast %345 : vector<16xf32> to vector<1x1x16xf32>
    %347 = vector.broadcast %343 : vector<2x16x1xf32> to vector<2x16x16xf32>
    %348 = vector.broadcast %346 : vector<1x1x16xf32> to vector<2x16x16xf32>
    %349 = arith.mulf %347, %348 : vector<2x16x16xf32>
    %350 = arith.addf %342, %349 : vector<2x16x16xf32>
    %351 = vector.extract_strided_slice %4 {offsets = [0, 19], sizes = [2, 16], strides = [1, 1]} : vector<2x46xf32> to vector<2x16xf32>
    %352 = vector.extract_strided_slice %6 {offsets = [0, 19], sizes = [2, 16], strides = [1, 1]} : vector<2x46xf32> to vector<2x16xf32>
    %353 = vector.shape_cast %351 : vector<2x16xf32> to vector<2x16x1xf32>
    %354 = vector.extract_strided_slice %7 {offsets = [38, 0], sizes = [1, 16], strides = [1, 1]} : vector<62x16xf32> to vector<1x16xf32>
    %355 = vector.shape_cast %354 : vector<1x16xf32> to vector<16xf32>
    %356 = vector.shape_cast %355 : vector<16xf32> to vector<1x1x16xf32>
    %357 = vector.broadcast %353 : vector<2x16x1xf32> to vector<2x16x16xf32>
    %358 = vector.broadcast %356 : vector<1x1x16xf32> to vector<2x16x16xf32>
    %359 = arith.mulf %357, %358 : vector<2x16x16xf32>
    %360 = arith.addf %350, %359 : vector<2x16x16xf32>
    %361 = vector.shape_cast %352 : vector<2x16xf32> to vector<2x16x1xf32>
    %362 = vector.extract_strided_slice %7 {offsets = [39, 0], sizes = [1, 16], strides = [1, 1]} : vector<62x16xf32> to vector<1x16xf32>
    %363 = vector.shape_cast %362 : vector<1x16xf32> to vector<16xf32>
    %364 = vector.shape_cast %363 : vector<16xf32> to vector<1x1x16xf32>
    %365 = vector.broadcast %361 : vector<2x16x1xf32> to vector<2x16x16xf32>
    %366 = vector.broadcast %364 : vector<1x1x16xf32> to vector<2x16x16xf32>
    %367 = arith.mulf %365, %366 : vector<2x16x16xf32>
    %368 = arith.addf %360, %367 : vector<2x16x16xf32>
    %369 = vector.extract_strided_slice %4 {offsets = [0, 20], sizes = [2, 16], strides = [1, 1]} : vector<2x46xf32> to vector<2x16xf32>
    %370 = vector.extract_strided_slice %6 {offsets = [0, 20], sizes = [2, 16], strides = [1, 1]} : vector<2x46xf32> to vector<2x16xf32>
    %371 = vector.shape_cast %369 : vector<2x16xf32> to vector<2x16x1xf32>
    %372 = vector.extract_strided_slice %7 {offsets = [40, 0], sizes = [1, 16], strides = [1, 1]} : vector<62x16xf32> to vector<1x16xf32>
    %373 = vector.shape_cast %372 : vector<1x16xf32> to vector<16xf32>
    %374 = vector.shape_cast %373 : vector<16xf32> to vector<1x1x16xf32>
    %375 = vector.broadcast %371 : vector<2x16x1xf32> to vector<2x16x16xf32>
    %376 = vector.broadcast %374 : vector<1x1x16xf32> to vector<2x16x16xf32>
    %377 = arith.mulf %375, %376 : vector<2x16x16xf32>
    %378 = arith.addf %368, %377 : vector<2x16x16xf32>
    %379 = vector.shape_cast %370 : vector<2x16xf32> to vector<2x16x1xf32>
    %380 = vector.extract_strided_slice %7 {offsets = [41, 0], sizes = [1, 16], strides = [1, 1]} : vector<62x16xf32> to vector<1x16xf32>
    %381 = vector.shape_cast %380 : vector<1x16xf32> to vector<16xf32>
    %382 = vector.shape_cast %381 : vector<16xf32> to vector<1x1x16xf32>
    %383 = vector.broadcast %379 : vector<2x16x1xf32> to vector<2x16x16xf32>
    %384 = vector.broadcast %382 : vector<1x1x16xf32> to vector<2x16x16xf32>
    %385 = arith.mulf %383, %384 : vector<2x16x16xf32>
    %386 = arith.addf %378, %385 : vector<2x16x16xf32>
    %387 = vector.extract_strided_slice %4 {offsets = [0, 21], sizes = [2, 16], strides = [1, 1]} : vector<2x46xf32> to vector<2x16xf32>
    %388 = vector.extract_strided_slice %6 {offsets = [0, 21], sizes = [2, 16], strides = [1, 1]} : vector<2x46xf32> to vector<2x16xf32>
    %389 = vector.shape_cast %387 : vector<2x16xf32> to vector<2x16x1xf32>
    %390 = vector.extract_strided_slice %7 {offsets = [42, 0], sizes = [1, 16], strides = [1, 1]} : vector<62x16xf32> to vector<1x16xf32>
    %391 = vector.shape_cast %390 : vector<1x16xf32> to vector<16xf32>
    %392 = vector.shape_cast %391 : vector<16xf32> to vector<1x1x16xf32>
    %393 = vector.broadcast %389 : vector<2x16x1xf32> to vector<2x16x16xf32>
    %394 = vector.broadcast %392 : vector<1x1x16xf32> to vector<2x16x16xf32>
    %395 = arith.mulf %393, %394 : vector<2x16x16xf32>
    %396 = arith.addf %386, %395 : vector<2x16x16xf32>
    %397 = vector.shape_cast %388 : vector<2x16xf32> to vector<2x16x1xf32>
    %398 = vector.extract_strided_slice %7 {offsets = [43, 0], sizes = [1, 16], strides = [1, 1]} : vector<62x16xf32> to vector<1x16xf32>
    %399 = vector.shape_cast %398 : vector<1x16xf32> to vector<16xf32>
    %400 = vector.shape_cast %399 : vector<16xf32> to vector<1x1x16xf32>
    %401 = vector.broadcast %397 : vector<2x16x1xf32> to vector<2x16x16xf32>
    %402 = vector.broadcast %400 : vector<1x1x16xf32> to vector<2x16x16xf32>
    %403 = arith.mulf %401, %402 : vector<2x16x16xf32>
    %404 = arith.addf %396, %403 : vector<2x16x16xf32>
    %405 = vector.extract_strided_slice %4 {offsets = [0, 22], sizes = [2, 16], strides = [1, 1]} : vector<2x46xf32> to vector<2x16xf32>
    %406 = vector.extract_strided_slice %6 {offsets = [0, 22], sizes = [2, 16], strides = [1, 1]} : vector<2x46xf32> to vector<2x16xf32>
    %407 = vector.shape_cast %405 : vector<2x16xf32> to vector<2x16x1xf32>
    %408 = vector.extract_strided_slice %7 {offsets = [44, 0], sizes = [1, 16], strides = [1, 1]} : vector<62x16xf32> to vector<1x16xf32>
    %409 = vector.shape_cast %408 : vector<1x16xf32> to vector<16xf32>
    %410 = vector.shape_cast %409 : vector<16xf32> to vector<1x1x16xf32>
    %411 = vector.broadcast %407 : vector<2x16x1xf32> to vector<2x16x16xf32>
    %412 = vector.broadcast %410 : vector<1x1x16xf32> to vector<2x16x16xf32>
    %413 = arith.mulf %411, %412 : vector<2x16x16xf32>
    %414 = arith.addf %404, %413 : vector<2x16x16xf32>
    %415 = vector.shape_cast %406 : vector<2x16xf32> to vector<2x16x1xf32>
    %416 = vector.extract_strided_slice %7 {offsets = [45, 0], sizes = [1, 16], strides = [1, 1]} : vector<62x16xf32> to vector<1x16xf32>
    %417 = vector.shape_cast %416 : vector<1x16xf32> to vector<16xf32>
    %418 = vector.shape_cast %417 : vector<16xf32> to vector<1x1x16xf32>
    %419 = vector.broadcast %415 : vector<2x16x1xf32> to vector<2x16x16xf32>
    %420 = vector.broadcast %418 : vector<1x1x16xf32> to vector<2x16x16xf32>
    %421 = arith.mulf %419, %420 : vector<2x16x16xf32>
    %422 = arith.addf %414, %421 : vector<2x16x16xf32>
    %423 = vector.extract_strided_slice %4 {offsets = [0, 23], sizes = [2, 16], strides = [1, 1]} : vector<2x46xf32> to vector<2x16xf32>
    %424 = vector.extract_strided_slice %6 {offsets = [0, 23], sizes = [2, 16], strides = [1, 1]} : vector<2x46xf32> to vector<2x16xf32>
    %425 = vector.shape_cast %423 : vector<2x16xf32> to vector<2x16x1xf32>
    %426 = vector.extract_strided_slice %7 {offsets = [46, 0], sizes = [1, 16], strides = [1, 1]} : vector<62x16xf32> to vector<1x16xf32>
    %427 = vector.shape_cast %426 : vector<1x16xf32> to vector<16xf32>
    %428 = vector.shape_cast %427 : vector<16xf32> to vector<1x1x16xf32>
    %429 = vector.broadcast %425 : vector<2x16x1xf32> to vector<2x16x16xf32>
    %430 = vector.broadcast %428 : vector<1x1x16xf32> to vector<2x16x16xf32>
    %431 = arith.mulf %429, %430 : vector<2x16x16xf32>
    %432 = arith.addf %422, %431 : vector<2x16x16xf32>
    %433 = vector.shape_cast %424 : vector<2x16xf32> to vector<2x16x1xf32>
    %434 = vector.extract_strided_slice %7 {offsets = [47, 0], sizes = [1, 16], strides = [1, 1]} : vector<62x16xf32> to vector<1x16xf32>
    %435 = vector.shape_cast %434 : vector<1x16xf32> to vector<16xf32>
    %436 = vector.shape_cast %435 : vector<16xf32> to vector<1x1x16xf32>
    %437 = vector.broadcast %433 : vector<2x16x1xf32> to vector<2x16x16xf32>
    %438 = vector.broadcast %436 : vector<1x1x16xf32> to vector<2x16x16xf32>
    %439 = arith.mulf %437, %438 : vector<2x16x16xf32>
    %440 = arith.addf %432, %439 : vector<2x16x16xf32>
    %441 = vector.extract_strided_slice %4 {offsets = [0, 24], sizes = [2, 16], strides = [1, 1]} : vector<2x46xf32> to vector<2x16xf32>
    %442 = vector.extract_strided_slice %6 {offsets = [0, 24], sizes = [2, 16], strides = [1, 1]} : vector<2x46xf32> to vector<2x16xf32>
    %443 = vector.shape_cast %441 : vector<2x16xf32> to vector<2x16x1xf32>
    %444 = vector.extract_strided_slice %7 {offsets = [48, 0], sizes = [1, 16], strides = [1, 1]} : vector<62x16xf32> to vector<1x16xf32>
    %445 = vector.shape_cast %444 : vector<1x16xf32> to vector<16xf32>
    %446 = vector.shape_cast %445 : vector<16xf32> to vector<1x1x16xf32>
    %447 = vector.broadcast %443 : vector<2x16x1xf32> to vector<2x16x16xf32>
    %448 = vector.broadcast %446 : vector<1x1x16xf32> to vector<2x16x16xf32>
    %449 = arith.mulf %447, %448 : vector<2x16x16xf32>
    %450 = arith.addf %440, %449 : vector<2x16x16xf32>
    %451 = vector.shape_cast %442 : vector<2x16xf32> to vector<2x16x1xf32>
    %452 = vector.extract_strided_slice %7 {offsets = [49, 0], sizes = [1, 16], strides = [1, 1]} : vector<62x16xf32> to vector<1x16xf32>
    %453 = vector.shape_cast %452 : vector<1x16xf32> to vector<16xf32>
    %454 = vector.shape_cast %453 : vector<16xf32> to vector<1x1x16xf32>
    %455 = vector.broadcast %451 : vector<2x16x1xf32> to vector<2x16x16xf32>
    %456 = vector.broadcast %454 : vector<1x1x16xf32> to vector<2x16x16xf32>
    %457 = arith.mulf %455, %456 : vector<2x16x16xf32>
    %458 = arith.addf %450, %457 : vector<2x16x16xf32>
    %459 = vector.extract_strided_slice %4 {offsets = [0, 25], sizes = [2, 16], strides = [1, 1]} : vector<2x46xf32> to vector<2x16xf32>
    %460 = vector.extract_strided_slice %6 {offsets = [0, 25], sizes = [2, 16], strides = [1, 1]} : vector<2x46xf32> to vector<2x16xf32>
    %461 = vector.shape_cast %459 : vector<2x16xf32> to vector<2x16x1xf32>
    %462 = vector.extract_strided_slice %7 {offsets = [50, 0], sizes = [1, 16], strides = [1, 1]} : vector<62x16xf32> to vector<1x16xf32>
    %463 = vector.shape_cast %462 : vector<1x16xf32> to vector<16xf32>
    %464 = vector.shape_cast %463 : vector<16xf32> to vector<1x1x16xf32>
    %465 = vector.broadcast %461 : vector<2x16x1xf32> to vector<2x16x16xf32>
    %466 = vector.broadcast %464 : vector<1x1x16xf32> to vector<2x16x16xf32>
    %467 = arith.mulf %465, %466 : vector<2x16x16xf32>
    %468 = arith.addf %458, %467 : vector<2x16x16xf32>
    %469 = vector.shape_cast %460 : vector<2x16xf32> to vector<2x16x1xf32>
    %470 = vector.extract_strided_slice %7 {offsets = [51, 0], sizes = [1, 16], strides = [1, 1]} : vector<62x16xf32> to vector<1x16xf32>
    %471 = vector.shape_cast %470 : vector<1x16xf32> to vector<16xf32>
    %472 = vector.shape_cast %471 : vector<16xf32> to vector<1x1x16xf32>
    %473 = vector.broadcast %469 : vector<2x16x1xf32> to vector<2x16x16xf32>
    %474 = vector.broadcast %472 : vector<1x1x16xf32> to vector<2x16x16xf32>
    %475 = arith.mulf %473, %474 : vector<2x16x16xf32>
    %476 = arith.addf %468, %475 : vector<2x16x16xf32>
    %477 = vector.extract_strided_slice %4 {offsets = [0, 26], sizes = [2, 16], strides = [1, 1]} : vector<2x46xf32> to vector<2x16xf32>
    %478 = vector.extract_strided_slice %6 {offsets = [0, 26], sizes = [2, 16], strides = [1, 1]} : vector<2x46xf32> to vector<2x16xf32>
    %479 = vector.shape_cast %477 : vector<2x16xf32> to vector<2x16x1xf32>
    %480 = vector.extract_strided_slice %7 {offsets = [52, 0], sizes = [1, 16], strides = [1, 1]} : vector<62x16xf32> to vector<1x16xf32>
    %481 = vector.shape_cast %480 : vector<1x16xf32> to vector<16xf32>
    %482 = vector.shape_cast %481 : vector<16xf32> to vector<1x1x16xf32>
    %483 = vector.broadcast %479 : vector<2x16x1xf32> to vector<2x16x16xf32>
    %484 = vector.broadcast %482 : vector<1x1x16xf32> to vector<2x16x16xf32>
    %485 = arith.mulf %483, %484 : vector<2x16x16xf32>
    %486 = arith.addf %476, %485 : vector<2x16x16xf32>
    %487 = vector.shape_cast %478 : vector<2x16xf32> to vector<2x16x1xf32>
    %488 = vector.extract_strided_slice %7 {offsets = [53, 0], sizes = [1, 16], strides = [1, 1]} : vector<62x16xf32> to vector<1x16xf32>
    %489 = vector.shape_cast %488 : vector<1x16xf32> to vector<16xf32>
    %490 = vector.shape_cast %489 : vector<16xf32> to vector<1x1x16xf32>
    %491 = vector.broadcast %487 : vector<2x16x1xf32> to vector<2x16x16xf32>
    %492 = vector.broadcast %490 : vector<1x1x16xf32> to vector<2x16x16xf32>
    %493 = arith.mulf %491, %492 : vector<2x16x16xf32>
    %494 = arith.addf %486, %493 : vector<2x16x16xf32>
    %495 = vector.extract_strided_slice %4 {offsets = [0, 27], sizes = [2, 16], strides = [1, 1]} : vector<2x46xf32> to vector<2x16xf32>
    %496 = vector.extract_strided_slice %6 {offsets = [0, 27], sizes = [2, 16], strides = [1, 1]} : vector<2x46xf32> to vector<2x16xf32>
    %497 = vector.shape_cast %495 : vector<2x16xf32> to vector<2x16x1xf32>
    %498 = vector.extract_strided_slice %7 {offsets = [54, 0], sizes = [1, 16], strides = [1, 1]} : vector<62x16xf32> to vector<1x16xf32>
    %499 = vector.shape_cast %498 : vector<1x16xf32> to vector<16xf32>
    %500 = vector.shape_cast %499 : vector<16xf32> to vector<1x1x16xf32>
    %501 = vector.broadcast %497 : vector<2x16x1xf32> to vector<2x16x16xf32>
    %502 = vector.broadcast %500 : vector<1x1x16xf32> to vector<2x16x16xf32>
    %503 = arith.mulf %501, %502 : vector<2x16x16xf32>
    %504 = arith.addf %494, %503 : vector<2x16x16xf32>
    %505 = vector.shape_cast %496 : vector<2x16xf32> to vector<2x16x1xf32>
    %506 = vector.extract_strided_slice %7 {offsets = [55, 0], sizes = [1, 16], strides = [1, 1]} : vector<62x16xf32> to vector<1x16xf32>
    %507 = vector.shape_cast %506 : vector<1x16xf32> to vector<16xf32>
    %508 = vector.shape_cast %507 : vector<16xf32> to vector<1x1x16xf32>
    %509 = vector.broadcast %505 : vector<2x16x1xf32> to vector<2x16x16xf32>
    %510 = vector.broadcast %508 : vector<1x1x16xf32> to vector<2x16x16xf32>
    %511 = arith.mulf %509, %510 : vector<2x16x16xf32>
    %512 = arith.addf %504, %511 : vector<2x16x16xf32>
    %513 = vector.extract_strided_slice %4 {offsets = [0, 28], sizes = [2, 16], strides = [1, 1]} : vector<2x46xf32> to vector<2x16xf32>
    %514 = vector.extract_strided_slice %6 {offsets = [0, 28], sizes = [2, 16], strides = [1, 1]} : vector<2x46xf32> to vector<2x16xf32>
    %515 = vector.shape_cast %513 : vector<2x16xf32> to vector<2x16x1xf32>
    %516 = vector.extract_strided_slice %7 {offsets = [56, 0], sizes = [1, 16], strides = [1, 1]} : vector<62x16xf32> to vector<1x16xf32>
    %517 = vector.shape_cast %516 : vector<1x16xf32> to vector<16xf32>
    %518 = vector.shape_cast %517 : vector<16xf32> to vector<1x1x16xf32>
    %519 = vector.broadcast %515 : vector<2x16x1xf32> to vector<2x16x16xf32>
    %520 = vector.broadcast %518 : vector<1x1x16xf32> to vector<2x16x16xf32>
    %521 = arith.mulf %519, %520 : vector<2x16x16xf32>
    %522 = arith.addf %512, %521 : vector<2x16x16xf32>
    %523 = vector.shape_cast %514 : vector<2x16xf32> to vector<2x16x1xf32>
    %524 = vector.extract_strided_slice %7 {offsets = [57, 0], sizes = [1, 16], strides = [1, 1]} : vector<62x16xf32> to vector<1x16xf32>
    %525 = vector.shape_cast %524 : vector<1x16xf32> to vector<16xf32>
    %526 = vector.shape_cast %525 : vector<16xf32> to vector<1x1x16xf32>
    %527 = vector.broadcast %523 : vector<2x16x1xf32> to vector<2x16x16xf32>
    %528 = vector.broadcast %526 : vector<1x1x16xf32> to vector<2x16x16xf32>
    %529 = arith.mulf %527, %528 : vector<2x16x16xf32>
    %530 = arith.addf %522, %529 : vector<2x16x16xf32>
    %531 = vector.extract_strided_slice %4 {offsets = [0, 29], sizes = [2, 16], strides = [1, 1]} : vector<2x46xf32> to vector<2x16xf32>
    %532 = vector.extract_strided_slice %6 {offsets = [0, 29], sizes = [2, 16], strides = [1, 1]} : vector<2x46xf32> to vector<2x16xf32>
    %533 = vector.shape_cast %531 : vector<2x16xf32> to vector<2x16x1xf32>
    %534 = vector.extract_strided_slice %7 {offsets = [58, 0], sizes = [1, 16], strides = [1, 1]} : vector<62x16xf32> to vector<1x16xf32>
    %535 = vector.shape_cast %534 : vector<1x16xf32> to vector<16xf32>
    %536 = vector.shape_cast %535 : vector<16xf32> to vector<1x1x16xf32>
    %537 = vector.broadcast %533 : vector<2x16x1xf32> to vector<2x16x16xf32>
    %538 = vector.broadcast %536 : vector<1x1x16xf32> to vector<2x16x16xf32>
    %539 = arith.mulf %537, %538 : vector<2x16x16xf32>
    %540 = arith.addf %530, %539 : vector<2x16x16xf32>
    %541 = vector.shape_cast %532 : vector<2x16xf32> to vector<2x16x1xf32>
    %542 = vector.extract_strided_slice %7 {offsets = [59, 0], sizes = [1, 16], strides = [1, 1]} : vector<62x16xf32> to vector<1x16xf32>
    %543 = vector.shape_cast %542 : vector<1x16xf32> to vector<16xf32>
    %544 = vector.shape_cast %543 : vector<16xf32> to vector<1x1x16xf32>
    %545 = vector.broadcast %541 : vector<2x16x1xf32> to vector<2x16x16xf32>
    %546 = vector.broadcast %544 : vector<1x1x16xf32> to vector<2x16x16xf32>
    %547 = arith.mulf %545, %546 : vector<2x16x16xf32>
    %548 = arith.addf %540, %547 : vector<2x16x16xf32>
    %549 = vector.extract_strided_slice %4 {offsets = [0, 30], sizes = [2, 16], strides = [1, 1]} : vector<2x46xf32> to vector<2x16xf32>
    %550 = vector.extract_strided_slice %6 {offsets = [0, 30], sizes = [2, 16], strides = [1, 1]} : vector<2x46xf32> to vector<2x16xf32>
    %551 = vector.shape_cast %549 : vector<2x16xf32> to vector<2x16x1xf32>
    %552 = vector.extract_strided_slice %7 {offsets = [60, 0], sizes = [1, 16], strides = [1, 1]} : vector<62x16xf32> to vector<1x16xf32>
    %553 = vector.shape_cast %552 : vector<1x16xf32> to vector<16xf32>
    %554 = vector.shape_cast %553 : vector<16xf32> to vector<1x1x16xf32>
    %555 = vector.broadcast %551 : vector<2x16x1xf32> to vector<2x16x16xf32>
    %556 = vector.broadcast %554 : vector<1x1x16xf32> to vector<2x16x16xf32>
    %557 = arith.mulf %555, %556 : vector<2x16x16xf32>
    %558 = arith.addf %548, %557 : vector<2x16x16xf32>
    %559 = vector.shape_cast %550 : vector<2x16xf32> to vector<2x16x1xf32>
    %560 = vector.extract_strided_slice %7 {offsets = [61, 0], sizes = [1, 16], strides = [1, 1]} : vector<62x16xf32> to vector<1x16xf32>
    %561 = vector.shape_cast %560 : vector<1x16xf32> to vector<16xf32>
    %562 = vector.shape_cast %561 : vector<16xf32> to vector<1x1x16xf32>
    %563 = vector.broadcast %559 : vector<2x16x1xf32> to vector<2x16x16xf32>
    %564 = vector.broadcast %562 : vector<1x1x16xf32> to vector<2x16x16xf32>
    %565 = arith.mulf %563, %564 : vector<2x16x16xf32>
    %566 = arith.addf %558, %565 : vector<2x16x16xf32>
    %c0_8 = arith.constant 0 : index
    %c0_9 = arith.constant 0 : index
    %567 = vector.load %arg35[%c0_8, %c0_9] : memref<2x16xf32, #tpu.memory_space<vmem>>, vector<2x16xf32>
    %568 = vector.shape_cast %567 : vector<2x16xf32> to vector<2x1x16xf32>
    %569 = vector.broadcast %568 : vector<2x1x16xf32> to vector<2x16x16xf32>
    %570 = arith.addf %569, %566 : vector<2x16x16xf32>
    %c0_10 = arith.constant 0 : index
    %c0_11 = arith.constant 0 : index
    %c0_12 = arith.constant 0 : index
    %571 = vector.load %arg9[%c0_10, %c0_11, %c0_12] : memref<2x16x16xbf16, #tpu.memory_space<vmem>>, vector<2x16x16xbf16>
    %572 = arith.extf %571 : vector<2x16x16xbf16> to vector<2x16x16xf32>
    %573 = arith.addf %570, %572 : vector<2x16x16xf32>
    %574 = math.tanh %573 : vector<2x16x16xf32>
    %c0_13 = arith.constant 0 : index
    %c0_14 = arith.constant 0 : index
    %575 = vector.load %arg16[%c0_13, %c0_14] : memref<1x16xf32, #tpu.memory_space<vmem>>, vector<1x16xf32>
    %576 = vector.shape_cast %575 : vector<1x16xf32> to vector<1x1x16xf32>
    %577 = vector.broadcast %576 : vector<1x1x16xf32> to vector<2x16x16xf32>
    %578 = arith.mulf %574, %577 : vector<2x16x16xf32>
    %cst_15 = arith.constant dense<0.000000e+00> : vector<2x16xf32>
    %579 = vector.multi_reduction <add>, %578, %cst_15 [2] : vector<2x16x16xf32> to vector<2x16xf32>
    %c0_16 = arith.constant 0 : index
    %c0_17 = arith.constant 0 : index
    %c0_18 = arith.constant 0 : index
    %580 = vector.load %arg8[%c0_16, %c0_17, %c0_18] : memref<1x2x16xf32, #tpu.memory_space<vmem>>, vector<1x2x16xf32>
    %581 = vector.shape_cast %580 : vector<1x2x16xf32> to vector<2x16xf32>
    %582 = arith.addf %579, %581 : vector<2x16xf32>
    %583 = arith.index_cast %arg0 : i32 to index
    %c0_19 = arith.constant 0 : index
    %c0_20 = arith.constant 0 : index
    %584 = vector.load %arg39[%583, %c0_19, %c0_20] : memref<2x2x16xf32, #tpu.memory_space<vmem>>, vector<1x2x16xf32>
    %585 = vector.shape_cast %584 : vector<1x2x16xf32> to vector<2x16xf32>
    %586 = vector.shape_cast %582 : vector<2x16xf32> to vector<1x2x16xf32>
    tpu.vector_store %arg39[%583, %c0_19, %c0_20], %586 {strides = array<i32>} : memref<2x2x16xf32, #tpu.memory_space<vmem>>, vector<1x2x16xf32>,
    %c0_21 = arith.constant 0 : index
    %c0_22 = arith.constant 0 : index
    %587 = vector.load %arg36[%c0_21, %c0_22] : memref<2x1xf32, #tpu.memory_space<vmem>>, vector<2x1xf32>
    %cst_23 = arith.constant dense<0xFF800000> : vector<2xf32>
    %588 = vector.multi_reduction <maximumf>, %582, %cst_23 [1] : vector<2x16xf32> to vector<2xf32>
    %589 = vector.shape_cast %588 : vector<2xf32> to vector<2x1xf32>
    %590 = arith.maximumf %587, %589 : vector<2x1xf32>
    %591 = arith.subf %587, %590 : vector<2x1xf32>
    %592 = math.exp %591 : vector<2x1xf32>
    %593 = vector.broadcast %590 : vector<2x1xf32> to vector<2x16xf32>
    %594 = arith.subf %582, %593 : vector<2x16xf32>
    %595 = math.exp %594 : vector<2x16xf32>
    %c0_24 = arith.constant 0 : index
    %c0_25 = arith.constant 0 : index
    %596 = vector.load %arg37[%c0_24, %c0_25] : memref<2x1xf32, #tpu.memory_space<vmem>>, vector<2x1xf32>
    %597 = arith.mulf %592, %596 : vector<2x1xf32>
    %cst_26 = arith.constant dense<0.000000e+00> : vector<2xf32>
    %598 = vector.multi_reduction <add>, %595, %cst_26 [1] : vector<2x16xf32> to vector<2xf32>
    %599 = vector.shape_cast %598 : vector<2xf32> to vector<2x1xf32>
    %600 = arith.addf %597, %599 : vector<2x1xf32>
    %c0_27 = arith.constant 0 : index
    %c0_28 = arith.constant 0 : index
    %601 = vector.load %arg37[%c0_27, %c0_28] : memref<2x1xf32, #tpu.memory_space<vmem>>, vector<2x1xf32>
    tpu.vector_store %arg37[%c0_27, %c0_28], %600 {strides = array<i32>} : memref<2x1xf32, #tpu.memory_space<vmem>>, vector<2x1xf32>,
    %c0_29 = arith.constant 0 : index
    %c0_30 = arith.constant 0 : index
    %602 = vector.load %arg38[%c0_29, %c0_30] : memref<2x32xf32, #tpu.memory_space<vmem>>, vector<2x32xf32>
    %603 = vector.broadcast %592 : vector<2x1xf32> to vector<2x32xf32>
    %604 = arith.mulf %603, %602 : vector<2x32xf32>
    %605 = vector.shape_cast %595 : vector<2x16xf32> to vector<2x16x1xf32>
    %c0_31 = arith.constant 0 : index
    %c0_32 = arith.constant 0 : index
    %c0_33 = arith.constant 0 : index
    %606 = vector.load %arg10[%c0_31, %c0_32, %c0_33] : memref<2x16x32xbf16, #tpu.memory_space<vmem>>, vector<2x16x32xbf16>
    %607 = arith.extf %606 : vector<2x16x32xbf16> to vector<2x16x32xf32>
    %608 = vector.broadcast %605 : vector<2x16x1xf32> to vector<2x16x32xf32>
    %609 = arith.mulf %608, %607 : vector<2x16x32xf32>
    %cst_34 = arith.constant dense<0.000000e+00> : vector<2x32xf32>
    %610 = vector.multi_reduction <add>, %609, %cst_34 [1] : vector<2x16x32xf32> to vector<2x32xf32>
    %611 = arith.addf %604, %610 : vector<2x32xf32>
    %c0_35 = arith.constant 0 : index
    %c0_36 = arith.constant 0 : index
    %612 = vector.load %arg38[%c0_35, %c0_36] : memref<2x32xf32, #tpu.memory_space<vmem>>, vector<2x32xf32>
    tpu.vector_store %arg38[%c0_35, %c0_36], %611 {strides = array<i32>} : memref<2x32xf32, #tpu.memory_space<vmem>>, vector<2x32xf32>,
    %c0_37 = arith.constant 0 : index
    %c0_38 = arith.constant 0 : index
    %613 = vector.load %arg36[%c0_37, %c0_38] : memref<2x1xf32, #tpu.memory_space<vmem>>, vector<2x1xf32>
    tpu.vector_store %arg36[%c0_37, %c0_38], %590 {strides = array<i32>} : memref<2x1xf32, #tpu.memory_space<vmem>>, vector<2x1xf32>,
    %c1_i32 = arith.constant 1 : i32
    %614 = arith.cmpi eq, %arg0, %c1_i32 : i32
    %615 = arith.extui %614 : i1 to i32
    %c0_i32_39 = arith.constant 0 : i32
    %616 = arith.cmpi ne, %615, %c0_i32_39 : i32
    scf.if %616 {
      %c0_40 = arith.constant 0 : index
      %c0_41 = arith.constant 0 : index
      %617 = vector.load %arg37[%c0_40, %c0_41] : memref<2x1xf32, #tpu.memory_space<vmem>>, vector<2x1xf32>
      %618 = tpu.reciprocal %617 {approx = true} : vector<2x1xf32> -> vector<2x1xf32>
      %c0_42 = arith.constant 0 : index
      %c0_43 = arith.constant 0 : index
      %619 = vector.load %arg38[%c0_42, %c0_43] : memref<2x32xf32, #tpu.memory_space<vmem>>, vector<2x32xf32>
      %620 = vector.broadcast %618 : vector<2x1xf32> to vector<2x32xf32>
      %621 = arith.mulf %619, %620 : vector<2x32xf32>
      %c0_44 = arith.constant 0 : index
      %c0_45 = arith.constant 0 : index
      %622 = vector.load %arg33[%c0_44, %c0_45] : memref<2x32xf32, #tpu.memory_space<vmem>>, vector<2x32xf32>
      %c0_46 = arith.constant 0 : index
      %c0_47 = arith.constant 0 : index
      %c0_48 = arith.constant 0 : index
      %623 = vector.load %arg39[%c0_46, %c0_47, %c0_48] : memref<2x2x16xf32, #tpu.memory_space<vmem>>, vector<2x2x16xf32>
      %c0_49 = arith.constant 0 : index
      %c0_50 = arith.constant 0 : index
      %624 = vector.load %arg36[%c0_49, %c0_50] : memref<2x1xf32, #tpu.memory_space<vmem>>, vector<2x1xf32>
      %625 = vector.shape_cast %624 : vector<2x1xf32> to vector<1x2x1xf32>
      %626 = vector.broadcast %625 : vector<1x2x1xf32> to vector<2x2x16xf32>
      %627 = arith.subf %623, %626 : vector<2x2x16xf32>
      %628 = math.exp %627 : vector<2x2x16xf32>
      %629 = vector.shape_cast %618 : vector<2x1xf32> to vector<1x2x1xf32>
      %630 = vector.broadcast %629 : vector<1x2x1xf32> to vector<2x2x16xf32>
      %631 = arith.mulf %628, %630 : vector<2x2x16xf32>
      %c0_51 = arith.constant 0 : index
      %c0_52 = arith.constant 0 : index
      %c0_53 = arith.constant 0 : index
      %632 = vector.load %arg29[%c0_51, %c0_52, %c0_53] : memref<2x2x16xf32, #tpu.memory_space<vmem>>, vector<2x2x16xf32>
      tpu.vector_store %arg29[%c0_51, %c0_52, %c0_53], %631 {strides = array<i32>} : memref<2x2x16xf32, #tpu.memory_space<vmem>>, vector<2x2x16xf32>,
      %c0_54 = arith.constant 0 : index
      %c0_55 = arith.constant 0 : index
      %c0_56 = arith.constant 0 : index
      %633 = vector.load %arg5[%c0_54, %c0_55, %c0_56] : memref<2x2x16xf32, #tpu.memory_space<vmem>>, vector<2x2x16xf32>
      %634 = arith.addf %633, %631 : vector<2x2x16xf32>
      %c0_57 = arith.constant 0 : index
      %c0_58 = arith.constant 0 : index
      %c0_59 = arith.constant 0 : index
      %635 = vector.load %arg30[%c0_57, %c0_58, %c0_59] : memref<2x2x16xf32, #tpu.memory_space<vmem>>, vector<2x2x16xf32>
      tpu.vector_store %arg30[%c0_57, %c0_58, %c0_59], %634 {strides = array<i32>} : memref<2x2x16xf32, #tpu.memory_space<vmem>>, vector<2x2x16xf32>,
      %636 = arith.truncf %622 : vector<2x32xf32> to vector<2x32xbf16>
      %c0_60 = arith.constant 0 : index
      %c0_61 = arith.constant 0 : index
      %637 = vector.load %arg17[%c0_60, %c0_61] : memref<32x128xbf16, #tpu.memory_space<vmem>>, vector<32x128xbf16>
      %cst_62 = arith.constant dense<0.000000e+00> : vector<2x128xf32>
      %638 = tpu.matmul %636, %637, %cst_62 {dimension_numbers = #tpu.dot_dimension_numbers<[1], [0], [0], [1], [0, 0, 1, 1], [], []>} : vector<2x32xbf16>, vector<32x128xbf16>, vector<2x128xf32> -> vector<2x128xf32>
      %639 = arith.truncf %621 : vector<2x32xf32> to vector<2x32xbf16>
      %c0_63 = arith.constant 0 : index
      %c0_64 = arith.constant 0 : index
      %640 = vector.load %arg18[%c0_63, %c0_64] : memref<32x128xbf16, #tpu.memory_space<vmem>>, vector<32x128xbf16>
      %cst_65 = arith.constant dense<0.000000e+00> : vector<2x128xf32>
      %641 = tpu.matmul %639, %640, %cst_65 {dimension_numbers = #tpu.dot_dimension_numbers<[1], [0], [0], [1], [0, 0, 1, 1], [], []>} : vector<2x32xbf16>, vector<32x128xbf16>, vector<2x128xf32> -> vector<2x128xf32>
      %642 = arith.addf %638, %641 : vector<2x128xf32>
      %c0_66 = arith.constant 0 : index
      %c0_67 = arith.constant 0 : index
      %643 = vector.load %arg3[%c0_66, %c0_67] : memref<2x32xf32, #tpu.memory_space<vmem>>, vector<2x32xf32>
      %644 = arith.truncf %643 : vector<2x32xf32> to vector<2x32xbf16>
      %c0_68 = arith.constant 0 : index
      %c0_69 = arith.constant 0 : index
      %645 = vector.load %arg20[%c0_68, %c0_69] : memref<32x128xbf16, #tpu.memory_space<vmem>>, vector<32x128xbf16>
      %cst_70 = arith.constant dense<0.000000e+00> : vector<2x128xf32>
      %646 = tpu.matmul %644, %645, %cst_70 {dimension_numbers = #tpu.dot_dimension_numbers<[1], [0], [0], [1], [0, 0, 1, 1], [], []>} : vector<2x32xbf16>, vector<32x128xbf16>, vector<2x128xf32> -> vector<2x128xf32>
      %647 = arith.addf %642, %646 : vector<2x128xf32>
      %c0_71 = arith.constant 0 : index
      %c0_72 = arith.constant 0 : index
      %648 = vector.load %arg21[%c0_71, %c0_72] : memref<1x128xf32, #tpu.memory_space<vmem>>, vector<1x128xf32>
      %649 = vector.broadcast %648 : vector<1x128xf32> to vector<2x128xf32>
      %650 = arith.addf %647, %649 : vector<2x128xf32>
      %c0_73 = arith.constant 0 : index
      %c0_74 = arith.constant 0 : index
      %651 = vector.load %arg11[%c0_73, %c0_74] : memref<2x4xf32, #tpu.memory_space<vmem>>, vector<2x4xf32>
      %652 = arith.truncf %651 : vector<2x4xf32> to vector<2x4xbf16>
      %c0_75 = arith.constant 0 : index
      %c0_76 = arith.constant 0 : index
      %653 = vector.load %arg19[%c0_75, %c0_76] : memref<4x128xbf16, #tpu.memory_space<vmem>>, vector<4x128xbf16>
      %cst_77 = arith.constant dense<0.000000e+00> : vector<2x128xf32>
      %654 = tpu.matmul %652, %653, %cst_77 {dimension_numbers = #tpu.dot_dimension_numbers<[1], [0], [0], [1], [0, 0, 1, 1], [], []>} : vector<2x4xbf16>, vector<4x128xbf16>, vector<2x128xf32> -> vector<2x128xf32>
      %655 = arith.addf %650, %654 : vector<2x128xf32>
      %c0_78 = arith.constant 0 : index
      %c0_79 = arith.constant 0 : index
      %656 = vector.load %arg4[%c0_78, %c0_79] : memref<2x32xf32, #tpu.memory_space<vmem>>, vector<2x32xf32>
      %657 = vector.extract_strided_slice %655 {offsets = [0, 0], sizes = [2, 32], strides = [1, 1]} : vector<2x128xf32> to vector<2x32xf32>
      %cst_80 = arith.constant 5.000000e-01 : f32
      %658 = vector.broadcast %cst_80 : f32 to vector<2x32xf32>
      %659 = arith.mulf %658, %657 : vector<2x32xf32>
      %660 = math.tanh %659 : vector<2x32xf32>
      %cst_81 = arith.constant 1.000000e+00 : f32
      %661 = vector.broadcast %cst_81 : f32 to vector<2x32xf32>
      %662 = arith.addf %660, %661 : vector<2x32xf32>
      %cst_82 = arith.constant 5.000000e-01 : f32
      %663 = vector.broadcast %cst_82 : f32 to vector<2x32xf32>
      %664 = arith.mulf %663, %662 : vector<2x32xf32>
      %665 = vector.extract_strided_slice %655 {offsets = [0, 32], sizes = [2, 32], strides = [1, 1]} : vector<2x128xf32> to vector<2x32xf32>
      %cst_83 = arith.constant 5.000000e-01 : f32
      %666 = vector.broadcast %cst_83 : f32 to vector<2x32xf32>
      %667 = arith.mulf %666, %665 : vector<2x32xf32>
      %668 = math.tanh %667 : vector<2x32xf32>
      %cst_84 = arith.constant 1.000000e+00 : f32
      %669 = vector.broadcast %cst_84 : f32 to vector<2x32xf32>
      %670 = arith.addf %668, %669 : vector<2x32xf32>
      %cst_85 = arith.constant 5.000000e-01 : f32
      %671 = vector.broadcast %cst_85 : f32 to vector<2x32xf32>
      %672 = arith.mulf %671, %670 : vector<2x32xf32>
      %673 = vector.extract_strided_slice %655 {offsets = [0, 64], sizes = [2, 32], strides = [1, 1]} : vector<2x128xf32> to vector<2x32xf32>
      %674 = math.tanh %673 : vector<2x32xf32>
      %675 = vector.extract_strided_slice %655 {offsets = [0, 96], sizes = [2, 32], strides = [1, 1]} : vector<2x128xf32> to vector<2x32xf32>
      %cst_86 = arith.constant 5.000000e-01 : f32
      %676 = vector.broadcast %cst_86 : f32 to vector<2x32xf32>
      %677 = arith.mulf %676, %675 : vector<2x32xf32>
      %678 = math.tanh %677 : vector<2x32xf32>
      %cst_87 = arith.constant 1.000000e+00 : f32
      %679 = vector.broadcast %cst_87 : f32 to vector<2x32xf32>
      %680 = arith.addf %678, %679 : vector<2x32xf32>
      %cst_88 = arith.constant 5.000000e-01 : f32
      %681 = vector.broadcast %cst_88 : f32 to vector<2x32xf32>
      %682 = arith.mulf %681, %680 : vector<2x32xf32>
      %683 = arith.mulf %672, %656 : vector<2x32xf32>
      %684 = arith.mulf %664, %674 : vector<2x32xf32>
      %685 = arith.addf %683, %684 : vector<2x32xf32>
      %686 = math.tanh %685 : vector<2x32xf32>
      %687 = arith.mulf %682, %686 : vector<2x32xf32>
      %688 = arith.truncf %687 : vector<2x32xf32> to vector<2x32xbf16>
      %c0_89 = arith.constant 0 : index
      %c0_90 = arith.constant 0 : index
      %689 = vector.load %arg22[%c0_89, %c0_90] : memref<32x9xbf16, #tpu.memory_space<vmem>>, vector<32x9xbf16>
      %cst_91 = arith.constant dense<0.000000e+00> : vector<2x9xf32>
      %690 = tpu.matmul %688, %689, %cst_91 {dimension_numbers = #tpu.dot_dimension_numbers<[1], [0], [0], [1], [0, 0, 1, 1], [], []>} : vector<2x32xbf16>, vector<32x9xbf16>, vector<2x9xf32> -> vector<2x9xf32>
      %691 = arith.truncf %621 : vector<2x32xf32> to vector<2x32xbf16>
      %c0_92 = arith.constant 0 : index
      %c0_93 = arith.constant 0 : index
      %692 = vector.load %arg23[%c0_92, %c0_93] : memref<32x9xbf16, #tpu.memory_space<vmem>>, vector<32x9xbf16>
      %cst_94 = arith.constant dense<0.000000e+00> : vector<2x9xf32>
      %693 = tpu.matmul %691, %692, %cst_94 {dimension_numbers = #tpu.dot_dimension_numbers<[1], [0], [0], [1], [0, 0, 1, 1], [], []>} : vector<2x32xbf16>, vector<32x9xbf16>, vector<2x9xf32> -> vector<2x9xf32>
      %694 = arith.addf %690, %693 : vector<2x9xf32>
      %c0_95 = arith.constant 0 : index
      %c0_96 = arith.constant 0 : index
      %695 = vector.load %arg24[%c0_95, %c0_96] : memref<1x9xf32, #tpu.memory_space<vmem>>, vector<1x9xf32>
      %696 = vector.broadcast %695 : vector<1x9xf32> to vector<2x9xf32>
      %697 = arith.addf %694, %696 : vector<2x9xf32>
      %c0_97 = arith.constant 0 : index
      %c0_98 = arith.constant 0 : index
      %698 = vector.load %arg25[%c0_97, %c0_98] : memref<2x9xf32, #tpu.memory_space<vmem>>, vector<2x9xf32>
      tpu.vector_store %arg25[%c0_97, %c0_98], %697 {strides = array<i32>} : memref<2x9xf32, #tpu.memory_space<vmem>>, vector<2x9xf32>,
      %c0_99 = arith.constant 0 : index
      %c0_100 = arith.constant 0 : index
      %699 = vector.load %arg26[%c0_99, %c0_100] : memref<2x32xf32, #tpu.memory_space<vmem>>, vector<2x32xf32>
      tpu.vector_store %arg26[%c0_99, %c0_100], %622 {strides = array<i32>} : memref<2x32xf32, #tpu.memory_space<vmem>>, vector<2x32xf32>,
      %c0_101 = arith.constant 0 : index
      %c0_102 = arith.constant 0 : index
      %700 = vector.load %arg34[%c0_101, %c0_102] : memref<2x32xf32, #tpu.memory_space<vmem>>, vector<2x32xf32>
      %c0_103 = arith.constant 0 : index
      %c0_104 = arith.constant 0 : index
      %701 = vector.load %arg27[%c0_103, %c0_104] : memref<2x32xf32, #tpu.memory_space<vmem>>, vector<2x32xf32>
      tpu.vector_store %arg27[%c0_103, %c0_104], %700 {strides = array<i32>} : memref<2x32xf32, #tpu.memory_space<vmem>>, vector<2x32xf32>,
      %c0_105 = arith.constant 0 : index
      %c0_106 = arith.constant 0 : index
      %702 = vector.load %arg28[%c0_105, %c0_106] : memref<2x32xf32, #tpu.memory_space<vmem>>, vector<2x32xf32>
      tpu.vector_store %arg28[%c0_105, %c0_106], %621 {strides = array<i32>} : memref<2x32xf32, #tpu.memory_space<vmem>>, vector<2x32xf32>,
      %c0_107 = arith.constant 0 : index
      %c0_108 = arith.constant 0 : index
      %703 = vector.load %arg31[%c0_107, %c0_108] : memref<2x32xf32, #tpu.memory_space<vmem>>, vector<2x32xf32>
      tpu.vector_store %arg31[%c0_107, %c0_108], %687 {strides = array<i32>} : memref<2x32xf32, #tpu.memory_space<vmem>>, vector<2x32xf32>,
      %c0_109 = arith.constant 0 : index
      %c0_110 = arith.constant 0 : index
      %704 = vector.load %arg32[%c0_109, %c0_110] : memref<2x32xf32, #tpu.memory_space<vmem>>, vector<2x32xf32>
      tpu.vector_store %arg32[%c0_109, %c0_110], %685 {strides = array<i32>} : memref<2x32xf32, #tpu.memory_space<vmem>>, vector<2x32xf32>,
    } else {
    }
    return
  }
  func.func @transform_0(%arg0: i32) -> (i32, i32) {
    %c0_i32 = arith.constant 0 : i32
    %c0_i32_0 = arith.constant 0 : i32
    %c0_i32_1 = arith.constant 0 : i32
    return %c0_i32, %c0_i32_0 : i32, i32
  }
  func.func @transform_1(%arg0: i32) -> (i32, i32) {
    %c0_i32 = arith.constant 0 : i32
    %c0_i32_0 = arith.constant 0 : i32
    %c0_i32_1 = arith.constant 0 : i32
    return %c0_i32, %c0_i32_0 : i32, i32
  }
  func.func @transform_2(%arg0: i32) -> (i32, i32) {
    %c0_i32 = arith.constant 0 : i32
    %c0_i32_0 = arith.constant 0 : i32
    %c0_i32_1 = arith.constant 0 : i32
    return %c0_i32, %c0_i32_0 : i32, i32
  }
  func.func @transform_3(%arg0: i32) -> (i32, i32) {
    %c0_i32 = arith.constant 0 : i32
    %c0_i32_0 = arith.constant 0 : i32
    %c0_i32_1 = arith.constant 0 : i32
    return %c0_i32, %c0_i32_0 : i32, i32
  }
  func.func @transform_4(%arg0: i32) -> (i32, i32, i32) {
    %c0_i32 = arith.constant 0 : i32
    %c0_i32_0 = arith.constant 0 : i32
    %c0_i32_1 = arith.constant 0 : i32
    %c0_i32_2 = arith.constant 0 : i32
    return %c0_i32, %c0_i32_0, %c0_i32_1 : i32, i32, i32
  }
  func.func @transform_5(%arg0: i32) -> (i32, i32, i32) {
    %c0_i32 = arith.constant 0 : i32
    %c0_i32_0 = arith.constant 0 : i32
    %c0_i32_1 = arith.constant 0 : i32
    return %arg0, %c0_i32, %c0_i32_0 : i32, i32, i32
  }
  func.func @transform_6(%arg0: i32) -> (i32, i32, i32) {
    %c0_i32 = arith.constant 0 : i32
    %c0_i32_0 = arith.constant 0 : i32
    %c0_i32_1 = arith.constant 0 : i32
    return %arg0, %c0_i32, %c0_i32_0 : i32, i32, i32
  }
  func.func @transform_7(%arg0: i32) -> (i32, i32, i32) {
    %c0_i32 = arith.constant 0 : i32
    %c0_i32_0 = arith.constant 0 : i32
    %c0_i32_1 = arith.constant 0 : i32
    return %arg0, %c0_i32, %c0_i32_0 : i32, i32, i32
  }
  func.func @transform_8(%arg0: i32) -> (i32, i32, i32) {
    %c0_i32 = arith.constant 0 : i32
    %c0_i32_0 = arith.constant 0 : i32
    %c0_i32_1 = arith.constant 0 : i32
    return %c0_i32, %arg0, %c0_i32_0 : i32, i32, i32
  }
  func.func @transform_9(%arg0: i32) -> (i32, i32, i32) {
    %c0_i32 = arith.constant 0 : i32
    %c0_i32_0 = arith.constant 0 : i32
    %c0_i32_1 = arith.constant 0 : i32
    return %c0_i32, %arg0, %c0_i32_0 : i32, i32, i32
  }
  func.func @transform_10(%arg0: i32) -> (i32, i32) {
    %c0_i32 = arith.constant 0 : i32
    %c0_i32_0 = arith.constant 0 : i32
    %c0_i32_1 = arith.constant 0 : i32
    return %c0_i32, %c0_i32_0 : i32, i32
  }
  func.func @transform_11(%arg0: i32) -> (i32, i32) {
    %c0_i32 = arith.constant 0 : i32
    %c0_i32_0 = arith.constant 0 : i32
    %c0_i32_1 = arith.constant 0 : i32
    return %c0_i32, %c0_i32_0 : i32, i32
  }
  func.func @transform_12(%arg0: i32) -> (i32, i32) {
    %c0_i32 = arith.constant 0 : i32
    %c0_i32_0 = arith.constant 0 : i32
    %c0_i32_1 = arith.constant 0 : i32
    return %c0_i32, %c0_i32_0 : i32, i32
  }
  func.func @transform_13(%arg0: i32) -> (i32, i32) {
    %c0_i32 = arith.constant 0 : i32
    %c0_i32_0 = arith.constant 0 : i32
    %c0_i32_1 = arith.constant 0 : i32
    return %c0_i32, %c0_i32_0 : i32, i32
  }
  func.func @transform_14(%arg0: i32) -> (i32, i32) {
    %c0_i32 = arith.constant 0 : i32
    %c0_i32_0 = arith.constant 0 : i32
    %c0_i32_1 = arith.constant 0 : i32
    return %c0_i32, %c0_i32_0 : i32, i32
  }
  func.func @transform_15(%arg0: i32) -> (i32, i32) {
    %c0_i32 = arith.constant 0 : i32
    %c0_i32_0 = arith.constant 0 : i32
    %c0_i32_1 = arith.constant 0 : i32
    return %c0_i32, %c0_i32_0 : i32, i32
  }
  func.func @transform_16(%arg0: i32) -> (i32, i32) {
    %c0_i32 = arith.constant 0 : i32
    %c0_i32_0 = arith.constant 0 : i32
    %c0_i32_1 = arith.constant 0 : i32
    return %c0_i32, %c0_i32_0 : i32, i32
  }
  func.func @transform_17(%arg0: i32) -> (i32, i32) {
    %c0_i32 = arith.constant 0 : i32
    %c0_i32_0 = arith.constant 0 : i32
    %c0_i32_1 = arith.constant 0 : i32
    return %c0_i32, %c0_i32_0 : i32, i32
  }
  func.func @transform_18(%arg0: i32) -> (i32, i32) {
    %c0_i32 = arith.constant 0 : i32
    %c0_i32_0 = arith.constant 0 : i32
    %c0_i32_1 = arith.constant 0 : i32
    return %c0_i32, %c0_i32_0 : i32, i32
  }
  func.func @transform_19(%arg0: i32) -> (i32, i32) {
    %c0_i32 = arith.constant 0 : i32
    %c0_i32_0 = arith.constant 0 : i32
    %c0_i32_1 = arith.constant 0 : i32
    return %c0_i32, %c0_i32_0 : i32, i32
  }
  func.func @transform_20(%arg0: i32) -> (i32, i32) {
    %c0_i32 = arith.constant 0 : i32
    %c0_i32_0 = arith.constant 0 : i32
    %c0_i32_1 = arith.constant 0 : i32
    return %c0_i32, %c0_i32_0 : i32, i32
  }
  func.func @transform_21(%arg0: i32) -> (i32, i32) {
    %c0_i32 = arith.constant 0 : i32
    %c0_i32_0 = arith.constant 0 : i32
    %c0_i32_1 = arith.constant 0 : i32
    return %c0_i32, %c0_i32_0 : i32, i32
  }
  func.func @transform_22(%arg0: i32) -> (i32, i32) {
    %c0_i32 = arith.constant 0 : i32
    %c0_i32_0 = arith.constant 0 : i32
    %c0_i32_1 = arith.constant 0 : i32
    return %c0_i32, %c0_i32_0 : i32, i32
  }
  func.func @transform_23(%arg0: i32) -> (i32, i32) {
    %c0_i32 = arith.constant 0 : i32
    %c0_i32_0 = arith.constant 0 : i32
    %c0_i32_1 = arith.constant 0 : i32
    return %c0_i32, %c0_i32_0 : i32, i32
  }
  func.func @transform_24(%arg0: i32) -> (i32, i32) {
    %c0_i32 = arith.constant 0 : i32
    %c0_i32_0 = arith.constant 0 : i32
    %c0_i32_1 = arith.constant 0 : i32
    return %c0_i32, %c0_i32_0 : i32, i32
  }
  func.func @transform_25(%arg0: i32) -> (i32, i32) {
    %c0_i32 = arith.constant 0 : i32
    %c0_i32_0 = arith.constant 0 : i32
    %c0_i32_1 = arith.constant 0 : i32
    return %c0_i32, %c0_i32_0 : i32, i32
  }
  func.func @transform_26(%arg0: i32) -> (i32, i32) {
    %c0_i32 = arith.constant 0 : i32
    %c0_i32_0 = arith.constant 0 : i32
    %c0_i32_1 = arith.constant 0 : i32
    return %c0_i32, %c0_i32_0 : i32, i32
  }
  func.func @transform_27(%arg0: i32) -> (i32, i32) {
    %c0_i32 = arith.constant 0 : i32
    %c0_i32_0 = arith.constant 0 : i32
    %c0_i32_1 = arith.constant 0 : i32
    return %c0_i32, %c0_i32_0 : i32, i32
  }
  func.func @transform_28(%arg0: i32) -> (i32, i32, i32) {
    %c0_i32 = arith.constant 0 : i32
    %c0_i32_0 = arith.constant 0 : i32
    %c0_i32_1 = arith.constant 0 : i32
    %c0_i32_2 = arith.constant 0 : i32
    return %c0_i32, %c0_i32_0, %c0_i32_1 : i32, i32, i32
  }
  func.func @transform_29(%arg0: i32) -> (i32, i32, i32) {
    %c0_i32 = arith.constant 0 : i32
    %c0_i32_0 = arith.constant 0 : i32
    %c0_i32_1 = arith.constant 0 : i32
    %c0_i32_2 = arith.constant 0 : i32
    return %c0_i32, %c0_i32_0, %c0_i32_1 : i32, i32, i32
  }
  func.func @transform_30(%arg0: i32) -> (i32, i32) {
    %c0_i32 = arith.constant 0 : i32
    %c0_i32_0 = arith.constant 0 : i32
    %c0_i32_1 = arith.constant 0 : i32
    return %c0_i32, %c0_i32_0 : i32, i32
  }
  func.func @transform_31(%arg0: i32) -> (i32, i32) {
    %c0_i32 = arith.constant 0 : i32
    %c0_i32_0 = arith.constant 0 : i32
    %c0_i32_1 = arith.constant 0 : i32
    return %c0_i32, %c0_i32_0 : i32, i32
  }
}

</mosaic_0001>

<bundles_post_ra>
// kernel: decoder_forward.1
= control target key start
LH: loop header
LB: loop body
LE: loop exit
PB: predicated region body
PF: predicated region fallthrough
CT: control target
= control target key end

     0   :  { %s4024_s6 = smov 1   ;;  %s4025_s10 = smov 2   ;;  %s5546_s0 = inlined_call_operand.smem [shape: u32[32], index: -1, kind: input, shape index: {}] }
   0x1   :  { %s4079_s5 = sld [smem:[%s5546_s0]]   ;;  %s4026_s14 = smov 3  }
   0x2   :  { %s4084_s9 = sld [smem:[%s5546_s0 + %s4024_s6]]   ;;  %s4027_s18 = smov 4  }
   0x3   :  { %s4089_s13 = sld [smem:[%s5546_s0 + %s4025_s10]]   ;;  %s4028_s22 = smov 5  }
   0x4   :  { %s4094_s17 = sld [smem:[%s5546_s0 + %s4026_s14]]   ;;  %s4029_s26 = smov 6  }
   0x5   :  { %s4099_s21 = sld [smem:[%s5546_s0 + %s4027_s18]]   ;;  %s4030_s30 = smov 7  }
   0x6   :  { %s4104_s25 = sld [smem:[%s5546_s0 + %s4028_s22]]   ;;  %s4031_s4 = smov 8  }
   0x7   :  { %s4109_s29 = sld [smem:[%s5546_s0 + %s4029_s26]]   ;;  %s4032_s10 = smov 9  }
   0x8   :  { %s4114_s3 = sld [smem:[%s5546_s0 + %s4030_s30]]   ;;  %s4033_s15 = smov 10  }
   0x9   :  { %5578 = sst [smem:[#allocation17_spill]] %s4089_s13  ;;  %s4034_s20 = smov 11  }
   0xa   :  { %5579 = sst [smem:[#allocation18_spill]] %s4094_s17  ;;  %s4035_s26 = smov 12  }
   0xb   :  { %5580 = sst [smem:[#allocation19_spill]] %s4099_s21  ;;  %s4036_s1 = smov 13  }
   0xc   :  { %s4119_s8 = sld [smem:[%s5546_s0 + %s4031_s4]]   ;;  %s4037_s7 = smov 14  }
   0xd   :  { %s4124_s14 = sld [smem:[%s5546_s0 + %s4032_s10]]   ;;  %s4039_s22 = smov 16  }
   0xe   :  { %5581 = sst [smem:[#allocation20_spill]] %s4114_s3  ;;  %s4040_s28 = smov 17  }
   0xf   :  { %s4129_s19 = sld [smem:[%s5546_s0 + %s4033_s15]]   ;;  %s4038_s15 = smov 15  }
  0x10   :  { %s4134_s24 = sld [smem:[%s5546_s0 + %s4034_s20]]  }
  0x11   :  { %s4139_s30 = sld [smem:[%s5546_s0 + %s4035_s26]]  }
  0x12   :  { %s4144_s6 = sld [smem:[%s5546_s0 + %s4036_s1]]  }
  0x13   :  { %s4149_s12 = sld [smem:[%s5546_s0 + %s4037_s7]]   ;;  %s4041_s7 = smov 18  }
  0x14   :  { %s4154_s20 = sld [smem:[%s5546_s0 + %s4038_s15]]   ;;  %s4042_s15 = smov 19  }
  0x15   :  { %5582 = sst [smem:[#allocation21_spill]] %s4129_s19 }
  0x16   :  { %s4159_s27 = sld [smem:[%s5546_s0 + %s4039_s22]]   ;;  %s4043_s22 = smov 20  }
  0x17   :  { %s4164_s4 = sld [smem:[%s5546_s0 + %s4040_s28]]   ;;  %s4044_s28 = smov 21  }
  0x18   :  { %s4169_s21 = sld [smem:[%s5546_s0 + %s4041_s7]]   ;;  %s4045_s7 = smov 22  }
  0x19   :  { %s4174_s13 = sld [smem:[%s5546_s0 + %s4042_s15]]   ;;  %s4046_s15 = smov 23  }
  0x1a   :  { %s4179_s17 = sld [smem:[%s5546_s0 + %s4043_s22]]   ;;  %s4047_s22 = smov 24  }
  0x1b   :  { %s4184_s19 = sld [smem:[%s5546_s0 + %s4044_s28]]   ;;  %s4048_s28 = smov 25  }
  0x1e   :  { %5583 = sst [smem:[#allocation22_spill]] %s4169_s21 }
  0x1f   :  { %5584 = sst [smem:[#allocation23_spill]] %s4174_s13 }
  0x20   :  { %5585 = sst [smem:[#allocation24_spill]] %s4179_s17 }
  0x21   :  { %5586 = sst [smem:[#allocation25_spill]] %s4184_s19 }
  0x22   :  { %s4189_s21 = sld [smem:[%s5546_s0 + %s4045_s7]]   ;;  %s4049_s7 = smov 26  }
  0x23   :  { %s4194_s13 = sld [smem:[%s5546_s0 + %s4046_s15]]   ;;  %s4050_s15 = smov 27  }
  0x24   :  { %s4199_s17 = sld [smem:[%s5546_s0 + %s4047_s22]]   ;;  %s4051_s22 = smov 28  }
  0x25   :  { %s4204_s19 = sld [smem:[%s5546_s0 + %s4048_s28]]   ;;  %s4052_s28 = smov 29  }
  0x28   :  { %5587 = sst [smem:[#allocation26_spill]] %s4189_s21 }
  0x29   :  { %5588 = sst [smem:[#allocation27_spill]] %s4194_s13 }
  0x2a   :  { %5589 = sst [smem:[#allocation28_spill]] %s4199_s17 }
  0x2b   :  { %5590 = sst [smem:[#allocation29_spill]] %s4204_s19 }
  0x2c   :  { %s4209_s21 = sld [smem:[%s5546_s0 + %s4049_s7]]   ;;  %s4053_s7 = smov 30  }
  0x2d   :  { %s4214_s13 = sld [smem:[%s5546_s0 + %s4050_s15]]   ;;  %s4054_s15 = smov 31  }
  0x2e   :  { %s4219_s17 = sld [smem:[%s5546_s0 + %s4051_s22]]  }
  0x2f   :  { %s4224_s19 = sld [smem:[%s5546_s0 + %s4052_s28]]  }
  0x32   :  { %5591 = sst [smem:[#allocation30_spill]] %s4209_s21 }
  0x33   :  { %5592 = sst [smem:[#allocation31_spill]] %s4214_s13 }
  0x34   :  { %s4229_s21 = sld [smem:[%s5546_s0 + %s4053_s7]]  }
  0x35   :  { %s4234_s13 = sld [smem:[%s5546_s0 + %s4054_s15]]  }
  0x36   :  { %69 = vsyncpa [#allocation12], 0 }
  0x37   :  { %70 = vsyncpa [#allocation14], 0  ;;  %s4236_s22 = smov 0   ;;  %s4238_s23 = smov 0  }
  0x38   :  { %s4240_s26 = smov 0  }
  0x39 LB: > { %s5593_s3 = sld [smem:[#allocation20_spill]]  ;;  %s4252_s0 = sadd.s32 4294967295, %s4022_s26   ;;  %s4014_s22 = sphi %s4236_s22, %s5659_s22   ;;  %s4022_s26 = sphi %s4240_s26, %s5661_s26   ;;  %s4018_s23 = sphi %s4238_s23, %s5660_s23  }
  0x3a   : > { %s4255_s28 = sadd.s32 1, %s4022_s26   ;;  %s266_s2 = sadd.s32 1, %s4018_s23 }
  0x3b   : > { %s263_s1 = ssub.s32 %s4022_s26, %s4255_s28  ;;  %p273_p1 = scmp.ne.s32.totalorder %s4018_s23, %s4014_s22 }
  0x3c   : > { %p264_p0 = scmp.eq.s32.totalorder %s263_s1, 0  ;;  %p274_p2 = scmp.eq.s32.totalorder %s4022_s26, 0 }
  0x3d   : > { %p3639_p4 = scmp.ge.s32.totalorder %s4022_s26, 2 }
  0x3e   : > { %s4264_s7 = scalar_select %p264_p0, %s4018_s23, %s266_s2  }
  0x3f   : > { %p4266_p3 = por %p274_p2, %p273_p1  ;;  %844 = sbr.rel (%p3639_p4) target bundleno = 80 (0x50), region = 92 }
  0x40   : > { %5594 = sst [smem:[#allocation32_spill]] %s4264_s7 }
  0x44   : > { %868 = sbr.rel (!%p4266_p3) target bundleno = 74 (0x4a), region = 108  ;;  %s870_s11 = sand.u32 (%p4266_p3), 1, %s4018_s23  }
  0x45   : > { %s3691_s15 = sshll.u32 (%p4266_p3), %s4022_s26, 3  ;;  %s3640_s16 = sshll.u32 (%p4266_p3), %s870_s11, 4 }
  0x46   : > { %s875_s18 = scalar_lea.vmem (%p4266_p3), %s4119_s8, %s3691_s15  ;;  %s872_s1 = scalar_lea.vmem (%p4266_p3), [#allocation9], %s3640_s16 }
  0x47   : > { %v892_v0 = vld [vmem:[%s875_s18] sm:$0xf] (%p4266_p3)  ;;  %v894_v1 = vld [vmem:[%s875_s18 + $0x4] sm:$0xf] (%p4266_p3)  ;;  %v896_v2 = vld [vmem:[%s875_s18 + $0x10] sm:$0xf] (%p4266_p3) }
  0x48   : > { %893 = vst [vmem:[%s872_s1] sm:$0xf] (%p4266_p3), %v892_v0  ;;  %895 = vst [vmem:[%s872_s1 + $0x4] sm:$0xf] (%p4266_p3), %v894_v1  ;;  %v898_v3 = vld [vmem:[%s875_s18 + $0x14] sm:$0xf] (%p4266_p3) }
  0x49   : > { %897 = vst [vmem:[%s872_s1 + $0x8] sm:$0xf] %v896_v2  ;;  %899 = vst [vmem:[%s872_s1 + $0xc] sm:$0xf] %v898_v3 }
  0x4a PF: > { %931 = sbr.rel (!%p4266_p3) target bundleno = 80 (0x50), region = 149  ;;  %s933_s2 = sand.u32 (%p4266_p3), 1, %s4018_s23  }
  0x4b   : > { %s3692_s7 = sshll.u32 (%p4266_p3), %s4022_s26, 3  ;;  %s3643_s11 = sshll.u32 (%p4266_p3), %s933_s2, 4 }
  0x4c   : > { %s938_s15 = scalar_lea.vmem (%p4266_p3), %s4124_s14, %s3692_s7  ;;  %s935_s16 = scalar_lea.vmem (%p4266_p3), [#allocation10], %s3643_s11 }
  0x4d   : > { %v955_v4 = vld [vmem:[%s938_s15] sm:$0xf] (%p4266_p3)  ;;  %v957_v5 = vld [vmem:[%s938_s15 + $0x4] sm:$0xf] (%p4266_p3)  ;;  %v959_v6 = vld [vmem:[%s938_s15 + $0x10] sm:$0xf] (%p4266_p3) }
  0x4e   : > { %956 = vst [vmem:[%s935_s16] sm:$0xf] (%p4266_p3), %v955_v4  ;;  %958 = vst [vmem:[%s935_s16 + $0x4] sm:$0xf] (%p4266_p3), %v957_v5  ;;  %v961_v7 = vld [vmem:[%s938_s15 + $0x14] sm:$0xf] (%p4266_p3) }
  0x4f   : > { %960 = vst [vmem:[%s935_s16 + $0x8] sm:$0xf] %v959_v6  ;;  %962 = vst [vmem:[%s935_s16 + $0xc] sm:$0xf] %v961_v7 }
  0x50 PF: > { %p3646_p5 = scmp.ge.s32.totalorder %s4022_s26, 1  ;;  %p993_p6 = scmp.lt.s32.totalorder %s4022_s26, 3 }
  0x52   : > { %p994_p7 = pnand %p3646_p5, %p993_p6 }
  0x54   : > { %997 = sbr.rel (%p994_p7) target bundleno = 3398 (0xd46), region = 190 }
  0x59   : > { %s1000_s7 = sand.u32 1, %s4014_s22   ;;  %p1097_p8 = scmp.lt.s32.totalorder %s4252_s0, 1 }
  0x5a   : > { %s4285_s10 = sshll.u32 %s1000_s7, 4  ;;  %p3652_p9 = scmp.ne.s32.totalorder %s4252_s0, 0 }
  0x5b   : > { %s1098_s18 = scalar_select %p1097_p8, %s4252_s0, 1 }
  0x5c   : > { %s1002_s15 = scalar_lea.vmem [#allocation9], %s4285_s10  ;;  %s1009_s16 = scalar_lea.vmem [#allocation10], %s4285_s10 }
  0x5d   : > { %s4288_s1 = sshll.u32 %s1098_s18, 1  ;;  %1115 = sbr.rel (%p3652_p9) target bundleno = 1010 (0x3f2), region = 202 }
  0x5e   : > { %s1100_s26 = scalar_lea.vmem %s4104_s25, %s4288_s1  ;;  %s1104_s2 = scalar_lea.vmem %s4109_s29, %s4288_s1 }
  0x5f   : > { %s1108_s11 = scalar_lea.vmem %s5593_s3, %s4288_s1  ;;  %s4058_s22 = smov (!%p3652_p9), 64  }
  0x60   : > { %s4059_s7 = smov (!%p3652_p9), 32   ;;  %s4060_s18 = smov (!%p3652_p9), 96  }
  0x62   : > { %vm1313_vm0 = vcmask 1024   ;;  %v4055_v8 = vmov 0.0   ;;  %v4056_v9 = vmov -1e+30   ;;  %v3888_v10 = vld [vmem:[%s4134_s24 + $0x20] sm:$0xff]   ;;  %vm4057_vm1 = vmmov 0  }
  0x63   : > { %3737 = vmatprep.subr.bf16.mxu0 %v4055_v8  ;;  %1314 = vst.msk [vmem:[#allocation5] sm:$0x3] %vm1313_vm0, %v4056_v9  ;;  %1315 = vst.msk [vmem:[#allocation6] sm:$0x3] %vm1313_vm0, %v4055_v8  ;;  %3751 = vmatprep.subr.bf16.mxu1 %v4055_v8  ;;  %v3889_v11 = vld [vmem:[%s4134_s24 + $0x18] sm:$0xff]   ;;  %v3890_v12 = vld [vmem:[%s4134_s24 + $0x10] sm:$0xff]  }
  0x64   : > { %3747 = vmatprep.mubr.msk.bf16.mxu0 %vm4057_vm1, %v4055_v8  ;;  %3755 = vmatprep.mubr.msk.bf16.mxu1 %vm4057_vm1, %v4055_v8  ;;  %v3891_v13 = vld [vmem:[%s4134_s24 + $0x8] sm:$0xff]   ;;  %v3892_v14 = vld [vmem:[%s4134_s24] sm:$0xff]   ;;  %vm1165_vm2 = vcmask 654336   ;;  %vm1240_vm3 = vcmask 254976   ;;  %vm1267_vm4 = vcmask 261120   ;;  %vm1311_vm5 = vcmask 123904  }
  0x65   : > { %3738 = vmatpush3.bf16.msra.mxu0 %v3888_v10  ;;  %v1116_v15 = vld [vmem:[%s4079_s5] sm:$0x3]  ;;  %v3893_v35 = vld [vmem:[%s4144_s6 + $0x8] sm:$0xff]   ;;  %1316 = vst.msk [vmem:[#allocation7] sm:$0x3] %vm1240_vm3, %v4055_v8 }
  0x66   : > { %3739 = vmatprep.subr.bf16.mxu0 %v4055_v8  ;;  %v1117_v16 = vpack.c.bf16 %v1116_v15, %v1116_v15  ;;  %v3653_v17 = vld [vmem:[%s4139_s30] ss:$0 sm:$0xff]  ;;  %3752 = vmatpush3.bf16.msra.mxu1 %v3893_v35 }
  0x67   : > { %v1209_v24 = vld [vmem:[%s4084_s9] sm:$0x3]  ;;  %3753 = vmatprep.subr.bf16.mxu1 %v4055_v8 }
  0x68   : > { %v3894_v36 = vld [vmem:[%s4144_s6] sm:$0xff]  }
  0x69   : > { %3740 = vmatpush3.bf16.msra.mxu0 %v3889_v11 }
  0x6a   : > { %3741 = vmatprep.subr.bf16.mxu0 %v4055_v8  ;;  %3754 = vmatpush3.bf16.msra.mxu1 %v3894_v36 }
  0x6d   : > { %3742 = vmatpush3.bf16.msra.mxu0 %v3890_v12 }
  0x6e   : > { %3743 = vmatprep.subr.bf16.mxu0 %v4055_v8 }
  0x71   : > { %3744 = vmatpush3.bf16.msra.mxu0 %v3891_v13 }
  0x72   : > { %3745 = vmatprep.subr.bf16.mxu0 %v4055_v8 }
  0x75   : > { %3746 = vmatpush3.bf16.msra.mxu0 %v3892_v14 }
  0x78   : > { %3748 = vmatmul.mubr.msk.bf16.vlgmr.msra.gmra.mxu0 %vm1165_vm2, %v1117_v16 }
 0x138   : > { %v1203_v18 = vpop.f32.mrf.mxu0 }
 0x139   : > { %v1204_v19 = vadd.f32 %v3653_v17, %v1203_v18 }
 0x13a   : > { %v3749_v20 = vpop.f32.mrf.mxu0 }
 0x13b   : > { %3895 = vtanh.f32 %v1204_v19  ;;  %v1210_v25 = vmul.f32 0.5, %v1204_v19 }
 0x13c   : > { %v1206_v21 = vpop.f32.mrf.mxu0 }
 0x13d   : > { %3897 = vtanh.f32 %v1210_v25 }
 0x13e   : > { %v3750_v22 = vpop.f32.mrf.mxu0 }
 0x148   : > { %v3896_v23 = vpop.eup %3895 }
 0x149   : > { %1221 = vrot.lane.b32.xlu0 %v3896_v23, %s4058_s22 }
 0x14a   : > { %v3898_v26 = vpop.eup %3897 }
 0x14b   : > { %v1212_v27 = vadd.f32 1.0, %v3898_v26 }
 0x14d   : > { %1216 = vrot.lane.b32.xlu0 %v1209_v24, %s4059_s7  ;;  %v1213_v28 = vmul.f32 0.5, %v1212_v27 }
 0x1bb   : > { %v1222_v29 = vpop.permute.xlu0 %1221 }
 0x1bc   : > { %v1224_v30 = vmul.f32 %v1222_v29, %v1213_v28 }
 0x1be   : > { %1226 = vrot.lane.b32.xlu1 %v1224_v30, %s4059_s7 }
 0x1bf   : > { %v1217_v31 = vpop.permute.xlu0 %1216 }
 0x1c0   : > { %v1219_v32 = vmul.f32 %v1217_v31, %v1213_v28 }
 0x230   : > { %v1227_v33 = vpop.permute.xlu1 %1226 }
 0x231   : > { %v1229_v34 = vadd.f32 %v1227_v33, %v1219_v32 }
 0x233   : > { %3899 = vtanh.f32 %v1229_v34 }
 0x240   : > { %v3900_v37 = vpop.eup %3899 }
 0x241   : > { %1232 = vrot.lane.b32.xlu1 %v3900_v37, %s4058_s22 }
 0x2b3   : > { %v1233_v38 = vpop.permute.xlu1 %1232 }
 0x2b4   : > { %v1235_v39 = vmul.f32 %v1233_v38, %v1213_v28 }
 0x2b6   : > { %v1247_v40 = vpack.c.bf16 %v1235_v39, %v1235_v39  ;;  %1237 = vrot.lane.b32.xlu1 %v1235_v39, %s4059_s7 }
 0x2b8   : > { %1253 = vrot.lane.b32.xlu0 %v1247_v40, %s4059_s7 }
 0x2bc   : > { %1243 = vrot.lane.b32.xlu0 %v1229_v34, %s4060_s18 }
 0x328   : > { %v1238_v41 = vpop.permute.xlu1 %1237 }
 0x329   : > { %1241 = vst.msk [vmem:[#allocation2] sm:$0x3] %vm1240_vm3, %v1238_v41 }
 0x32a   : > { %v1254_v42 = vpop.permute.xlu0 %1253 }
 0x32b   : > { %3756 = vmatmul.mubr.msk.bf16.vlgmr.msra.gmra.mxu1 %vm1267_vm4, %v1254_v42 }
 0x32e   : > { %v1244_v43 = vpop.permute.xlu0 %1243 }
 0x32f   : > { %1246 = vst.msk [vmem:[#allocation3] sm:$0x3] %vm1240_vm3, %v1244_v43 }
 0x3eb   : > { %v1305_v44 = vpop.f32.mrf.mxu1 }
 0x3ec   : > { %1312 = vst.msk [vmem:[#allocation4] sm:$0x3] %vm1311_vm5, %v1305_v44 }
 0x3ed   : > { %v3757_v45 = vpop.f32.mrf.mxu1 }
 0x3ef   : > { %v1308_v46 = vpop.f32.mrf.mxu1 }
 0x3f1   : > { %v3758_v47 = vpop.f32.mrf.mxu1 }
 0x3f2 PF: > { %v5551_v48 = vlaneseq  ;;  %v1317_v50 = vld [vmem:[%s1100_s26] sm:$0x3]  ;;  %vm2772_vm6 = vcmask 130048   ;;  %s3665_s1 = sshll.u32 %s4252_s0, 1  ;;  %vm2844_vm7 = vcmask 130112   ;;  %vm2855_vm8 = vcmask 1041409  }
 0x3f3   : > { %v1318_v55 = vld [vmem:[%s1104_s2] sm:$0x3]  ;;  %vm2860_vm9 = vcmask 123904   ;;  %s2859_s26 = scalar_lea.vmem [#allocation8], %s3665_s1  ;;  %vm2938_vm10 = vcmask 1024   ;;  %vm2963_vm11 = vcmask 261120  }
 0x3f4   : > { %v4313_v49 = vshrl.u32 %v5551_v48, 7  ;;  %v4404_v60 = vld [vmem:[%s4149_s12] sm:$0xff]  ;;  %vm2987_vm12 = vcmask 254976   ;;  %p3666_p10 = scmp.ne.s32.totalorder %s4252_s0, 1 }
 0x3f5   : > { %s5643_s10 = sld [smem:[#allocation22_spill]] (!%p3666_p10)  ;;  %s4066_s22 = smov (!%p3666_p10), 32  }
 0x3f6   : > { %5596 = vst [vmem:[#allocation33_spill] sm:$0xff] %v4313_v49  ;;  %v4319_v51 = vsub.s32 1, %v4313_v49  ;;  %v4322_v52 = vsub.s32 0, %v4313_v49  ;;  %v4429_v5 = vsub.s32 2, %v4313_v49  ;;  %v4454_v16 = vsub.s32 3, %v4313_v49  ;;  %s5644_s2 = sld [smem:[#allocation21_spill]] (!%p3666_p10) }
 0x3f7   : > { %v4477_v26 = vsub.s32 4, %v4313_v49  ;;  %v4500_v36 = vsub.s32 5, %v4313_v49  ;;  %v4523_v46 = vsub.s32 6, %v4313_v49  ;;  %s5648_s7 = sld [smem:[#allocation26_spill]] (!%p3666_p10)  ;;  %s4067_s1 = smov (!%p3666_p10), 64  }
 0x3f8   : > { %v4325_v53 = vrot.slane %v1317_v50, %v4319_v51  ;;  %v4328_v54 = vrot.slane %v1317_v50, %v4322_v52  ;;  %v4338_v56 = vrot.slane %v1318_v55, %v4322_v52  ;;  %v4343_v57 = vrot.slane %v1318_v55, %v4319_v51  ;;  %s5649_s18 = sld [smem:[#allocation24_spill]] (!%p3666_p10) }
 0x3f9   : > { %v4412_v63 = vrot.slane %v4404_v60, %v4319_v51  ;;  %v4418_v0 = vrot.slane %v4404_v60, %v4322_v52  ;;  %v4443_v11 = vrot.slane %v4404_v60, %v4429_v5  ;;  %v4466_v21 = vrot.slane %v4404_v60, %v4454_v16  ;;  %5601 = vst [vmem:[#allocation38_spill] sm:$0xff] %v4477_v26 }
 0x3fa   : > { %1343 = vbcast.lane.b32.xlu1 %v4325_v53, 256  ;;  %1332 = vbcast.lane.b32.xlu0 %v4328_v54, 256  ;;  %v4489_v31 = vrot.slane %v4404_v60, %v4477_v26  ;;  %v4512_v41 = vrot.slane %v4404_v60, %v4500_v36 }
 0x3fe   : > { %1347 = vbcast.lane.b32.xlu1 %v4325_v53, 264  ;;  %1336 = vbcast.lane.b32.xlu0 %v4328_v54, 264 }
 0x402   : > { %1370 = vbcast.lane.b32.xlu1 %v4338_v56, 264  ;;  %1366 = vbcast.lane.b32.xlu0 %v4338_v56, 256 }
 0x406   : > { %1381 = vbcast.lane.b32.xlu1 %v4343_v57, 264  ;;  %1377 = vbcast.lane.b32.xlu0 %v4343_v57, 256 }
 0x40a   : > { %1401 = vbcast.lane.b32.xlu1 %v4328_v54, 265  ;;  %1397 = vbcast.lane.b32.xlu0 %v4328_v54, 257 }
 0x40e   : > { %1409 = vbcast.lane.b32.xlu1 %v4325_v53, 265  ;;  %1405 = vbcast.lane.b32.xlu0 %v4325_v53, 257 }
 0x412   : > { %1429 = vbcast.lane.b32.xlu1 %v4338_v56, 265  ;;  %1425 = vbcast.lane.b32.xlu0 %v4338_v56, 257 }
 0x416   : > { %1437 = vbcast.lane.b32.xlu1 %v4343_v57, 265  ;;  %1433 = vbcast.lane.b32.xlu0 %v4343_v57, 257 }
 0x41a   : > { %1457 = vbcast.lane.b32.xlu1 %v4328_v54, 266  ;;  %1453 = vbcast.lane.b32.xlu0 %v4328_v54, 258 }
 0x41e   : > { %1465 = vbcast.lane.b32.xlu1 %v4325_v53, 266  ;;  %1461 = vbcast.lane.b32.xlu0 %v4325_v53, 258 }
 0x422   : > { %1485 = vbcast.lane.b32.xlu1 %v4338_v56, 266  ;;  %1481 = vbcast.lane.b32.xlu0 %v4338_v56, 258 }
 0x426   : > { %1493 = vbcast.lane.b32.xlu1 %v4343_v57, 266  ;;  %1489 = vbcast.lane.b32.xlu0 %v4343_v57, 258 }
 0x42a   : > { %1513 = vbcast.lane.b32.xlu1 %v4328_v54, 267  ;;  %1509 = vbcast.lane.b32.xlu0 %v4328_v54, 259 }
 0x42e   : > { %1521 = vbcast.lane.b32.xlu1 %v4325_v53, 267  ;;  %1517 = vbcast.lane.b32.xlu0 %v4325_v53, 259 }
 0x432   : > { %1541 = vbcast.lane.b32.xlu1 %v4338_v56, 267  ;;  %1537 = vbcast.lane.b32.xlu0 %v4338_v56, 259 }
 0x436   : > { %1549 = vbcast.lane.b32.xlu1 %v4343_v57, 267  ;;  %1545 = vbcast.lane.b32.xlu0 %v4343_v57, 259 }
 0x43a   : > { %1569 = vbcast.lane.b32.xlu1 %v4328_v54, 268  ;;  %1565 = vbcast.lane.b32.xlu0 %v4328_v54, 260 }
 0x43e   : > { %1577 = vbcast.lane.b32.xlu1 %v4325_v53, 268  ;;  %1573 = vbcast.lane.b32.xlu0 %v4325_v53, 260 }
 0x442   : > { %1597 = vbcast.lane.b32.xlu1 %v4338_v56, 268  ;;  %1593 = vbcast.lane.b32.xlu0 %v4338_v56, 260 }
 0x446   : > { %1605 = vbcast.lane.b32.xlu1 %v4343_v57, 268  ;;  %1601 = vbcast.lane.b32.xlu0 %v4343_v57, 260 }
 0x44a   : > { %1625 = vbcast.lane.b32.xlu1 %v4328_v54, 269  ;;  %1621 = vbcast.lane.b32.xlu0 %v4328_v54, 261 }
 0x44e   : > { %1633 = vbcast.lane.b32.xlu1 %v4325_v53, 269  ;;  %1629 = vbcast.lane.b32.xlu0 %v4325_v53, 261 }
 0x452   : > { %1653 = vbcast.lane.b32.xlu1 %v4338_v56, 269  ;;  %1649 = vbcast.lane.b32.xlu0 %v4338_v56, 261 }
 0x456   : > { %1661 = vbcast.lane.b32.xlu1 %v4343_v57, 269  ;;  %1657 = vbcast.lane.b32.xlu0 %v4343_v57, 261 }
 0x45a   : > { %1681 = vbcast.lane.b32.xlu1 %v4328_v54, 270  ;;  %1677 = vbcast.lane.b32.xlu0 %v4328_v54, 262 }
 0x45e   : > { %1689 = vbcast.lane.b32.xlu1 %v4325_v53, 270  ;;  %1685 = vbcast.lane.b32.xlu0 %v4325_v53, 262 }
 0x462   : > { %1709 = vbcast.lane.b32.xlu1 %v4338_v56, 270  ;;  %1705 = vbcast.lane.b32.xlu0 %v4338_v56, 262 }
 0x466   : > { %1717 = vbcast.lane.b32.xlu1 %v4343_v57, 270  ;;  %1713 = vbcast.lane.b32.xlu0 %v4343_v57, 262 }
 0x46a   : > { %1737 = vbcast.lane.b32.xlu1 %v4328_v54, 271  ;;  %1733 = vbcast.lane.b32.xlu0 %v4328_v54, 263 }
 0x46c   : > { %v4397_v58 = vpop.permute.xlu1 %1343  ;;  %v4399_v59 = vpop.permute.xlu0 %1332 }
 0x46e   : > { %1745 = vbcast.lane.b32.xlu1 %v4325_v53, 271  ;;  %1741 = vbcast.lane.b32.xlu0 %v4325_v53, 263 }
 0x470   : > { %v4406_v61 = vpop.permute.xlu1 %1347  ;;  %v4408_v62 = vpop.permute.xlu0 %1336 }
 0x471   : > { %v1354_v3 = vmul.f32 %v4418_v0, %v4408_v62  ;;  %v1356_v9 = vmul.f32 %v4418_v0, %v4406_v61 }
 0x472   : > { %1765 = vbcast.lane.b32.xlu1 %v4338_v56, 271  ;;  %1761 = vbcast.lane.b32.xlu0 %v4338_v56, 263 }
 0x474   : > { %v4420_v1 = vpop.permute.xlu1 %1370  ;;  %v4422_v2 = vpop.permute.xlu0 %1366 }
 0x475   : > { %v1388_v4 = vmul.f32 %v4412_v63, %v4420_v1 }
 0x476   : > { %1773 = vbcast.lane.b32.xlu1 %v4343_v57, 271  ;;  %1769 = vbcast.lane.b32.xlu0 %v4343_v57, 263 }
 0x477   : > { %v1392_v6 = vadd.f32 %v1388_v4, %v1354_v3  ;;  %v4535_v4 = vrot.slane %v4404_v60, %v4523_v46 }
 0x478   : > { %v4433_v7 = vpop.permute.xlu1 %1381  ;;  %v4435_v8 = vpop.permute.xlu0 %1377 }
 0x479   : > { %5597 = vst [vmem:[#allocation34_spill] sm:$0xff] %v4433_v7  ;;  %v1390_v10 = vmul.f32 %v4412_v63, %v4433_v7 }
 0x47a   : > { %1793 = vbcast.lane.b32.xlu1 %v4325_v53, 272  ;;  %1789 = vbcast.lane.b32.xlu0 %v4328_v54, 272 }
 0x47b   : > { %v1394_v12 = vadd.f32 %v1390_v10, %v1356_v9 }
 0x47c   : > { %v4447_v13 = vpop.permute.xlu1 %1401  ;;  %v4449_v14 = vpop.permute.xlu0 %1397 }
 0x47d   : > { %5598 = vst [vmem:[#allocation35_spill] sm:$0xff] %v4447_v13  ;;  %v1416_v15 = vmul.f32 %v4443_v11, %v4447_v13 }
 0x47e   : > { %1813 = vbcast.lane.b32.xlu1 %v4343_v57, 272  ;;  %1809 = vbcast.lane.b32.xlu0 %v4338_v56, 272 }
 0x47f   : > { %v1420_v17 = vadd.f32 %v1416_v15, %v1392_v6  ;;  %v4546_v15 = vsub.s32 7, %v4313_v49 }
 0x480   : > { %v4458_v18 = vpop.permute.xlu1 %1409  ;;  %v4460_v19 = vpop.permute.xlu0 %1405 }
 0x481   : > { %5599 = vst [vmem:[#allocation36_spill] sm:$0xff] %v4458_v18  ;;  %v1418_v20 = vmul.f32 %v4443_v11, %v4458_v18 }
 0x482   : > { %1833 = vbcast.lane.b32.xlu1 %v4325_v53, 273  ;;  %1829 = vbcast.lane.b32.xlu0 %v4328_v54, 273 }
 0x483   : > { %v1422_v22 = vadd.f32 %v1418_v20, %v1394_v12 }
 0x484   : > { %v4470_v23 = vpop.permute.xlu1 %1429  ;;  %v4472_v24 = vpop.permute.xlu0 %1425 }
 0x485   : > { %5600 = vst [vmem:[#allocation37_spill] sm:$0xff] %v4470_v23  ;;  %v1444_v25 = vmul.f32 %v4466_v21, %v4470_v23 }
 0x486   : > { %1853 = vbcast.lane.b32.xlu1 %v4343_v57, 273  ;;  %1849 = vbcast.lane.b32.xlu0 %v4338_v56, 273 }
 0x487   : > { %v1448_v27 = vadd.f32 %v1444_v25, %v1420_v17 }
 0x488   : > { %v4481_v28 = vpop.permute.xlu1 %1437  ;;  %v4483_v29 = vpop.permute.xlu0 %1433 }
 0x489   : > { %5602 = vst [vmem:[#allocation39_spill] sm:$0xff] %v4481_v28  ;;  %v1446_v30 = vmul.f32 %v4466_v21, %v4481_v28 }
 0x48a   : > { %1873 = vbcast.lane.b32.xlu1 %v4325_v53, 274  ;;  %1869 = vbcast.lane.b32.xlu0 %v4328_v54, 274 }
 0x48b   : > { %v1450_v32 = vadd.f32 %v1446_v30, %v1422_v22 }
 0x48c   : > { %v4493_v33 = vpop.permute.xlu1 %1457  ;;  %v4495_v34 = vpop.permute.xlu0 %1453 }
 0x48d   : > { %5603 = vst [vmem:[#allocation40_spill] sm:$0xff] %v4493_v33  ;;  %v1472_v35 = vmul.f32 %v4489_v31, %v4493_v33 }
 0x48e   : > { %1893 = vbcast.lane.b32.xlu1 %v4343_v57, 274  ;;  %1889 = vbcast.lane.b32.xlu0 %v4338_v56, 274 }
 0x48f   : > { %v1476_v37 = vadd.f32 %v1472_v35, %v1448_v27  ;;  %v4558_v27 = vrot.slane %v4404_v60, %v4546_v15 }
 0x490   : > { %v4504_v38 = vpop.permute.xlu1 %1465  ;;  %v4506_v39 = vpop.permute.xlu0 %1461 }
 0x491   : > { %5604 = vst [vmem:[#allocation41_spill] sm:$0xff] %v4504_v38  ;;  %v1474_v40 = vmul.f32 %v4489_v31, %v4504_v38 }
 0x492   : > { %1913 = vbcast.lane.b32.xlu1 %v4325_v53, 275  ;;  %1909 = vbcast.lane.b32.xlu0 %v4328_v54, 275 }
 0x493   : > { %v1478_v42 = vadd.f32 %v1474_v40, %v1450_v32  ;;  %v4571_v40 = vld [vmem:[%s4149_s12 + $0x8] sm:$0xff] }
 0x494   : > { %v4516_v43 = vpop.permute.xlu1 %1485  ;;  %v4518_v44 = vpop.permute.xlu0 %1481  ;;  %v4667_v23 = vrot.slane %v4571_v40, %v4477_v26 }
 0x495   : > { %5605 = vst [vmem:[#allocation42_spill] sm:$0xff] %v4516_v43  ;;  %v1500_v45 = vmul.f32 %v4512_v41, %v4516_v43 }
 0x496   : > { %1933 = vbcast.lane.b32.xlu1 %v4343_v57, 275  ;;  %1929 = vbcast.lane.b32.xlu0 %v4338_v56, 275 }
 0x497   : > { %v1504_v47 = vadd.f32 %v1500_v45, %v1476_v37 }
 0x498   : > { %v4527_v50 = vpop.permute.xlu1 %1493  ;;  %v4529_v55 = vpop.permute.xlu0 %1489 }
 0x499   : > { %5606 = vst [vmem:[#allocation43_spill] sm:$0xff] %v4527_v50  ;;  %v1502_v3 = vmul.f32 %v4512_v41, %v4527_v50 }
 0x49a   : > { %1953 = vbcast.lane.b32.xlu1 %v4325_v53, 276  ;;  %1949 = vbcast.lane.b32.xlu0 %v4328_v54, 276 }
 0x49b   : > { %v1506_v6 = vadd.f32 %v1502_v3, %v1478_v42  ;;  %v4581_v3 = vrot.slane %v4571_v40, %v4322_v52 }
 0x49c   : > { %v4539_v9 = vpop.permute.xlu1 %1513  ;;  %v4541_v10 = vpop.permute.xlu0 %1509 }
 0x49d   : > { %5607 = vst [vmem:[#allocation44_spill] sm:$0xff] %v4539_v9  ;;  %v1528_v12 = vmul.f32 %v4535_v4, %v4539_v9 }
 0x49e   : > { %1973 = vbcast.lane.b32.xlu1 %v4343_v57, 276  ;;  %1969 = vbcast.lane.b32.xlu0 %v4338_v56, 276 }
 0x49f   : > { %v1532_v17 = vadd.f32 %v1528_v12, %v1504_v47 }
 0x4a0   : > { %v4550_v20 = vpop.permute.xlu1 %1521  ;;  %v4552_v22 = vpop.permute.xlu0 %1517 }
 0x4a1   : > { %5608 = vst [vmem:[#allocation45_spill] sm:$0xff] %v4550_v20  ;;  %v1530_v25 = vmul.f32 %v4535_v4, %v4550_v20 }
 0x4a2   : > { %1993 = vbcast.lane.b32.xlu1 %v4325_v53, 277  ;;  %1989 = vbcast.lane.b32.xlu0 %v4328_v54, 277 }
 0x4a3   : > { %v1534_v30 = vadd.f32 %v1530_v25, %v1506_v6 }
 0x4a4   : > { %v4562_v32 = vpop.permute.xlu1 %1541  ;;  %v4564_v35 = vpop.permute.xlu0 %1537 }
 0x4a5   : > { %5609 = vst [vmem:[#allocation46_spill] sm:$0xff] %v4562_v32  ;;  %v1556_v37 = vmul.f32 %v4558_v27, %v4562_v32 }
 0x4a6   : > { %2013 = vbcast.lane.b32.xlu1 %v4343_v57, 277  ;;  %2009 = vbcast.lane.b32.xlu0 %v4338_v56, 277 }
 0x4a7   : > { %v1560_v60 = vadd.f32 %v1556_v37, %v1532_v17 }
 0x4a8   : > { %v4573_v42 = vpop.permute.xlu1 %1549  ;;  %v4575_v45 = vpop.permute.xlu0 %1545 }
 0x4a9   : > { %5610 = vst [vmem:[#allocation47_spill] sm:$0xff] %v4573_v42  ;;  %v1558_v47 = vmul.f32 %v4558_v27, %v4573_v42 }
 0x4aa   : > { %2033 = vbcast.lane.b32.xlu1 %v4325_v53, 278  ;;  %2029 = vbcast.lane.b32.xlu0 %v4328_v54, 278 }
 0x4ab   : > { %v1562_v6 = vadd.f32 %v1558_v47, %v1534_v30  ;;  %v4601_v30 = vrot.slane %v4571_v40, %v4319_v51 }
 0x4ac   : > { %v4585_v12 = vpop.permute.xlu1 %1569  ;;  %v4587_v25 = vpop.permute.xlu0 %1565 }
 0x4ad   : > { %5611 = vst [vmem:[#allocation48_spill] sm:$0xff] %v4585_v12  ;;  %v1584_v17 = vmul.f32 %v4581_v3, %v4585_v12 }
 0x4ae   : > { %2053 = vbcast.lane.b32.xlu1 %v4343_v57, 278  ;;  %2049 = vbcast.lane.b32.xlu0 %v4338_v56, 278 }
 0x4af   : > { %v1588_v37 = vadd.f32 %v1584_v17, %v1560_v60 }
 0x4b0   : > { %v4593_v48 = vpop.permute.xlu1 %1577  ;;  %v4595_v49 = vpop.permute.xlu0 %1573 }
 0x4b1   : > { %5612 = vst [vmem:[#allocation49_spill] sm:$0xff] %v4593_v48  ;;  %v1586_v42 = vmul.f32 %v4581_v3, %v4593_v48 }
 0x4b2   : > { %2073 = vbcast.lane.b32.xlu1 %v4325_v53, 279  ;;  %2069 = vbcast.lane.b32.xlu0 %v4328_v54, 279 }
 0x4b3   : > { %v1590_v47 = vadd.f32 %v1586_v42, %v1562_v6  ;;  %v4621_v42 = vrot.slane %v4571_v40, %v4429_v5 }
 0x4b4   : > { %v4605_v12 = vpop.permute.xlu1 %1597  ;;  %v4607_v20 = vpop.permute.xlu0 %1593 }
 0x4b5   : > { %5613 = vst [vmem:[#allocation50_spill] sm:$0xff] %v4605_v12  ;;  %v1612_v60 = vmul.f32 %v4601_v30, %v4605_v12 }
 0x4b6   : > { %2093 = vbcast.lane.b32.xlu1 %v4343_v57, 279  ;;  %2089 = vbcast.lane.b32.xlu0 %v4338_v56, 279 }
 0x4b7   : > { %v1616_v17 = vadd.f32 %v1612_v60, %v1588_v37 }
 0x4b8   : > { %v4613_v48 = vpop.permute.xlu1 %1605  ;;  %v4615_v32 = vpop.permute.xlu0 %1601 }
 0x4b9   : > { %5614 = vst [vmem:[#allocation51_spill] sm:$0xff] %v4613_v48  ;;  %v1614_v50 = vmul.f32 %v4601_v30, %v4613_v48 }
 0x4ba   : > { %2113 = vbcast.lane.b32.xlu1 %v4325_v53, 280  ;;  %2109 = vbcast.lane.b32.xlu0 %v4328_v54, 280 }
 0x4bb   : > { %v1618_v6 = vadd.f32 %v1614_v50, %v1590_v47  ;;  %v4641_v50 = vrot.slane %v4571_v40, %v4454_v16 }
 0x4bc   : > { %v4625_v12 = vpop.permute.xlu1 %1625  ;;  %v4627_v9 = vpop.permute.xlu0 %1621 }
 0x4bd   : > { %5615 = vst [vmem:[#allocation52_spill] sm:$0xff] %v4625_v12  ;;  %v1640_v37 = vmul.f32 %v4621_v42, %v4625_v12 }
 0x4be   : > { %2133 = vbcast.lane.b32.xlu1 %v4343_v57, 280  ;;  %2129 = vbcast.lane.b32.xlu0 %v4338_v56, 280 }
 0x4bf   : > { %v1644_v60 = vadd.f32 %v1640_v37, %v1616_v17  ;;  %v1387_v37 = vmul.f32 %v4412_v63, %v4422_v2  ;;  %v1389_v2 = vmul.f32 %v4412_v63, %v4435_v8  ;;  %v1471_v63 = vmul.f32 %v4489_v31, %v4495_v34 }
 0x4c0   : > { %v4633_v48 = vpop.permute.xlu1 %1633  ;;  %v4635_v38 = vpop.permute.xlu0 %1629  ;;  %v1473_v34 = vmul.f32 %v4489_v31, %v4506_v39 }
 0x4c1   : > { %5616 = vst [vmem:[#allocation53_spill] sm:$0xff] %v4633_v48  ;;  %v1642_v43 = vmul.f32 %v4621_v42, %v4633_v48 }
 0x4c2   : > { %2153 = vbcast.lane.b32.xlu1 %v4325_v53, 281  ;;  %2149 = vbcast.lane.b32.xlu0 %v4328_v54, 281 }
 0x4c3   : > { %v1646_v47 = vadd.f32 %v1642_v43, %v1618_v6  ;;  %v1353_v43 = vmul.f32 %v4418_v0, %v4399_v59  ;;  %v1415_v6 = vmul.f32 %v4443_v11, %v4449_v14  ;;  %v1443_v59 = vmul.f32 %v4466_v21, %v4472_v24 }
 0x4c4   : > { %v4645_v12 = vpop.permute.xlu1 %1653  ;;  %v4647_v28 = vpop.permute.xlu0 %1649  ;;  %v1355_v14 = vmul.f32 %v4418_v0, %v4397_v58  ;;  %v1445_v24 = vmul.f32 %v4466_v21, %v4483_v29  ;;  %v1499_v0 = vmul.f32 %v4512_v41, %v4518_v44  ;;  %v1527_v21 = vmul.f32 %v4535_v4, %v4541_v10 }
 0x4c5   : > { %5617 = vst [vmem:[#allocation54_spill] sm:$0xff] %v4645_v12  ;;  %v1668_v17 = vmul.f32 %v4641_v50, %v4645_v12 }
 0x4c6   : > { %2173 = vbcast.lane.b32.xlu1 %v4343_v57, 281  ;;  %2169 = vbcast.lane.b32.xlu0 %v4338_v56, 281 }
 0x4c7   : > { %v1672_v48 = vadd.f32 %v1668_v17, %v1644_v60  ;;  %v1391_v60 = vadd.f32 %v1387_v37, %v1353_v43  ;;  %v1393_v37 = vadd.f32 %v1389_v2, %v1355_v14 }
 0x4c8   : > { %v4655_v33 = vpop.permute.xlu1 %1661  ;;  %v4657_v18 = vpop.permute.xlu0 %1657 }
 0x4c9   : > { %5618 = vst [vmem:[#allocation55_spill] sm:$0xff] %v4655_v33  ;;  %v1670_v12 = vmul.f32 %v4641_v50, %v4655_v33  ;;  %v1417_v33 = vmul.f32 %v4443_v11, %v4460_v19  ;;  %v1419_v26 = vadd.f32 %v1415_v6, %v1391_v60  ;;  %v1529_v6 = vmul.f32 %v4535_v4, %v4552_v22 }
 0x4ca   : > { %2193 = vbcast.lane.b32.xlu1 %v4325_v53, 282  ;;  %2189 = vbcast.lane.b32.xlu0 %v4328_v54, 282  ;;  %v1611_v4 = vmul.f32 %v4601_v30, %v4607_v20  ;;  %v1613_v20 = vmul.f32 %v4601_v30, %v4615_v32 }
 0x4cb   : > { %v1674_v17 = vadd.f32 %v1670_v12, %v1646_v47  ;;  %v1447_v58 = vadd.f32 %v1443_v59, %v1419_v26  ;;  %v1421_v19 = vadd.f32 %v1417_v33, %v1393_v37  ;;  %v4701_v26 = vrot.slane %v4571_v40, %v4500_v36 }
 0x4cc   : > { %v4679_v7 = vpop.permute.xlu1 %1681  ;;  %v1678_v13 = vpop.permute.xlu0 %1677  ;;  %v1555_v33 = vmul.f32 %v4558_v27, %v4564_v35 }
 0x4cd   : > { %v1696_v8 = vmul.f32 %v4667_v23, %v4679_v7  ;;  %v1475_v43 = vadd.f32 %v1471_v63, %v1447_v58  ;;  %v1449_v44 = vadd.f32 %v1445_v24, %v1421_v19  ;;  %v1557_v63 = vmul.f32 %v4558_v27, %v4575_v45 }
 0x4ce   : > { %2213 = vbcast.lane.b32.xlu1 %v4343_v57, 282  ;;  %2209 = vbcast.lane.b32.xlu0 %v4338_v56, 282  ;;  %v1639_v27 = vmul.f32 %v4621_v42, %v4627_v9  ;;  %v1750_v58 = vrot.slane %v4571_v40, %v4523_v46  ;;  %v1641_v19 = vmul.f32 %v4621_v42, %v4635_v38  ;;  %v4751_v42 = vld [vmem:[%s4149_s12 + $0x10] sm:$0xff] }
 0x4cf   : > { %v1700_v11 = vadd.f32 %v1696_v8, %v1672_v48  ;;  %v1501_v48 = vmul.f32 %v4512_v41, %v4529_v55  ;;  %v1503_v31 = vadd.f32 %v1499_v0, %v1475_v43  ;;  %v1477_v10 = vadd.f32 %v1473_v34, %v1449_v44 }
 0x4d0   : > { %v4693_v12 = vpop.permute.xlu1 %1689  ;;  %v1686_v47 = vpop.permute.xlu0 %1685  ;;  %v1583_v41 = vmul.f32 %v4581_v3, %v4587_v25  ;;  %v1585_v25 = vmul.f32 %v4581_v3, %v4595_v49  ;;  %v1667_v3 = vmul.f32 %v4641_v50, %v4647_v28  ;;  %v1695_v32 = vmul.f32 %v4667_v23, %v1678_v13 }
 0x4d1   : > { %v1698_v29 = vmul.f32 %v4667_v23, %v4693_v12  ;;  %v1531_v59 = vadd.f32 %v1527_v21, %v1503_v31  ;;  %v1505_v14 = vadd.f32 %v1501_v48, %v1477_v10  ;;  %v1669_v44 = vmul.f32 %v4641_v50, %v4657_v18 }
 0x4d2   : > { %2233 = vbcast.lane.b32.xlu1 %v4325_v53, 283  ;;  %2229 = vbcast.lane.b32.xlu0 %v4328_v54, 283  ;;  %v1778_v50 = vrot.slane %v4571_v40, %v4546_v15 }
 0x4d3   : > { %v1702_v39 = vadd.f32 %v1698_v29, %v1674_v17  ;;  %v1559_v35 = vadd.f32 %v1555_v33, %v1531_v59  ;;  %v1533_v17 = vadd.f32 %v1529_v6, %v1505_v14  ;;  %v1697_v33 = vmul.f32 %v4667_v23, %v1686_v47 }
 0x4d4   : > { %v4711_v2 = vpop.permute.xlu1 %1709  ;;  %v1706_v60 = vpop.permute.xlu0 %1705 }
 0x4d5   : > { %v1724_v55 = vmul.f32 %v4701_v26, %v4711_v2  ;;  %v1587_v24 = vadd.f32 %v1583_v41, %v1559_v35  ;;  %v1561_v0 = vadd.f32 %v1557_v63, %v1533_v17  ;;  %v1723_v48 = vmul.f32 %v4701_v26, %v1706_v60 }
 0x4d6   : > { %2253 = vbcast.lane.b32.xlu1 %v4343_v57, 283  ;;  %2249 = vbcast.lane.b32.xlu0 %v4338_v56, 283  ;;  %v1798_v60 = vrot.slane %v4751_v42, %v4322_v52 }
 0x4d7   : > { %v1728_v22 = vadd.f32 %v1724_v55, %v1700_v11  ;;  %v1615_v49 = vadd.f32 %v1611_v4, %v1587_v24  ;;  %v1589_v11 = vadd.f32 %v1585_v25, %v1561_v0  ;;  %v1818_v55 = vrot.slane %v4751_v42, %v4319_v51 }
 0x4d8   : > { %v4725_v8 = vpop.permute.xlu1 %1717  ;;  %v1714_v37 = vpop.permute.xlu0 %1713  ;;  %v4771_v25 = vrot.slane %v4751_v42, %v4429_v5 }
 0x4d9   : > { %v1726_v45 = vmul.f32 %v4701_v26, %v4725_v8  ;;  %v1643_v21 = vadd.f32 %v1639_v27, %v1615_v49  ;;  %v1617_v29 = vadd.f32 %v1613_v20, %v1589_v11  ;;  %v1725_v23 = vmul.f32 %v4701_v26, %v1714_v37 }
 0x4da   : > { %2273 = vbcast.lane.b32.xlu1 %v4325_v53, 284  ;;  %2269 = vbcast.lane.b32.xlu0 %v4328_v54, 284  ;;  %v1799_v26 = vmul.f32 %v1798_v60, %v4408_v62  ;;  %v5619_v62 = vld [vmem:[#allocation38_spill] sm:$0xff] }
 0x4db   : > { %v1730_v9 = vadd.f32 %v1726_v45, %v1702_v39  ;;  %v1671_v28 = vadd.f32 %v1667_v3, %v1643_v21  ;;  %v1645_v31 = vadd.f32 %v1641_v19, %v1617_v29  ;;  %v1819_v45 = vmul.f32 %v1818_v55, %v4420_v1  ;;  %v5620_v1 = vld [vmem:[#allocation35_spill] sm:$0xff] }
 0x4dc   : > { %v4741_v34 = vpop.permute.xlu1 %1737  ;;  %v1734_v43 = vpop.permute.xlu0 %1733  ;;  %v1801_v19 = vmul.f32 %v1798_v60, %v4406_v61  ;;  %v1839_v21 = vmul.f32 %v4771_v25, %v5620_v1  ;;  %v4796_v61 = vrot.slane %v4751_v42, %v4500_v36 }
 0x4dd   : > { %v1752_v30 = vmul.f32 %v1750_v58, %v4741_v34  ;;  %v1699_v10 = vadd.f32 %v1695_v32, %v1671_v28  ;;  %v1751_v6 = vmul.f32 %v1750_v58, %v1734_v43  ;;  %v1673_v59 = vadd.f32 %v1669_v44, %v1645_v31  ;;  %v5621_v44 = vld [vmem:[#allocation34_spill] sm:$0xff]  ;;  %v5622_v31 = vld [vmem:[#allocation37_spill] sm:$0xff] }
 0x4de   : > { %2293 = vbcast.lane.b32.xlu1 %v4343_v57, 284  ;;  %2289 = vbcast.lane.b32.xlu0 %v4338_v56, 284  ;;  %v4787_v43 = vrot.slane %v4751_v42, %v5619_v62  ;;  %v1821_v28 = vmul.f32 %v1818_v55, %v5621_v44  ;;  %v5629_v44 = vld [vmem:[#allocation43_spill] sm:$0xff] }
 0x4df   : > { %v1756_v38 = vadd.f32 %v1752_v30, %v1728_v22  ;;  %v1727_v41 = vadd.f32 %v1723_v48, %v1699_v10  ;;  %v1701_v14 = vadd.f32 %v1697_v33, %v1673_v59  ;;  %v4809_v59 = vrot.slane %v4751_v42, %v4523_v46 }
 0x4e0   : > { %v4754_v13 = vpop.permute.xlu1 %1745  ;;  %v1742_v39 = vpop.permute.xlu0 %1741 }
 0x4e1   : > { %v1754_v18 = vmul.f32 %v1750_v58, %v4754_v13  ;;  %v1755_v40 = vadd.f32 %v1751_v6, %v1727_v41  ;;  %v1753_v4 = vmul.f32 %v1750_v58, %v1742_v39  ;;  %v1729_v37 = vadd.f32 %v1725_v23, %v1701_v14  ;;  %v5624_v23 = vld [vmem:[#allocation40_spill] sm:$0xff]  ;;  %v4817_v14 = vld [vmem:[%s4149_s12 + $0x18] sm:$0xff] }
 0x4e2   : > { %2313 = vbcast.lane.b32.xlu1 %v4325_v53, 285  ;;  %2309 = vbcast.lane.b32.xlu0 %v4328_v54, 285  ;;  %v4779_v58 = vrot.slane %v4751_v42, %v4454_v16  ;;  %v4836_v1 = vrot.slane %v4817_v14, %v4322_v52 }
 0x4e3   : > { %v1758_v47 = vadd.f32 %v1754_v18, %v1730_v9  ;;  %v1757_v49 = vadd.f32 %v1753_v4, %v1729_v37  ;;  %v5623_v18 = vld [vmem:[#allocation36_spill] sm:$0xff] }
 0x4e4   : > { %v4766_v63 = vpop.permute.xlu1 %1765  ;;  %v1762_v35 = vpop.permute.xlu0 %1761  ;;  %v1859_v33 = vmul.f32 %v4779_v58, %v5622_v31  ;;  %v4847_v31 = vrot.slane %v4817_v14, %v4319_v51 }
 0x4e5   : > { %v1780_v22 = vmul.f32 %v1778_v50, %v4766_v63  ;;  %v1779_v17 = vmul.f32 %v1778_v50, %v1762_v35 }
 0x4e6   : > { %2333 = vbcast.lane.b32.xlu1 %v4343_v57, 285  ;;  %2329 = vbcast.lane.b32.xlu0 %v4338_v56, 285 }
 0x4e7   : > { %v1784_v24 = vadd.f32 %v1780_v22, %v1756_v38  ;;  %v1783_v27 = vadd.f32 %v1779_v17, %v1755_v40  ;;  %v5625_v22 = vld [vmem:[#allocation39_spill] sm:$0xff] }
 0x4e8   : > { %v4781_v0 = vpop.permute.xlu1 %1773  ;;  %v1770_v20 = vpop.permute.xlu0 %1769  ;;  %v1861_v17 = vmul.f32 %v4779_v58, %v5625_v22 }
 0x4e9   : > { %v1803_v3 = vadd.f32 %v1799_v26, %v1783_v27  ;;  %v1782_v9 = vmul.f32 %v1778_v50, %v4781_v0  ;;  %v1781_v11 = vmul.f32 %v1778_v50, %v1770_v20  ;;  %v1841_v50 = vmul.f32 %v4771_v25, %v5623_v18 }
 0x4ea   : > { %2353 = vbcast.lane.b32.xlu1 %v4325_v53, 286  ;;  %2349 = vbcast.lane.b32.xlu0 %v4328_v54, 286  ;;  %v4823_v26 = vrot.slane %v4751_v42, %v4546_v15 }
 0x4eb   : > { %v1823_v32 = vadd.f32 %v1819_v45, %v1803_v3  ;;  %v1786_v30 = vadd.f32 %v1782_v9, %v1758_v47  ;;  %v1785_v29 = vadd.f32 %v1781_v11, %v1757_v49  ;;  %v1879_v47 = vmul.f32 %v4787_v43, %v5624_v23  ;;  %v5626_v45 = vld [vmem:[#allocation42_spill] sm:$0xff]  ;;  %v5627_v11 = vld [vmem:[#allocation41_spill] sm:$0xff] }
 0x4ec   : > { %v4798_v48 = vpop.permute.xlu1 %1793  ;;  %v4800_v38 = vpop.permute.xlu0 %1789  ;;  %v1899_v20 = vmul.f32 %v4796_v61, %v5626_v45  ;;  %v5631_v23 = vld [vmem:[#allocation45_spill] sm:$0xff] }
 0x4ed   : > { %v1843_v39 = vadd.f32 %v1839_v21, %v1823_v32  ;;  %v1805_v10 = vadd.f32 %v1801_v19, %v1785_v29  ;;  %v1802_v6 = vmul.f32 %v1798_v60, %v4798_v48  ;;  %v1800_v41 = vmul.f32 %v1798_v60, %v4800_v38 }
 0x4ee   : > { %2373 = vbcast.lane.b32.xlu1 %v4343_v57, 286  ;;  %2369 = vbcast.lane.b32.xlu0 %v4338_v56, 286  ;;  %v1881_v19 = vmul.f32 %v4787_v43, %v5627_v11 }
 0x4ef   : > { %v1863_v35 = vadd.f32 %v1859_v33, %v1843_v39  ;;  %v1825_v40 = vadd.f32 %v1821_v28, %v1805_v10  ;;  %v1806_v4 = vadd.f32 %v1802_v6, %v1786_v30  ;;  %v1804_v60 = vadd.f32 %v1800_v41, %v1784_v24  ;;  %v5628_v24 = vld [vmem:[#allocation44_spill] sm:$0xff]  ;;  %v5630_v10 = vld [vmem:[#allocation46_spill] sm:$0xff] }
 0x4f0   : > { %v4825_v37 = vpop.permute.xlu1 %1813  ;;  %v4827_v27 = vpop.permute.xlu0 %1809  ;;  %v1919_v21 = vmul.f32 %v4809_v59, %v5628_v24  ;;  %v1901_v28 = vmul.f32 %v4796_v61, %v5629_v44  ;;  %v1939_v6 = vmul.f32 %v4823_v26, %v5630_v10  ;;  %v4887_v44 = vrot.slane %v4817_v14, %v5619_v62 }
 0x4f1   : > { %v1883_v49 = vadd.f32 %v1879_v47, %v1863_v35  ;;  %v1845_v3 = vadd.f32 %v1841_v50, %v1825_v40  ;;  %v1822_v9 = vmul.f32 %v1818_v55, %v4825_v37  ;;  %v1820_v42 = vmul.f32 %v1818_v55, %v4827_v27 }
 0x4f2   : > { %2393 = vbcast.lane.b32.xlu1 %v4325_v53, 287  ;;  %2389 = vbcast.lane.b32.xlu0 %v4328_v54, 287  ;;  %v1921_v47 = vmul.f32 %v4809_v59, %v5631_v23  ;;  %v4861_v35 = vrot.slane %v4817_v14, %v4429_v5 }
 0x4f3   : > { %v1903_v32 = vadd.f32 %v1899_v20, %v1883_v49  ;;  %v1865_v30 = vadd.f32 %v1861_v17, %v1845_v3  ;;  %v1826_v29 = vadd.f32 %v1822_v9, %v1806_v4  ;;  %v1824_v33 = vadd.f32 %v1820_v42, %v1804_v60  ;;  %v5632_v4 = vld [vmem:[#allocation48_spill] sm:$0xff]  ;;  %v5633_v20 = vld [vmem:[#allocation47_spill] sm:$0xff] }
 0x4f4   : > { %v4849_v39 = vpop.permute.xlu1 %1833  ;;  %v4851_v55 = vpop.permute.xlu0 %1829  ;;  %v1959_v22 = vmul.f32 %v4836_v1, %v5632_v4  ;;  %v1941_v49 = vmul.f32 %v4823_v26, %v5633_v20  ;;  %v4873_v3 = vrot.slane %v4817_v14, %v4454_v16 }
 0x4f5   : > { %v1923_v18 = vadd.f32 %v1919_v21, %v1903_v32  ;;  %v1885_v50 = vadd.f32 %v1881_v19, %v1865_v30  ;;  %v1842_v41 = vmul.f32 %v4771_v25, %v4849_v39  ;;  %v1840_v40 = vmul.f32 %v4771_v25, %v4851_v55  ;;  %v5634_v19 = vld [vmem:[#allocation50_spill] sm:$0xff]  ;;  %v5635_v30 = vld [vmem:[#allocation49_spill] sm:$0xff] }
 0x4f6   : > { %2413 = vbcast.lane.b32.xlu1 %v4343_v57, 287  ;;  %2409 = vbcast.lane.b32.xlu0 %v4338_v56, 287  ;;  %v1979_v42 = vmul.f32 %v4847_v31, %v5634_v19 }
 0x4f7   : > { %v1943_v17 = vadd.f32 %v1939_v6, %v1923_v18  ;;  %v1905_v60 = vadd.f32 %v1901_v28, %v1885_v50  ;;  %v1846_v45 = vadd.f32 %v1842_v41, %v1826_v29  ;;  %v1844_v9 = vadd.f32 %v1840_v40, %v1824_v33  ;;  %v5636_v33 = vld [vmem:[#allocation52_spill] sm:$0xff]  ;;  %v5637_v41 = vld [vmem:[#allocation51_spill] sm:$0xff] }
 0x4f8   : > { %v4875_v11 = vpop.permute.xlu1 %1853  ;;  %v4877_v25 = vpop.permute.xlu0 %1849  ;;  %v1961_v29 = vmul.f32 %v4836_v1, %v5635_v30  ;;  %v1999_v10 = vmul.f32 %v4861_v35, %v5636_v33  ;;  %v1981_v23 = vmul.f32 %v4847_v31, %v5637_v41  ;;  %v5640_v30 = vld [vmem:[#allocation55_spill] sm:$0xff] }
 0x4f9   : > { %v1963_v24 = vadd.f32 %v1959_v22, %v1943_v17  ;;  %v1925_v21 = vadd.f32 %v1921_v47, %v1905_v60  ;;  %v1862_v32 = vmul.f32 %v4779_v58, %v4875_v11  ;;  %v1860_v28 = vmul.f32 %v4779_v58, %v4877_v25  ;;  %v5638_v22 = vld [vmem:[#allocation54_spill] sm:$0xff] }
 0x4fa   : > { %2433 = vbcast.lane.b32.xlu1 %v4325_v53, 288  ;;  %2429 = vbcast.lane.b32.xlu0 %v4328_v54, 288  ;;  %v4899_v47 = vrot.slane %v4817_v14, %v4500_v36  ;;  %v2019_v17 = vmul.f32 %v4873_v3, %v5638_v22 }
 0x4fb   : > { %v1945_v6 = vadd.f32 %v1941_v49, %v1925_v21  ;;  %v1983_v18 = vadd.f32 %v1979_v42, %v1963_v24  ;;  %v1866_v50 = vadd.f32 %v1862_v32, %v1846_v45  ;;  %v1864_v40 = vadd.f32 %v1860_v28, %v1844_v9  ;;  %v5639_v49 = vld [vmem:[#allocation53_spill] sm:$0xff] }
 0x4fc   : > { %v4901_v4 = vpop.permute.xlu1 %1873  ;;  %v4903_v58 = vpop.permute.xlu0 %1869  ;;  %v2001_v19 = vmul.f32 %v4861_v35, %v5639_v49  ;;  %v2039_v9 = vmul.f32 %v4887_v44, %v4679_v7  ;;  %v4921_v28 = vrot.slane %v4817_v14, %v4523_v46  ;;  %v2061_v49 = vmul.f32 %v4899_v47, %v4725_v8 }
 0x4fd   : > { %v1965_v60 = vadd.f32 %v1961_v29, %v1945_v6  ;;  %v2003_v20 = vadd.f32 %v1999_v10, %v1983_v18  ;;  %v1882_v45 = vmul.f32 %v4787_v43, %v4901_v4  ;;  %v1880_v42 = vmul.f32 %v4787_v43, %v4903_v58 }
 0x4fe   : > { %2453 = vbcast.lane.b32.xlu1 %v4343_v57, 288  ;;  %2449 = vbcast.lane.b32.xlu0 %v4338_v56, 288  ;;  %v2021_v29 = vmul.f32 %v4873_v3, %v5640_v30  ;;  %v2059_v6 = vmul.f32 %v4899_v47, %v4711_v2  ;;  %v2079_v2 = vmul.f32 %v4921_v28, %v4741_v34 }
 0x4ff   : > { %v1985_v24 = vadd.f32 %v1981_v23, %v1965_v60  ;;  %v2023_v21 = vadd.f32 %v2019_v17, %v2003_v20  ;;  %v1886_v32 = vadd.f32 %v1882_v45, %v1866_v50  ;;  %v1884_v33 = vadd.f32 %v1880_v42, %v1864_v40 }
 0x500   : > { %v4923_v10 = vpop.permute.xlu1 %1893  ;;  %v4925_v43 = vpop.permute.xlu0 %1889  ;;  %v2041_v23 = vmul.f32 %v4887_v44, %v4693_v12  ;;  %v4941_v60 = vrot.slane %v4817_v14, %v4546_v15  ;;  %v2081_v14 = vmul.f32 %v4921_v28, %v4754_v13 }
 0x501   : > { %v2005_v18 = vadd.f32 %v2001_v19, %v1985_v24  ;;  %v2043_v7 = vadd.f32 %v2039_v9, %v2023_v21  ;;  %v1902_v50 = vmul.f32 %v4796_v61, %v4923_v10  ;;  %v1900_v41 = vmul.f32 %v4796_v61, %v4925_v43  ;;  %v4950_v19 = vld [vmem:[%s4149_s12 + $0x20] sm:$0xff] }
 0x502   : > { %2473 = vbcast.lane.b32.xlu1 %v4325_v53, 289  ;;  %2469 = vbcast.lane.b32.xlu0 %v4328_v54, 289  ;;  %v2099_v8 = vmul.f32 %v4941_v60, %v4766_v63 }
 0x503   : > { %v2025_v40 = vadd.f32 %v2021_v29, %v2005_v18  ;;  %v2063_v22 = vadd.f32 %v2059_v6, %v2043_v7  ;;  %v1906_v17 = vadd.f32 %v1902_v50, %v1886_v32  ;;  %v1904_v20 = vadd.f32 %v1900_v41, %v1884_v33 }
 0x504   : > { %v4943_v45 = vpop.permute.xlu1 %1913  ;;  %v4945_v61 = vpop.permute.xlu0 %1909  ;;  %v4964_v32 = vrot.slane %v4950_v19, %v4322_v52  ;;  %v2101_v33 = vmul.f32 %v4941_v60, %v4781_v0  ;;  %v4982_v41 = vrot.slane %v4950_v19, %v4319_v51 }
 0x505   : > { %v2045_v12 = vadd.f32 %v2041_v23, %v2025_v40  ;;  %v1922_v42 = vmul.f32 %v4809_v59, %v4943_v45  ;;  %v2083_v9 = vadd.f32 %v2079_v2, %v2063_v22  ;;  %v1920_v34 = vmul.f32 %v4809_v59, %v4945_v61 }
 0x506   : > { %2493 = vbcast.lane.b32.xlu1 %v4343_v57, 289  ;;  %2489 = vbcast.lane.b32.xlu0 %v4338_v56, 289  ;;  %v2121_v50 = vmul.f32 %v4964_v32, %v4798_v48  ;;  %v2119_v23 = vmul.f32 %v4964_v32, %v4800_v38  ;;  %v2141_v2 = vmul.f32 %v4982_v41, %v4825_v37 }
 0x507   : > { %v2065_v24 = vadd.f32 %v2061_v49, %v2045_v12  ;;  %v1926_v21 = vadd.f32 %v1922_v42, %v1906_v17  ;;  %v1924_v30 = vadd.f32 %v1920_v34, %v1904_v20  ;;  %v2103_v18 = vadd.f32 %v2099_v8, %v2083_v9 }
 0x508   : > { %v4966_v29 = vpop.permute.xlu1 %1933  ;;  %v4968_v59 = vpop.permute.xlu0 %1929  ;;  %v4996_v49 = vrot.slane %v4950_v19, %v4429_v5  ;;  %v2139_v37 = vmul.f32 %v4982_v41, %v4827_v27 }
 0x509   : > { %v2085_v6 = vadd.f32 %v2081_v14, %v2065_v24  ;;  %v1942_v13 = vmul.f32 %v4823_v26, %v4966_v29  ;;  %v1940_v63 = vmul.f32 %v4823_v26, %v4968_v59  ;;  %v2123_v20 = vadd.f32 %v2119_v23, %v2103_v18 }
 0x50a   : > { %2513 = vbcast.lane.b32.xlu1 %v4325_v53, 290  ;;  %2509 = vbcast.lane.b32.xlu0 %v4328_v54, 290  ;;  %v2161_v9 = vmul.f32 %v4996_v49, %v4849_v39 }
 0x50b   : > { %v2105_v7 = vadd.f32 %v2101_v33, %v2085_v6  ;;  %v1946_v0 = vadd.f32 %v1942_v13, %v1926_v21  ;;  %v1944_v40 = vadd.f32 %v1940_v63, %v1924_v30  ;;  %v2143_v8 = vadd.f32 %v2139_v37, %v2123_v20 }
 0x50c   : > { %v4986_v22 = vpop.permute.xlu1 %1953  ;;  %v4988_v26 = vpop.permute.xlu0 %1949  ;;  %v2159_v33 = vmul.f32 %v4996_v49, %v4851_v55  ;;  %v5048_v20 = vrot.slane %v4950_v19, %v4500_v36 }
 0x50d   : > { %v2125_v17 = vadd.f32 %v2121_v50, %v2105_v7  ;;  %v1962_v48 = vmul.f32 %v4836_v1, %v4986_v22  ;;  %v1960_v38 = vmul.f32 %v4836_v1, %v4988_v26  ;;  %v5012_v1 = vrot.slane %v4950_v19, %v4454_v16 }
 0x50e   : > { %2533 = vbcast.lane.b32.xlu1 %v4343_v57, 290  ;;  %2529 = vbcast.lane.b32.xlu0 %v4338_v56, 290  ;;  %v5030_v7 = vrot.slane %v4950_v19, %v5619_v62  ;;  %v2163_v50 = vadd.f32 %v2159_v33, %v2143_v8  ;;  %v2221_v37 = vmul.f32 %v5048_v20, %v4923_v10 }
 0x50f   : > { %v2145_v12 = vadd.f32 %v2141_v2, %v2125_v17  ;;  %v1966_v42 = vadd.f32 %v1962_v48, %v1946_v0  ;;  %v1964_v34 = vadd.f32 %v1960_v38, %v1944_v40  ;;  %v2181_v6 = vmul.f32 %v5012_v1, %v4875_v11 }
 0x510   : > { %v5006_v14 = vpop.permute.xlu1 %1973  ;;  %v5008_v24 = vpop.permute.xlu0 %1969  ;;  %v2179_v23 = vmul.f32 %v5012_v1, %v4877_v25  ;;  %v2201_v40 = vmul.f32 %v5030_v7, %v4901_v4  ;;  %v5066_v8 = vrot.slane %v4950_v19, %v4523_v46 }
 0x511   : > { %v1982_v21 = vmul.f32 %v4847_v31, %v5006_v14  ;;  %v2165_v30 = vadd.f32 %v2161_v9, %v2145_v12  ;;  %v1980_v27 = vmul.f32 %v4847_v31, %v5008_v24 }
 0x512   : > { %2553 = vbcast.lane.b32.xlu1 %v4325_v53, 291  ;;  %2549 = vbcast.lane.b32.xlu0 %v4328_v54, 291  ;;  %v2183_v38 = vadd.f32 %v2179_v23, %v2163_v50  ;;  %v2241_v33 = vmul.f32 %v5066_v8, %v4943_v45  ;;  %v5093_v45 = vld [vmem:[%s4149_s12 + $0x28] sm:$0xff]  ;;  %v2239_v23 = vmul.f32 %v5066_v8, %v4945_v61 }
 0x513   : > { %v1986_v39 = vadd.f32 %v1982_v21, %v1966_v42  ;;  %v1984_v13 = vadd.f32 %v1980_v27, %v1964_v34  ;;  %v2185_v0 = vadd.f32 %v2181_v6, %v2165_v30  ;;  %v2199_v42 = vmul.f32 %v5030_v7, %v4903_v58 }
 0x514   : > { %v5024_v18 = vpop.permute.xlu1 %1993  ;;  %v5026_v63 = vpop.permute.xlu0 %1989 }
 0x515   : > { %v2002_v31 = vmul.f32 %v4861_v35, %v5024_v18  ;;  %v2000_v55 = vmul.f32 %v4861_v35, %v5026_v63  ;;  %v2205_v12 = vadd.f32 %v2201_v40, %v2185_v0  ;;  %v2203_v30 = vadd.f32 %v2199_v42, %v2183_v38 }
 0x516   : > { %2573 = vbcast.lane.b32.xlu1 %v4343_v57, 291  ;;  %2569 = vbcast.lane.b32.xlu0 %v4338_v56, 291 }
 0x517   : > { %v2006_v11 = vadd.f32 %v2002_v31, %v1986_v39  ;;  %v2004_v17 = vadd.f32 %v2000_v55, %v1984_v13  ;;  %v2225_v27 = vadd.f32 %v2221_v37, %v2205_v12  ;;  %v2219_v39 = vmul.f32 %v5048_v20, %v4925_v43 }
 0x518   : > { %v5042_v2 = vpop.permute.xlu1 %2013  ;;  %v5044_v48 = vpop.permute.xlu0 %2009 }
 0x519   : > { %v2022_v35 = vmul.f32 %v4873_v3, %v5042_v2  ;;  %v2020_v25 = vmul.f32 %v4873_v3, %v5044_v48  ;;  %v2223_v0 = vadd.f32 %v2219_v39, %v2203_v30  ;;  %v2245_v55 = vadd.f32 %v2241_v33, %v2225_v27 }
 0x51a   : > { %2593 = vbcast.lane.b32.xlu1 %v4325_v53, 292  ;;  %2589 = vbcast.lane.b32.xlu0 %v4328_v54, 292 }
 0x51b   : > { %v2026_v4 = vadd.f32 %v2022_v35, %v2006_v11  ;;  %v2024_v9 = vadd.f32 %v2020_v25, %v2004_v17  ;;  %v2243_v12 = vadd.f32 %v2239_v23, %v2223_v0 }
 0x51c   : > { %v5060_v34 = vpop.permute.xlu1 %2033  ;;  %v5062_v21 = vpop.permute.xlu0 %2029 }
 0x51d   : > { %v2042_v3 = vmul.f32 %v4887_v44, %v5060_v34  ;;  %v2040_v58 = vmul.f32 %v4887_v44, %v5062_v21  ;;  %v5084_v44 = vrot.slane %v4950_v19, %v4546_v15 }
 0x51e   : > { %2613 = vbcast.lane.b32.xlu1 %v4343_v57, 292  ;;  %2609 = vbcast.lane.b32.xlu0 %v4338_v56, 292 }
 0x51f   : > { %v2046_v10 = vadd.f32 %v2042_v3, %v2026_v4  ;;  %v2044_v6 = vadd.f32 %v2040_v58, %v2024_v9  ;;  %v2261_v19 = vmul.f32 %v5084_v44, %v4966_v29  ;;  %v5109_v4 = vrot.slane %v5093_v45, %v4322_v52 }
 0x520   : > { %v5078_v13 = vpop.permute.xlu1 %2053  ;;  %v5080_v31 = vpop.permute.xlu0 %2049  ;;  %v2259_v42 = vmul.f32 %v5084_v44, %v4968_v59 }
 0x521   : > { %v2062_v50 = vmul.f32 %v4899_v47, %v5078_v13  ;;  %v2060_v43 = vmul.f32 %v4899_v47, %v5080_v31  ;;  %v2265_v25 = vadd.f32 %v2261_v19, %v2245_v55  ;;  %v2281_v37 = vmul.f32 %v5109_v4, %v4986_v22 }
 0x522   : > { %2633 = vbcast.lane.b32.xlu1 %v4325_v53, 293  ;;  %2629 = vbcast.lane.b32.xlu0 %v4328_v54, 293  ;;  %v2263_v27 = vadd.f32 %v2259_v42, %v2243_v12  ;;  %v2279_v39 = vmul.f32 %v5109_v4, %v4988_v26  ;;  %v5145_v55 = vrot.slane %v5093_v45, %v4429_v5 }
 0x523   : > { %v2066_v11 = vadd.f32 %v2062_v50, %v2046_v10  ;;  %v2064_v40 = vadd.f32 %v2060_v43, %v2044_v6  ;;  %v2285_v58 = vadd.f32 %v2281_v37, %v2265_v25  ;;  %v5127_v10 = vrot.slane %v5093_v45, %v4319_v51 }
 0x524   : > { %v5099_v17 = vpop.permute.xlu1 %2073  ;;  %v5101_v35 = vpop.permute.xlu0 %2069  ;;  %v2283_v0 = vadd.f32 %v2279_v39, %v2263_v27 }
 0x525   : > { %v2082_v47 = vmul.f32 %v4921_v28, %v5099_v17  ;;  %v2080_v38 = vmul.f32 %v4921_v28, %v5101_v35  ;;  %v2301_v33 = vmul.f32 %v5127_v10, %v5006_v14  ;;  %v2299_v43 = vmul.f32 %v5127_v10, %v5008_v24 }
 0x526   : > { %2653 = vbcast.lane.b32.xlu1 %v4343_v57, 293  ;;  %2649 = vbcast.lane.b32.xlu0 %v4338_v56, 293 }
 0x527   : > { %v2086_v61 = vadd.f32 %v2082_v47, %v2066_v11  ;;  %v2084_v29 = vadd.f32 %v2080_v38, %v2064_v40  ;;  %v2321_v11 = vmul.f32 %v5145_v55, %v5024_v18  ;;  %v2303_v40 = vadd.f32 %v2299_v43, %v2283_v0 }
 0x528   : > { %v5117_v9 = vpop.permute.xlu1 %2093  ;;  %v5119_v28 = vpop.permute.xlu0 %2089  ;;  %v5163_v47 = vrot.slane %v5093_v45, %v4454_v16  ;;  %v2319_v18 = vmul.f32 %v5145_v55, %v5026_v63  ;;  %v5207_v43 = vrot.slane %v5093_v45, %v4546_v15 }
 0x529   : > { %v2102_v3 = vmul.f32 %v4941_v60, %v5117_v9  ;;  %v2100_v30 = vmul.f32 %v4941_v60, %v5119_v28 }
 0x52a   : > { %2673 = vbcast.lane.b32.xlu1 %v4325_v53, 294  ;;  %2669 = vbcast.lane.b32.xlu0 %v4328_v54, 294  ;;  %v2305_v54 = vadd.f32 %v2301_v33, %v2285_v58  ;;  %v2341_v12 = vmul.f32 %v5163_v47, %v5042_v2  ;;  %v2323_v42 = vadd.f32 %v2319_v18, %v2303_v40 }
 0x52b   : > { %v2106_v59 = vadd.f32 %v2102_v3, %v2086_v61  ;;  %v2104_v22 = vadd.f32 %v2100_v30, %v2084_v29  ;;  %v5179_v3 = vrot.slane %v5093_v45, %v5619_v62  ;;  %v2339_v2 = vmul.f32 %v5163_v47, %v5044_v48 }
 0x52c   : > { %v5135_v6 = vpop.permute.xlu1 %2113  ;;  %v5137_v60 = vpop.permute.xlu0 %2109  ;;  %v5187_v58 = vrot.slane %v5093_v45, %v4500_v36 }
 0x52d   : > { %v2122_v50 = vmul.f32 %v4964_v32, %v5135_v6  ;;  %v2120_v53 = vmul.f32 %v4964_v32, %v5137_v60  ;;  %v2361_v27 = vmul.f32 %v5179_v3, %v5060_v34  ;;  %v2343_v33 = vadd.f32 %v2339_v2, %v2323_v42 }
 0x52e   : > { %2693 = vbcast.lane.b32.xlu1 %v4343_v57, 294  ;;  %2689 = vbcast.lane.b32.xlu0 %v4338_v56, 294  ;;  %v2325_v56 = vadd.f32 %v2321_v11, %v2305_v54  ;;  %v2381_v34 = vmul.f32 %v5187_v58, %v5078_v13  ;;  %v2359_v0 = vmul.f32 %v5179_v3, %v5062_v21 }
 0x52f   : > { %v2126_v26 = vadd.f32 %v2122_v50, %v2106_v59  ;;  %v2124_v14 = vadd.f32 %v2120_v53, %v2104_v22  ;;  %v5203_v54 = vrot.slane %v5093_v45, %v4523_v46  ;;  %v2379_v21 = vmul.f32 %v5187_v58, %v5080_v31 }
 0x530   : > { %v5153_v23 = vpop.permute.xlu1 %2133  ;;  %v5155_v32 = vpop.permute.xlu0 %2129  ;;  %v2345_v37 = vadd.f32 %v2341_v12, %v2325_v56 }
 0x531   : > { %v2142_v19 = vmul.f32 %v4982_v41, %v5153_v23  ;;  %v2140_v57 = vmul.f32 %v4982_v41, %v5155_v32  ;;  %v2401_v40 = vmul.f32 %v5203_v54, %v5099_v17  ;;  %v2421_v17 = vmul.f32 %v5207_v43, %v5117_v9 }
 0x532   : > { %v2365_v48 = vadd.f32 %v2361_v27, %v2345_v37 }
 0x533   : > { %v2146_v24 = vadd.f32 %v2142_v19, %v2126_v26  ;;  %v2144_v38 = vadd.f32 %v2140_v57, %v2124_v14  ;;  %v2363_v19 = vadd.f32 %v2359_v0, %v2343_v33 }
 0x534   : > { %v5169_v25 = vpop.permute.xlu1 %2153  ;;  %v5171_v61 = vpop.permute.xlu0 %2149  ;;  %v2385_v57 = vadd.f32 %v2381_v34, %v2365_v48 }
 0x535   : > { %v2162_v41 = vmul.f32 %v4996_v49, %v5169_v25  ;;  %v2160_v29 = vmul.f32 %v4996_v49, %v5171_v61 }
 0x536   : > { %v2405_v42 = vadd.f32 %v2401_v40, %v2385_v57 }
 0x537   : > { %v2166_v63 = vadd.f32 %v2162_v41, %v2146_v24  ;;  %v2164_v30 = vadd.f32 %v2160_v29, %v2144_v38  ;;  %v2399_v38 = vmul.f32 %v5203_v54, %v5101_v35  ;;  %v2383_v29 = vadd.f32 %v2379_v21, %v2363_v19 }
 0x538   : > { %v5189_v49 = vpop.permute.xlu1 %2173  ;;  %v5191_v59 = vpop.permute.xlu0 %2169  ;;  %v2419_v35 = vmul.f32 %v5207_v43, %v5119_v28  ;;  %v2425_v48 = vadd.f32 %v2421_v17, %v2405_v42 }
 0x539   : > { %v2182_v22 = vmul.f32 %v5012_v1, %v5189_v49  ;;  %v2180_v39 = vmul.f32 %v5012_v1, %v5191_v59  ;;  %v1325_v1 = vld [vmem:[%s4149_s12 + $0x30] sm:$0xff] }
 0x53a   : > { %v5219_v45 = vrot.slane %v1325_v1, %v4322_v52  ;;  %v5238_v33 = vrot.slane %v1325_v1, %v4454_v16 }
 0x53b   : > { %v2186_v50 = vadd.f32 %v2182_v22, %v2166_v63  ;;  %v2184_v53 = vadd.f32 %v2180_v39, %v2164_v30  ;;  %v2403_v30 = vadd.f32 %v2399_v38, %v2383_v29  ;;  %v5235_v22 = vrot.slane %v1325_v1, %v4429_v5 }
 0x53c   : > { %v2194_v26 = vpop.permute.xlu1 %2193  ;;  %v2190_v14 = vpop.permute.xlu0 %2189  ;;  %v2441_v2 = vmul.f32 %v5219_v45, %v5135_v6  ;;  %v2439_v27 = vmul.f32 %v5219_v45, %v5137_v60  ;;  %v2501_v38 = vmul.f32 %v5238_v33, %v5189_v49  ;;  %v5271_v49 = vrot.slane %v1325_v1, %v4546_v15 }
 0x53d   : > { %v2202_v11 = vmul.f32 %v5030_v7, %v2194_v26  ;;  %v2200_v13 = vmul.f32 %v5030_v7, %v2190_v14  ;;  %v5222_v7 = vrot.slane %v1325_v1, %v4319_v51  ;;  %v2423_v34 = vadd.f32 %v2419_v35, %v2403_v30 }
 0x53e   : > { %v2481_v19 = vmul.f32 %v5235_v22, %v5169_v25  ;;  %v2499_v25 = vmul.f32 %v5238_v33, %v5191_v59 }
 0x53f   : > { %v2206_v56 = vadd.f32 %v2202_v11, %v2186_v50  ;;  %v2204_v24 = vadd.f32 %v2200_v13, %v2184_v53  ;;  %v2461_v6 = vmul.f32 %v5222_v7, %v5153_v23  ;;  %v2459_v60 = vmul.f32 %v5222_v7, %v5155_v32 }
 0x540   : > { %v2214_v18 = vpop.permute.xlu1 %2213  ;;  %v2210_v12 = vpop.permute.xlu0 %2209  ;;  %v5247_v50 = vrot.slane %v1325_v1, %v5619_v62  ;;  %v2445_v11 = vadd.f32 %v2441_v2, %v2425_v48  ;;  %v2443_v13 = vadd.f32 %v2439_v27, %v2423_v34  ;;  %v5254_v23 = vrot.slane %v1325_v1, %v4500_v36 }
 0x541   : > { %v2222_v41 = vmul.f32 %v5048_v20, %v2214_v18  ;;  %v2220_v31 = vmul.f32 %v5048_v20, %v2210_v12  ;;  %v4061_v48 = vmov 1966171168  }
 0x542   : > { %v2521_v17 = vmul.f32 %v5247_v50, %v2194_v26  ;;  %v2519_v35 = vmul.f32 %v5247_v50, %v2190_v14  ;;  %v2541_v27 = vmul.f32 %v5254_v23, %v2214_v18  ;;  %v2718_v34 = vunpack.c.l.s4 %v4061_v48 }
 0x543   : > { %v2226_v37 = vadd.f32 %v2222_v41, %v2206_v56  ;;  %v2224_v63 = vadd.f32 %v2220_v31, %v2204_v24  ;;  %v2465_v56 = vadd.f32 %v2461_v6, %v2445_v11  ;;  %v2463_v24 = vadd.f32 %v2459_v60, %v2443_v13 }
 0x544   : > { %v2234_v20 = vpop.permute.xlu1 %2233  ;;  %v2230_v39 = vpop.permute.xlu0 %2229 }
 0x545   : > { %v2242_v9 = vmul.f32 %v5066_v8, %v2234_v20  ;;  %v2240_v28 = vmul.f32 %v5066_v8, %v2230_v39  ;;  %v2479_v8 = vmul.f32 %v5235_v22, %v5171_v61  ;;  %v5263_v61 = vrot.slane %v1325_v1, %v4523_v46 }
 0x546   : > { %v2485_v29 = vadd.f32 %v2481_v19, %v2465_v56 }
 0x547   : > { %v2246_v53 = vadd.f32 %v2242_v9, %v2226_v37  ;;  %v2244_v0 = vadd.f32 %v2240_v28, %v2224_v63  ;;  %v2483_v42 = vadd.f32 %v2479_v8, %v2463_v24  ;;  %v2539_v9 = vmul.f32 %v5254_v23, %v2210_v12 }
 0x548   : > { %v2254_v57 = vpop.permute.xlu1 %2253  ;;  %v2250_v21 = vpop.permute.xlu0 %2249  ;;  %v2505_v30 = vadd.f32 %v2501_v38, %v2485_v29  ;;  %v2561_v6 = vmul.f32 %v5263_v61, %v2234_v20 }
 0x549   : > { %v2262_v32 = vmul.f32 %v5084_v44, %v2254_v57  ;;  %v2260_v40 = vmul.f32 %v5084_v44, %v2250_v21  ;;  %v5268_v44 = vld [vmem:[%s4149_s12 + $0x38] sm:$0x3f]  ;;  %v2503_v2 = vadd.f32 %v2499_v25, %v2483_v42  ;;  %v2581_v19 = vmul.f32 %v5271_v49, %v2254_v57 }
 0x54a   : > { %v5279_v26 = vrot.slane %v5268_v44, %v4322_v52  ;;  %v2525_v15 = vadd.f32 %v2521_v17, %v2505_v30  ;;  %v5285_v18 = vrot.slane %v5268_v44, %v4319_v51  ;;  %v2579_v8 = vmul.f32 %v5271_v49, %v2250_v21 }
 0x54b   : > { %v2266_v41 = vadd.f32 %v2262_v32, %v2246_v53  ;;  %v2264_v31 = vadd.f32 %v2260_v40, %v2244_v0  ;;  %v2523_v1 = vadd.f32 %v2519_v35, %v2503_v2  ;;  %v2719_v40 = vunpack.c.0.s8 %v2718_v34 }
 0x54c   : > { %v2274_v37 = vpop.permute.xlu1 %2273  ;;  %v2270_v63 = vpop.permute.xlu0 %2269  ;;  %v2545_v11 = vadd.f32 %v2541_v27, %v2525_v15  ;;  %v5301_v29 = vrot.slane %v5268_v44, %v4454_v16  ;;  %v5312_v34 = vrot.slane %v5268_v44, %v5619_v62 }
 0x54d   : > { %v2282_v59 = vmul.f32 %v5109_v4, %v2274_v37  ;;  %v2280_v46 = vmul.f32 %v5109_v4, %v2270_v63  ;;  %v2559_v4 = vmul.f32 %v5263_v61, %v2230_v39  ;;  %v2543_v13 = vadd.f32 %v2539_v9, %v2523_v1 }
 0x54e   : > { %v5293_v39 = vrot.slane %v5268_v44, %v4429_v5  ;;  %v2565_v56 = vadd.f32 %v2561_v6, %v2545_v11  ;;  %v2601_v38 = vmul.f32 %v5279_v26, %v2274_v37  ;;  %v2599_v25 = vmul.f32 %v5279_v26, %v2270_v63 }
 0x54f   : > { %v2286_v14 = vadd.f32 %v2282_v59, %v2266_v41  ;;  %v2284_v28 = vadd.f32 %v2280_v46, %v2264_v31  ;;  %v2563_v24 = vadd.f32 %v2559_v4, %v2543_v13  ;;  %v3663_v31 = vld.sshfl [vmem:[#allocation4] sm:$0x11 pattern:$0x75316420]  ;;  %v5641_v46 = vld [vmem:[#allocation33_spill] sm:$0xff] }
 0x550   : > { %v2294_v60 = vpop.permute.xlu1 %2293  ;;  %v2290_v53 = vpop.permute.xlu0 %2289  ;;  %v2585_v5 = vadd.f32 %v2581_v19, %v2565_v56  ;;  %v2716_v63 = vcombine.high %v3663_v31, %v3663_v31  ;;  %v2722_v30 = vsub.s32 %v2719_v40, %v5641_v46 }
 0x551   : > { %v2302_v12 = vmul.f32 %v5127_v10, %v2294_v60  ;;  %v2300_v0 = vmul.f32 %v5127_v10, %v2290_v53  ;;  %v2583_v42 = vadd.f32 %v2579_v8, %v2563_v24  ;;  %v2621_v17 = vmul.f32 %v5285_v18, %v2294_v60 }
 0x552   : > { %v2619_v35 = vmul.f32 %v5285_v18, %v2290_v53  ;;  %v2605_v2 = vadd.f32 %v2601_v38, %v2585_v5  ;;  %v2730_v62 = vrot.slane %v2716_v63, %v2722_v30  ;;  %v2723_v19 = vrot.slane %v3663_v31, %v2722_v30 }
 0x553   : > { %v2306_v32 = vadd.f32 %v2302_v12, %v2286_v14  ;;  %v2304_v20 = vadd.f32 %v2300_v0, %v2284_v28  ;;  %v2603_v27 = vadd.f32 %v2599_v25, %v2583_v42  ;;  %v5318_v12 = vrot.slane %v5268_v44, %v4500_v36  ;;  %v5326_v44 = vld [vmem:[%s1002_s15 + $0x8] sm:$0xff]   ;;  %v5330_v25 = vld [vmem:[%s1002_s15] sm:$0xff]   ;;  %s5646_s15 = sld [smem:[#allocation23_spill]] (!%p3666_p10) }
 0x554   : > { %v2314_v10 = vpop.permute.xlu1 %2313  ;;  %v2310_v41 = vpop.permute.xlu0 %2309  ;;  %v2625_v15 = vadd.f32 %v2621_v17, %v2605_v2  ;;  %v5333_v31 = vrot.slane %v2730_v62, %v4322_v52 }
 0x555   : > { %v2322_v57 = vmul.f32 %v5145_v55, %v2314_v10  ;;  %v2320_v21 = vmul.f32 %v5145_v55, %v2310_v41  ;;  %v2641_v9 = vmul.f32 %v5293_v39, %v2314_v10  ;;  %v2639_v55 = vmul.f32 %v5293_v39, %v2310_v41 }
 0x556   : > { %v2623_v1 = vadd.f32 %v2619_v35, %v2603_v27 }
 0x557   : > { %v2326_v37 = vadd.f32 %v2322_v57, %v2306_v32  ;;  %v2324_v59 = vadd.f32 %v2320_v21, %v2304_v20  ;;  %v2645_v0 = vadd.f32 %v2641_v9, %v2625_v15 }
 0x558   : > { %v2334_v14 = vpop.permute.xlu1 %2333  ;;  %v2330_v16 = vpop.permute.xlu0 %2329 }
 0x559   : > { %v2342_v28 = vmul.f32 %v5163_v47, %v2334_v14  ;;  %v2340_v48 = vmul.f32 %v5163_v47, %v2330_v16  ;;  %v2661_v6 = vmul.f32 %v5301_v29, %v2334_v14  ;;  %v2659_v4 = vmul.f32 %v5301_v29, %v2330_v16 }
 0x55a   : > { %v2643_v47 = vadd.f32 %v2639_v55, %v2623_v1 }
 0x55b   : > { %v2346_v60 = vadd.f32 %v2342_v28, %v2326_v37  ;;  %v2344_v53 = vadd.f32 %v2340_v48, %v2324_v59  ;;  %v2665_v56 = vadd.f32 %v2661_v6, %v2645_v0  ;;  %v3699_v37 = vunpack.c.l.bf16 %v5326_v44 }
 0x55c   : > { %v2354_v11 = vpop.permute.xlu1 %2353  ;;  %v2350_v13 = vpop.permute.xlu0 %2349  ;;  %v2663_v24 = vadd.f32 %v2659_v4, %v2643_v47  ;;  %v3695_v59 = vunpack.c.l.bf16 %v5330_v25 }
 0x55d   : > { %v2362_v8 = vmul.f32 %v5179_v3, %v2354_v11  ;;  %v2681_v32 = vmul.f32 %v5312_v34, %v2354_v11  ;;  %v2360_v20 = vmul.f32 %v5179_v3, %v2350_v13  ;;  %v2679_v40 = vmul.f32 %v5312_v34, %v2350_v13 }
 0x55e   : > { %v5336_v3 = vrot.slane %v2723_v19, %v4322_v52 }
 0x55f   : > { %v2366_v38 = vadd.f32 %v2362_v8, %v2346_v60  ;;  %v2364_v36 = vadd.f32 %v2360_v20, %v2344_v53  ;;  %v2685_v10 = vadd.f32 %v2681_v32, %v2665_v56  ;;  %v2683_v41 = vadd.f32 %v2679_v40, %v2663_v24 }
 0x560   : > { %v2374_v57 = vpop.permute.xlu1 %2373  ;;  %v2370_v21 = vpop.permute.xlu0 %2369 }
 0x561   : > { %v2382_v5 = vmul.f32 %v5187_v58, %v2374_v57  ;;  %v2701_v42 = vmul.f32 %v5318_v12, %v2374_v57  ;;  %v2380_v17 = vmul.f32 %v5187_v58, %v2370_v21  ;;  %v2699_v35 = vmul.f32 %v5318_v12, %v2370_v21  ;;  %v5357_v21 = vld [vmem:[%s4154_s20] ss:$0 sm:$0xff] }
 0x563   : > { %v2386_v63 = vadd.f32 %v2382_v5, %v2366_v38  ;;  %v2705_v30 = vadd.f32 %v2701_v42, %v2685_v10  ;;  %v2384_v2 = vadd.f32 %v2380_v17, %v2364_v36  ;;  %v2703_v27 = vadd.f32 %v2699_v35, %v2683_v41 }
 0x564   : > { %v2394_v9 = vpop.permute.xlu1 %2393  ;;  %v2390_v55 = vpop.permute.xlu0 %2389 }
 0x565   : > { %v2743_v14 = vadd.f32 %v5333_v31, %v2705_v30  ;;  %v2741_v16 = vadd.f32 %v5336_v3, %v2703_v27  ;;  %v2402_v28 = vmul.f32 %v5203_v54, %v2394_v9  ;;  %v2400_v58 = vmul.f32 %v5203_v54, %v2390_v55 }
 0x567   : > { %v2755_v48 = vadd.f32 %v3699_v37, %v2743_v14  ;;  %v2753_v15 = vadd.f32 %v3695_v59, %v2741_v16  ;;  %v2406_v1 = vadd.f32 %v2402_v28, %v2386_v63  ;;  %v2404_v6 = vadd.f32 %v2400_v58, %v2384_v2 }
 0x568   : > { %v2414_v4 = vpop.permute.xlu1 %2413  ;;  %v2410_v60 = vpop.permute.xlu0 %2409 }
 0x569   : > { %3903 = vtanh.f32 %v2755_v48  ;;  %v2422_v53 = vmul.f32 %v5207_v43, %v2414_v4  ;;  %v2420_v0 = vmul.f32 %v5207_v43, %v2410_v60 }
 0x56a   : > { %3905 = vtanh.f32 %v2753_v15 }
 0x56b   : > { %v2426_v47 = vadd.f32 %v2422_v53, %v2406_v1  ;;  %v2424_v11 = vadd.f32 %v2420_v0, %v2404_v6 }
 0x56c   : > { %v2434_v13 = vpop.permute.xlu1 %2433  ;;  %v2430_v62 = vpop.permute.xlu0 %2429 }
 0x56d   : > { %v2442_v19 = vmul.f32 %v5219_v45, %v2434_v13  ;;  %v2440_v54 = vmul.f32 %v5219_v45, %v2430_v62 }
 0x56f   : > { %v2446_v8 = vadd.f32 %v2442_v19, %v2426_v47  ;;  %v2444_v32 = vadd.f32 %v2440_v54, %v2424_v11 }
 0x570   : > { %v2454_v20 = vpop.permute.xlu1 %2453  ;;  %v2450_v40 = vpop.permute.xlu0 %2449 }
 0x571   : > { %v2462_v56 = vmul.f32 %v5222_v7, %v2454_v20  ;;  %v2460_v24 = vmul.f32 %v5222_v7, %v2450_v40 }
 0x573   : > { %v2466_v38 = vadd.f32 %v2462_v56, %v2446_v8  ;;  %v2464_v43 = vadd.f32 %v2460_v24, %v2444_v32 }
 0x574   : > { %v2474_v36 = vpop.permute.xlu1 %2473  ;;  %v2470_v10 = vpop.permute.xlu0 %2469 }
 0x575   : > { %v2482_v41 = vmul.f32 %v5235_v22, %v2474_v36  ;;  %v2480_v57 = vmul.f32 %v5235_v22, %v2470_v10 }
 0x576   : > { %v3904_v5 = vpop.eup %3903 }
 0x577   : > { %v3906_v45 = vpop.eup %3905  ;;  %v2486_v42 = vadd.f32 %v2482_v41, %v2466_v38  ;;  %v2484_v17 = vadd.f32 %v2480_v57, %v2464_v43  ;;  %v2770_v2 = vmul.f32 %v3904_v5, %v5357_v21 }
 0x578   : > { %v2494_v35 = vpop.permute.xlu1 %2493  ;;  %v2490_v37 = vpop.permute.xlu0 %2489  ;;  %v2768_v59 = vmul.f32 %v3906_v45, %v5357_v21 }
 0x579   : > { %v2502_v7 = vmul.f32 %v5238_v33, %v2494_v35  ;;  %v2500_v63 = vmul.f32 %v5238_v33, %v2490_v37  ;;  %v2779_v28 = vsel %vm2772_vm6, %v2770_v2, 0.0 }
 0x57a   : > { %v2773_v30 = vsel %vm2772_vm6, %v2768_v59, 0.0 }
 0x57b   : > { %v2506_v22 = vadd.f32 %v2502_v7, %v2486_v42  ;;  %v2504_v27 = vadd.f32 %v2500_v63, %v2484_v17  ;;  %2774 = vadd.xlane.f32.xlu0 %v2773_v30 }
 0x57c   : > { %v2514_v9 = vpop.permute.xlu1 %2513  ;;  %v2510_v55 = vpop.permute.xlu0 %2509 }
 0x57d   : > { %v2522_v14 = vmul.f32 %v5247_v50, %v2514_v9  ;;  %v2520_v16 = vmul.f32 %v5247_v50, %v2510_v55 }
 0x57f   : > { %v2526_v58 = vadd.f32 %v2522_v14, %v2506_v22  ;;  %v2524_v48 = vadd.f32 %v2520_v16, %v2504_v27  ;;  %2780 = vadd.xlane.f32.xlu0 %v2779_v28 }
 0x580   : > { %v2534_v15 = vpop.permute.xlu1 %2533  ;;  %v2530_v33 = vpop.permute.xlu0 %2529 }
 0x581   : > { %v2542_v1 = vmul.f32 %v5254_v23, %v2534_v15  ;;  %v2540_v6 = vmul.f32 %v5254_v23, %v2530_v33 }
 0x583   : > { %v2546_v4 = vadd.f32 %v2542_v1, %v2526_v58  ;;  %v2544_v60 = vadd.f32 %v2540_v6, %v2524_v48  ;;  %v3700_v48 = vunpack.c.h.bf16 %v5326_v44 }
 0x584   : > { %v2554_v53 = vpop.permute.xlu1 %2553  ;;  %v2550_v0 = vpop.permute.xlu0 %2549 }
 0x585   : > { %v2562_v47 = vmul.f32 %v5263_v61, %v2554_v53  ;;  %v2560_v11 = vmul.f32 %v5263_v61, %v2550_v0 }
 0x587   : > { %v2566_v50 = vadd.f32 %v2562_v47, %v2546_v4  ;;  %v2564_v13 = vadd.f32 %v2560_v11, %v2544_v60  ;;  %v4062_v47 = vmov 0  }
 0x588   : > { %v2574_v62 = vpop.permute.xlu1 %2573  ;;  %v2570_v19 = vpop.permute.xlu0 %2569  ;;  %3902 = vset.pattern.permute.xlu1 %v4062_v47  ;;  %3901 = vset.pattern.permute.xlu0 %v4062_v47 }
 0x589   : > { %v2582_v54 = vmul.f32 %v5271_v49, %v2574_v62  ;;  %v2580_v8 = vmul.f32 %v5271_v49, %v2570_v19 }
 0x58b   : > { %v2586_v32 = vadd.f32 %v2582_v54, %v2566_v50  ;;  %v2584_v20 = vadd.f32 %v2580_v8, %v2564_v13 }
 0x58c   : > { %v2594_v40 = vpop.permute.xlu1 %2593  ;;  %v2590_v23 = vpop.permute.xlu0 %2589 }
 0x58d   : > { %v2602_v56 = vmul.f32 %v5279_v26, %v2594_v40  ;;  %v2600_v24 = vmul.f32 %v5279_v26, %v2590_v23 }
 0x58f   : > { %v2606_v38 = vadd.f32 %v2602_v56, %v2586_v32  ;;  %v2604_v43 = vadd.f32 %v2600_v24, %v2584_v20  ;;  %v5642_v24 = vlaneseq }
 0x590   : > { %v2614_v36 = vpop.permute.xlu1 %2613  ;;  %v2610_v61 = vpop.permute.xlu0 %2609 }
 0x591   : > { %v2622_v10 = vmul.f32 %v5285_v18, %v2614_v36  ;;  %v2620_v41 = vmul.f32 %v5285_v18, %v2610_v61 }
 0x593   : > { %v2626_v57 = vadd.f32 %v2622_v10, %v2606_v38  ;;  %v2624_v5 = vadd.f32 %v2620_v41, %v2604_v43  ;;  %v2834_v38 = vand.u32 127, %v5642_v24 }
 0x594   : > { %v2634_v45 = vpop.permute.xlu1 %2633  ;;  %v2630_v49 = vpop.permute.xlu0 %2629 }
 0x595   : > { %v2642_v42 = vmul.f32 %v5293_v39, %v2634_v45  ;;  %v2640_v17 = vmul.f32 %v5293_v39, %v2630_v49  ;;  %v2839_v43 = vadd.s32 4294967288, %v2834_v38  ;;  %v5403_v10 = vsub.s32 %v2834_v38, %v5641_v46 }
 0x597   : > { %v2646_v35 = vadd.f32 %v2642_v42, %v2626_v57  ;;  %v2644_v37 = vadd.f32 %v2640_v17, %v2624_v5  ;;  %v5400_v61 = vsub.s32 %v2839_v43, %v5641_v46 }
 0x598   : > { %v2654_v59 = vpop.permute.xlu1 %2653  ;;  %v2650_v26 = vpop.permute.xlu0 %2649 }
 0x599   : > { %v2662_v7 = vmul.f32 %v5301_v29, %v2654_v59  ;;  %v2660_v63 = vmul.f32 %v5301_v29, %v2650_v26  ;;  %v3696_v29 = vunpack.c.h.bf16 %v5330_v25  ;;  %v2862_v26 = vld [vmem:[#allocation5] sm:$0x3] }
 0x59b   : > { %v2666_v30 = vadd.f32 %v2662_v7, %v2646_v35  ;;  %v2664_v2 = vadd.f32 %v2660_v63, %v2644_v37 }
 0x59c   : > { %v2674_v22 = vpop.permute.xlu1 %2673  ;;  %v2670_v18 = vpop.permute.xlu0 %2669 }
 0x59d   : > { %v2682_v27 = vmul.f32 %v5312_v34, %v2674_v22  ;;  %v2680_v9 = vmul.f32 %v5312_v34, %v2670_v18 }
 0x59f   : > { %v2686_v55 = vadd.f32 %v2682_v27, %v2666_v30  ;;  %v2684_v14 = vadd.f32 %v2680_v9, %v2664_v2 }
 0x5a0   : > { %v2694_v16 = vpop.permute.xlu1 %2693  ;;  %v2690_v39 = vpop.permute.xlu0 %2689 }
 0x5a1   : > { %v2702_v28 = vmul.f32 %v5318_v12, %v2694_v16  ;;  %v2700_v58 = vmul.f32 %v5318_v12, %v2690_v39 }
 0x5a3   : > { %v2706_v15 = vadd.f32 %v2702_v28, %v2686_v55  ;;  %v2704_v33 = vadd.f32 %v2700_v58, %v2684_v14 }
 0x5a5   : > { %v2744_v1 = vadd.f32 %v5333_v31, %v2706_v15  ;;  %v2742_v34 = vadd.f32 %v5336_v3, %v2704_v33  ;;  %v2785_v31 = vld [vmem:[%s1108_s11] sm:$0x3]  ;;  %s5645_s11 = sld [smem:[#allocation18_spill]] (!%p3666_p10) }
 0x5a6   : > { %v2790_v3 = vrot.slane %v2785_v31, %v4322_v52  ;;  %v2801_v11 = vrot.slane %v2785_v31, %v4319_v51 }
 0x5a7   : > { %v2756_v6 = vadd.f32 %v3700_v48, %v2744_v1  ;;  %v2754_v4 = vadd.f32 %v3696_v29, %v2742_v34  ;;  %v3702_v1 = vld [vmem:[%s1009_s16] sm:$0xff]  }
 0x5a8   : > { %v3703_v34 = vunpack.c.l.bf16 %v3702_v1 }
 0x5a9   : > { %3907 = vtanh.f32 %v2756_v6 }
 0x5aa   : > { %3909 = vtanh.f32 %v2754_v4  ;;  %v3704_v4 = vunpack.c.h.bf16 %v3702_v1 }
 0x5b6   : > { %v3908_v60 = vpop.eup %3907 }
 0x5b7   : > { %v3910_v53 = vpop.eup %3909  ;;  %v2771_v12 = vmul.f32 %v3908_v60, %v5357_v21 }
 0x5b8   : > { %v2769_v44 = vmul.f32 %v3910_v53, %v5357_v21 }
 0x5b9   : > { %v2782_v0 = vsel %vm2772_vm6, %v2771_v12, 0.0  ;;  %v3710_v12 = vld [vmem:[%s1009_s16 + $0x8] sm:$0xff]   ;;  %s5647_s16 = sld [smem:[#allocation17_spill]] (!%p3666_p10) }
 0x5ba   : > { %2783 = vadd.xlane.f32.xlu0 %v2782_v0  ;;  %v2776_v25 = vsel %vm2772_vm6, %v2769_v44, 0.0  ;;  %v3707_v31 = vunpack.c.l.bf16 %v3710_v12 }
 0x5bb   : > { %2777 = vadd.xlane.f32.xlu1 %v2776_v25 }
 0x5cc   : > { %2792 = vbcast.lane.b32.xlu1 %v2790_v3, 256 }
 0x5d0   : > { %2796 = vbcast.lane.b32.xlu0 %v2790_v3, 264  ;;  %2803 = vbcast.lane.b32.xlu1 %v2801_v11, 256 }
 0x5d4   : > { %2807 = vbcast.lane.b32.xlu1 %v2801_v11, 264  ;;  %v3708_v11 = vunpack.c.h.bf16 %v3710_v12 }
 0x604   : > { %v2775_v21 = vpop.xlane.xlu0 %2774 }
 0x608   : > { %v2781_v50 = vpop.xlane.xlu0 %2780 }
 0x643   : > { %v2784_v13 = vpop.xlane.xlu0 %2783 }
 0x644   : > { %v2778_v62 = vpop.xlane.xlu1 %2777 }
 0x647   : > { %v2797_v19 = vpop.permute.xlu0 %2796 }
 0x648   : > { %v2793_v54 = vpop.permute.xlu1 %2792  ;;  %v2814_v8 = vadd.f32 %v2797_v19, %v2778_v62 }
 0x649   : > { %v2813_v32 = vadd.f32 %v2793_v54, %v2775_v21 }
 0x64a   : > { %2825 = vperm.xlu1 %3902, %v2814_v8  }
 0x64b   : > { %2822 = vperm.xlu0 %3901, %v2813_v32  }
 0x64c   : > { %v2804_v20 = vpop.permute.xlu1 %2803 }
 0x64d   : > { %v2815_v40 = vadd.f32 %v2804_v20, %v2781_v50 }
 0x64f   : > { %2828 = vperm.xlu1 %3902, %v2815_v40  }
 0x650   : > { %v2808_v23 = vpop.permute.xlu1 %2807 }
 0x651   : > { %v2816_v56 = vadd.f32 %v2808_v23, %v2784_v13 }
 0x653   : > { %2831 = vperm.xlu0 %3901, %v2816_v56  }
 0x6c5   : > { %v2826_v36 = vpop.permute.xlu1 %2825 }
 0x6c6   : > { %v2823_v41 = vpop.permute.xlu0 %2822  ;;  %v2843_v5 = vrot.slane %v2826_v36, %v5400_v61 }
 0x6c7   : > { %v2838_v45 = vrot.slane %v2823_v41, %v5403_v10 }
 0x6c9   : > { %v2845_v35 = vsel %vm2844_vm7, %v2843_v5, %v2838_v45 }
 0x6ca   : > { %v2829_v57 = vpop.permute.xlu1 %2828 }
 0x6cb   : > { %v2849_v42 = vrot.slane %v2829_v57, %v5403_v10 }
 0x6ce   : > { %v2832_v49 = vpop.permute.xlu0 %2831 }
 0x6cf   : > { %v2853_v17 = vrot.slane %v2832_v49, %v5400_v61 }
 0x6d1   : > { %v2854_v46 = vsel %vm2844_vm7, %v2853_v17, %v2849_v42  ;;  %v2940_v42 = vld [vmem:[#allocation7] sm:$0x3] }
 0x6d2   : > { %v2856_v37 = vsel %vm2855_vm8, %v2854_v46, %v2845_v35 }
 0x6d3   : > { %v2863_v59 = vsel %vm2860_vm9, %v2856_v37, -inf  ;;  %2861 = vst.msk [vmem:[%s2859_s26] sm:$0x3] %vm2860_vm9, %v2856_v37  ;;  %s5650_s26 = sld [smem:[#allocation25_spill]] (!%p3666_p10) }
 0x6d4   : > { %2864 = vmax.xlane.f32.xlu1 %v2863_v59 }
 0x75d   : > { %v2865_v7 = vpop.xlane.xlu1 %2864 }
 0x75e   : > { %v2866_v63 = vmax.f32 %v2862_v26, %v2865_v7 }
 0x760   : > { %v2867_v30 = vsub.f32 %v2862_v26, %v2866_v63  ;;  %2989 = vst.msk [vmem:[#allocation5] sm:$0x3] %vm2938_vm10, %v2866_v63  ;;  %2872 = vperm.xlu0 %3901, %v2866_v63   ;;  %v2896_v63 = vld [vmem:[#allocation6] sm:$0x3] }
 0x762   : > { %v2868_v2 = vmul.f32 1.442695, %v2867_v30 }
 0x764   : > { %3911 = vpow2.f32 %v2868_v2 }
 0x771   : > { %v5416_v22 = vpop.eup %3911 }
 0x772   : > { %2943 = vperm.xlu1 %3902, %v5416_v22   ;;  %v2897_v30 = vmul.f32 %v5416_v22, %v2896_v63 }
 0x7db   : > { %v2873_v18 = vpop.permute.xlu0 %2872 }
 0x7dc   : > { %v2877_v27 = vrot.slane %v2873_v18, %v4322_v52  ;;  %v2881_v9 = vrot.slane %v2873_v18, %v4319_v51 }
 0x7de   : > { %v2884_v55 = vsub.f32 %v2813_v32, %v2877_v27  ;;  %v2885_v14 = vsub.f32 %v2814_v8, %v2877_v27  ;;  %v2886_v39 = vsub.f32 %v2815_v40, %v2881_v9  ;;  %v2887_v58 = vsub.f32 %v2816_v56, %v2881_v9 }
 0x7e0   : > { %v2888_v16 = vmul.f32 1.442695, %v2884_v55  ;;  %v2890_v28 = vmul.f32 1.442695, %v2885_v14  ;;  %v2892_v48 = vmul.f32 1.442695, %v2886_v39 }
 0x7e1   : > { %v2894_v15 = vmul.f32 1.442695, %v2887_v58 }
 0x7e2   : > { %3913 = vpow2.f32 %v2888_v16 }
 0x7e3   : > { %3915 = vpow2.f32 %v2890_v28 }
 0x7e4   : > { %3917 = vpow2.f32 %v2892_v48 }
 0x7e5   : > { %3919 = vpow2.f32 %v2894_v15 }
 0x7ed   : > { %v2944_v17 = vpop.permute.xlu1 %2943 }
 0x7ee   : > { %v2946_v59 = vmul.f32 %v2944_v17, %v2940_v42 }
 0x7ef   : > { %v3914_v29 = vpop.eup %3913 }
 0x7f0   : > { %2903 = vperm.xlu0 %3901, %v3914_v29   ;;  %v3916_v33 = vpop.eup %3915 }
 0x7f1   : > { %v3918_v52 = vpop.eup %3917 }
 0x7f2   : > { %v3920_v51 = vpop.eup %3919 }
 0x7f4   : > { %2906 = vperm.xlu0 %3901, %v3916_v33  }
 0x7f8   : > { %2909 = vperm.xlu0 %3901, %v3918_v52  }
 0x7fc   : > { %2912 = vperm.xlu0 %3901, %v3920_v51  }
 0x86b   : > { %v2904_v6 = vpop.permute.xlu0 %2903 }
 0x86c   : > { %v2959_v60 = vmul.f32 %v3703_v34, %v2904_v6  ;;  %v2917_v54 = vrot.slane %v2904_v6, %v5403_v10 }
 0x86e   : > { %v2964_v0 = vsel %vm2963_vm11, %v2959_v60, 0.0 }
 0x86f   : > { %v2907_v53 = vpop.permute.xlu0 %2906 }
 0x870   : > { %v2960_v44 = vmul.f32 %v3704_v4, %v2907_v53  ;;  %v2921_v50 = vrot.slane %v2907_v53, %v5400_v61 }
 0x872   : > { %v2965_v25 = vsel %vm2963_vm11, %v2960_v44, 0.0  ;;  %v2922_v56 = vsel %vm2844_vm7, %v2921_v50, %v2917_v54 }
 0x873   : > { %v2966_v3 = vadd.f32 %v2965_v25, %v2964_v0  ;;  %v2910_v47 = vpop.permute.xlu0 %2909 }
 0x874   : > { %v2961_v13 = vmul.f32 %v3707_v31, %v2910_v47  ;;  %v2926_v8 = vrot.slane %v2910_v47, %v5403_v10 }
 0x875   : > { %v2967_v21 = vrot.slane %v2966_v3, 4 }
 0x876   : > { %v2973_v40 = vsel %vm2963_vm11, %v2961_v13, 0.0 }
 0x877   : > { %v2968_v62 = vadd.f32 %v2967_v21, %v2966_v3  ;;  %v2913_v19 = vpop.permute.xlu0 %2912 }
 0x878   : > { %v2930_v32 = vrot.slane %v2913_v19, %v5400_v61  ;;  %v2962_v20 = vmul.f32 %v3708_v11, %v2913_v19 }
 0x879   : > { %v2969_v38 = vrot.slane %v2968_v62, 2 }
 0x87a   : > { %v2974_v23 = vsel %vm2963_vm11, %v2962_v20, 0.0  ;;  %v2931_v24 = vsel %vm2844_vm7, %v2930_v32, %v2926_v8 }
 0x87b   : > { %v2975_v43 = vadd.f32 %v2974_v23, %v2973_v40  ;;  %v2932_v36 = vsel %vm2855_vm8, %v2931_v24, %v2922_v56  ;;  %v2970_v10 = vadd.f32 %v2969_v38, %v2968_v62 }
 0x87c   : > { %v2934_v41 = vsel %vm2860_vm9, %v2932_v36, 0.0 }
 0x87d   : > { %v2976_v57 = vrot.slane %v2975_v43, 4  ;;  %2935 = vadd.xlane.f32.xlu0 %v2934_v41  ;;  %v2971_v45 = vrot.slane %v2970_v10, 1 }
 0x87f   : > { %v2977_v5 = vadd.f32 %v2976_v57, %v2975_v43  ;;  %v2972_v46 = vadd.f32 %v2971_v45, %v2970_v10 }
 0x881   : > { %v2978_v61 = vrot.slane %v2977_v5, 2 }
 0x883   : > { %v2979_v49 = vadd.f32 %v2978_v61, %v2977_v5 }
 0x885   : > { %v2980_v35 = vrot.slane %v2979_v49, 1 }
 0x887   : > { %v2981_v37 = vadd.f32 %v2980_v35, %v2979_v49 }
 0x889   : > { %v2984_v26 = vsel %vm2855_vm8, %v2981_v37, %v2972_v46 }
 0x88a   : > { %v2986_v7 = vadd.f32 %v2984_v26, %v2946_v59 }
 0x88c   : > { %2988 = vst.msk [vmem:[#allocation7] sm:$0x3] %vm2987_vm12, %v2986_v7 }
 0x905   : > { %2993 = sbr.rel (%p3666_p10) target bundleno = 3365 (0xd25), region = 206 }
 0x906   : > { %v2936_v2 = vpop.xlane.xlu0 %2935 }
 0x907   : > { %v2937_v18 = vadd.f32 %v2936_v2, %v2897_v30 }
 0x909   : > { %2939 = vst.msk [vmem:[#allocation6] sm:$0x3] %vm2938_vm10, %v2937_v18 }
 0x90a   : > { %v4063_v9 = vmov 0   ;;  %v4064_v55 = vmov 0.0   ;;  %v3922_v14 = vld [vmem:[%s4159_s27 + $0x8] sm:$0xff]   ;;  %v3924_v16 = vld [vmem:[%s4159_s27] sm:$0xff]   ;;  %vm4065_vm13 = vmmov 0   ;;  %vm3225_vm14 = vcmask 1041408  }
 0x90b   : > { %3921 = vset.pattern.permute.xlu0 %v4063_v9  ;;  %3767 = vmatprep.subr.bf16.mxu1 %v4064_v55  ;;  %v3923_v22 = vld [vmem:[%s4164_s4 + $0x8] sm:$0xff]   ;;  %v3925_v39 = vld [vmem:[%s4164_s4] sm:$0xff]   ;;  %vm3221_vm15 = vcmask 31744   ;;  %vm3424_vm0 = vcmask 66560  }
 0x90c   : > { %3759 = vmatprep.subr.bf16.mxu0 %v4064_v55  ;;  %3768 = vmatpush3.bf16.msra.mxu1 %v3922_v14  ;;  %v3003_v28 = vld [vmem:[#allocation2] sm:$0x3]  ;;  %v2996_v1 = vld [vmem:[#allocation7] sm:$0x3]  ;;  %v3006_v2 = vld [vmem:[#allocation5] sm:$0x3] }
 0x90d   : > { %3760 = vmatpush3.bf16.msra.mxu0 %v3923_v22  ;;  %3769 = vmatprep.subr.bf16.mxu1 %v4064_v55  ;;  %v3028_v58 = vpack.c.bf16 %v3003_v28, %v3003_v28  ;;  %3426 = vst.msk [vmem:[#allocation11] sm:$0x3] %vm2987_vm12, %v3003_v28  ;;  %v3220_v15 = vld [vmem:[%s5643_s10] sm:$0x3]  ;;  %v3926_v4 = vld [vmem:[%s5646_s15 + $0x8] sm:$0xff]   ;;  %s5651_s10 = smov %s5650_s26 }
 0x90e   : > { %3761 = vmatprep.subr.bf16.mxu0 %v4064_v55  ;;  %3771 = vmatprep.mubr.msk.bf16.mxu1 %vm4065_vm13, %v4064_v55  ;;  %v3227_v29 = vsel %vm3225_vm14, %v3220_v15, 0  ;;  %v3218_v33 = vld [vmem:[%s5644_s2] sm:$0x3]  ;;  %v3928_v0 = vld [vmem:[%s5648_s7 + $0x8] sm:$0xff]   ;;  %s4068_s2 = smov 96  }
 0x90f   : > { %3763 = vmatprep.mubr.msk.bf16.mxu0 %vm4065_vm13, %v4064_v55  ;;  %v3219_v52 = vpack.c.bf16 %v3218_v33, %v3218_v33  ;;  %v3270_v51 = vld [vmem:[%s5645_s11] sm:$0x3]  ;;  %v3930_v18 = vld [vmem:[%s5650_s26 + $0x8] sm:$0xff]   ;;  %s5652_s11 = sld [smem:[#allocation19_spill]] }
 0x910   : > { %v2994_v27 = vld [vmem:[#allocation6] sm:$0x3]  ;;  %3770 = vmatpush3.bf16.msra.mxu1 %v3924_v16  ;;  %3277 = vrot.lane.b32.xlu1 %v3270_v51, %s4066_s22  ;;  %v3927_v53 = vld [vmem:[%s5646_s15] sm:$0xff]   ;;  %v3004_v16 = vld [vmem:[#allocation8] sm:$0x3] }
 0x911   : > { %3932 = vrcp.f32 %v2994_v27  ;;  %3783 = vmatprep.subr.bf16.mxu1 %v4064_v55  ;;  %3762 = vmatpush3.bf16.msra.mxu0 %v3925_v39  ;;  %v3148_v12 = vld [vmem:[%s5647_s16] sm:$0x3]  ;;  %v3005_v39 = vld [vmem:[#allocation8 + $0x2] sm:$0x3]  ;;  %s5653_s16 = sld [smem:[#allocation30_spill]] }
 0x912   : > { %3775 = vmatprep.subr.bf16.mxu0 %v4064_v55  ;;  %v3149_v44 = vpack.c.bf16 %v3148_v12, %v3148_v12  ;;  %v3929_v25 = vld [vmem:[%s5648_s7] sm:$0xff]  }
 0x913   : > { %3772 = vmatmul.mubr.msk.bf16.vlgmr.msra.gmra.mxu1 %vm2963_vm11, %v3028_v58  ;;  %v3676_v23 = vld [vmem:[%s5649_s18] ss:$0 sm:$0xff]  ;;  %s5655_s18 = sld [smem:[#allocation28_spill]] }
 0x914   : > { %3785 = vmatprep.mubr.msk.bf16.mxu1 %vm4065_vm13, %v4064_v55  ;;  %3784 = vmatpush3.bf16.msra.mxu1 %v3227_v29  ;;  %v3931_v27 = vld [vmem:[%s5651_s10] sm:$0xff]  }
 0x915   : > { %3797 = vmatprep.subr.bf16.mxu1 %v4064_v55 }
 0x91b   : > { %3786 = vmatmul.mubr.msk.bf16.vlgmr.msra.gmra.mxu1 %vm3221_vm15, %v3219_v52  ;;  %v3022_v52 = vld [vmem:[%s5652_s11] sm:$0x3] }
 0x91c   : > { %3801 = vmatprep.mubr.msk.bf16.mxu1 %vm4065_vm13, %v4064_v55  ;;  %3798 = vmatpush3.bf16.msra.mxu1 %v3930_v18 }
 0x91d   : > { %3799 = vmatprep.subr.bf16.mxu1 %v4064_v55 }
 0x91e   : > { %v3933_v48 = vpop.eup %3932 }
 0x91f   : > { %2999 = vperm.xlu0 %3921, %v3933_v48  }
 0x920   : > { %3800 = vmatpush3.bf16.msra.mxu1 %v3931_v27 }
 0x982   : > { %v3278_v59 = vpop.permute.xlu1 %3277 }
 0x99a   : > { %v5467_v34 = vpop.permute.xlu0 %2999 }
 0x99b   : > { %v3002_v6 = vmul.f32 %v5467_v34, %v2996_v1  ;;  %v3023_v1 = vld [vmem:[%s5652_s11 + $0x2] sm:$0x3] }
 0x99d   : > { %3429 = vst.msk [vmem:[#allocation13] sm:$0x3] %vm2987_vm12, %v3002_v6  ;;  %v3033_v60 = vpack.c.bf16 %v3002_v6, %v3002_v6 }
 0x99f   : > { %3764 = vmatmul.mubr.msk.bf16.vlgmr.msra.gmra.mxu0 %vm2963_vm11, %v3033_v60 }
 0x9a0   : > { %3776 = vmatpush3.bf16.msra.mxu0 %v3926_v4  ;;  %3779 = vmatprep.mubr.msk.bf16.mxu0 %vm4065_vm13, %v4064_v55 }
 0x9a1   : > { %3777 = vmatprep.subr.bf16.mxu0 %v4064_v55 }
 0x9a4   : > { %3778 = vmatpush3.bf16.msra.mxu0 %v3927_v53 }
 0x9a5   : > { %3789 = vmatprep.subr.bf16.mxu0 %v4064_v55 }
 0x9a7   : > { %3780 = vmatmul.mubr.msk.bf16.vlgmr.msra.gmra.mxu0 %vm2963_vm11, %v3149_v44 }
 0x9a8   : > { %3790 = vmatpush3.bf16.msra.mxu0 %v3928_v0  ;;  %3793 = vmatprep.mubr.msk.bf16.mxu0 %vm4065_vm13, %v4064_v55  ;;  %v3427_v0 = vld [vmem:[#allocation3] sm:$0x3] }
 0x9a9   : > { %3791 = vmatprep.subr.bf16.mxu0 %v4064_v55  ;;  %3428 = vst.msk [vmem:[%s5653_s16] sm:$0x3] %vm2987_vm12, %v3427_v0 }
 0x9ac   : > { %3792 = vmatpush3.bf16.msra.mxu0 %v3929_v25 }
 0x9af   : > { %3794 = vmatmul.mubr.msk.bf16.vlgmr.msra.gmra.mxu0 %vm2963_vm11, %v3033_v60 }
 0x9d3   : > { %v3142_v31 = vpop.f32.mrf.mxu1 }
 0x9d5   : > { %v3773_v3 = vpop.f32.mrf.mxu1 }
 0x9d7   : > { %v3145_v47 = vpop.f32.mrf.mxu1 }
 0x9d9   : > { %v3774_v11 = vpop.f32.mrf.mxu1 }
 0x9db   : > { %v3263_v21 = vpop.f32.mrf.mxu1 }
 0x9dd   : > { %v3787_v50 = vpop.f32.mrf.mxu1 }
 0x9df   : > { %v3266_v13 = vpop.f32.mrf.mxu1 }
 0x9e1   : > { %v3788_v62 = vpop.f32.mrf.mxu1 }
 0xa5f   : > { %v3087_v19 = vpop.f32.mrf.mxu0 }
 0xa60   : > { %v3143_v20 = vadd.f32 %v3142_v31, %v3087_v19 }
 0xa61   : > { %v3765_v54 = vpop.f32.mrf.mxu0 }
 0xa63   : > { %v3090_v8 = vpop.f32.mrf.mxu0 }
 0xa65   : > { %v3766_v32 = vpop.f32.mrf.mxu0 }
 0xa67   : > { %v3203_v40 = vpop.f32.mrf.mxu0 }
 0xa68   : > { %v3209_v56 = vadd.f32 %v3203_v40, %v3143_v20 }
 0xa69   : > { %v3781_v24 = vpop.f32.mrf.mxu0 }
 0xa6a   : > { %v3217_v38 = vadd.f32 %v3676_v23, %v3209_v56 }
 0xa6b   : > { %v3206_v43 = vpop.f32.mrf.mxu0 }
 0xa6c   : > { %v3269_v36 = vadd.f32 %v3263_v21, %v3217_v38 }
 0xa6d   : > { %v3782_v41 = vpop.f32.mrf.mxu0 }
 0xa6e   : > { %3934 = vtanh.f32 %v3269_v36  ;;  %v3271_v49 = vmul.f32 0.5, %v3269_v36 }
 0xa6f   : > { %v5487_v57 = vpop.f32.mrf.mxu0 }
 0xa70   : > { %3936 = vtanh.f32 %v3271_v49 }
 0xa71   : > { %v3795_v10 = vpop.f32.mrf.mxu0 }
 0xa73   : > { %v3355_v5 = vpop.f32.mrf.mxu0 }
 0xa75   : > { %v3796_v61 = vpop.f32.mrf.mxu0 }
 0xa7b   : > { %v3935_v45 = vpop.eup %3934 }
 0xa7c   : > { %3282 = vrot.lane.b32.xlu0 %v3935_v45, %s4067_s1 }
 0xa7d   : > { %v3937_v42 = vpop.eup %3936 }
 0xa7e   : > { %v3273_v17 = vadd.f32 1.0, %v3937_v42 }
 0xa80   : > { %v3274_v35 = vmul.f32 0.5, %v3273_v17 }
 0xa82   : > { %v3280_v26 = vmul.f32 %v3278_v59, %v3274_v35 }
 0xaee   : > { %v3283_v46 = vpop.permute.xlu0 %3282 }
 0xaef   : > { %v3285_v37 = vmul.f32 %v3283_v46, %v3274_v35 }
 0xaf1   : > { %3287 = vrot.lane.b32.xlu1 %v3285_v37, %s4066_s22 }
 0xb63   : > { %v3288_v7 = vpop.permute.xlu1 %3287 }
 0xb64   : > { %v3290_v63 = vadd.f32 %v3288_v7, %v3280_v26 }
 0xb66   : > { %3938 = vtanh.f32 %v3290_v63 }
 0xb73   : > { %v3939_v30 = vpop.eup %3938 }
 0xb74   : > { %3293 = vrot.lane.b32.xlu0 %v3939_v30, %s4067_s1 }
 0xb78   : > { %3009 = vperm.xlu0 %3921, %v3006_v2  }
 0xb7c   : > { %3436 = vrot.lane.b32.xlu0 %v3290_v63, %s4068_s2 }
 0xbe6   : > { %v3294_v9 = vpop.permute.xlu0 %3293 }
 0xbe7   : > { %v3296_v14 = vmul.f32 %v3294_v9, %v3274_v35 }
 0xbe9   : > { %v3297_v22 = vpack.c.bf16 %v3296_v14, %v3296_v14 }
 0xbeb   : > { %3359 = vrot.lane.b32.xlu1 %v3297_v22, %s4066_s22 }
 0xbef   : > { %3431 = vrot.lane.b32.xlu1 %v3296_v14, %s4066_s22  ;;  %s5654_s22 = sld [smem:[#allocation27_spill]] }
 0xbf3   : > { %v3010_v28 = vpop.permute.xlu0 %3009 }
 0xbf4   : > { %v3012_v58 = vsub.f32 %v3004_v16, %v3010_v28  ;;  %v3013_v48 = vsub.f32 %v3005_v39, %v3010_v28 }
 0xbf5   : > { %v3684_v25 = vld [vmem:[%s5654_s22] ss:$0 sm:$0xff] }
 0xbf6   : > { %v3014_v15 = vmul.f32 1.442695, %v3012_v58  ;;  %v3016_v55 = vmul.f32 1.442695, %v3013_v48 }
 0xbf7   : > { %v3437_v29 = vpop.permute.xlu0 %3436 }
 0xbf8   : > { %3940 = vpow2.f32 %v3014_v15  ;;  %3439 = vst.msk [vmem:[%s4234_s13] sm:$0x3] %vm2987_vm12, %v3437_v29 }
 0xbf9   : > { %3942 = vpow2.f32 %v3016_v55 }
 0xc05   : > { %v3941_v33 = vpop.eup %3940 }
 0xc06   : > { %v3943_v51 = vpop.eup %3942  ;;  %v3018_v6 = vmul.f32 %v3941_v33, %v5467_v34 }
 0xc07   : > { %v3019_v4 = vmul.f32 %v3943_v51, %v5467_v34 }
 0xc08   : > { %3020 = vst.msk [vmem:[%s4219_s17] sm:$0x3] %vm2860_vm9, %v3018_v6  ;;  %v3024_v60 = vadd.f32 %v3022_v52, %v3018_v6 }
 0xc09   : > { %3021 = vst.msk [vmem:[%s4219_s17 + $0x2] sm:$0x3] %vm2860_vm9, %v3019_v4  ;;  %v3025_v53 = vadd.f32 %v3023_v1, %v3019_v4 }
 0xc0a   : > { %3026 = vst.msk [vmem:[%s4224_s19] sm:$0x3] %vm2860_vm9, %v3024_v60 }
 0xc0b   : > { %3027 = vst.msk [vmem:[%s4224_s19 + $0x2] sm:$0x3] %vm2860_vm9, %v3025_v53 }
 0xc5d   : > { %v3360_v12 = vpop.permute.xlu1 %3359 }
 0xc5e   : > { %3802 = vmatmul.mubr.msk.bf16.vlgmr.msra.gmra.mxu1 %vm2963_vm11, %v3360_v12 }
 0xc61   : > { %v3432_v44 = vpop.permute.xlu1 %3431 }
 0xc62   : > { %3434 = vst.msk [vmem:[%s4229_s21] sm:$0x3] %vm2987_vm12, %v3432_v44 }
 0xd1e   : > { %v3410_v34 = vpop.f32.mrf.mxu1 }
 0xd1f   : > { %v3411_v31 = vadd.f32 %v3410_v34, %v5487_v57 }
 0xd20   : > { %v3803_v3 = vpop.f32.mrf.mxu1 }
 0xd21   : > { %v3423_v47 = vadd.f32 %v3684_v25, %v3411_v31 }
 0xd22   : > { %v3413_v11 = vpop.f32.mrf.mxu1 }
 0xd23   : > { %3425 = vst.msk [vmem:[%s5655_s18] sm:$0x3] %vm3424_vm0, %v3423_v47 }
 0xd24   : > { %v3804_v21 = vpop.f32.mrf.mxu1 }
 0xd25 PF: > { %p3813_p11 = scmp.eq.s32.totalorder %s4252_s0, 1  ;;  %s4069_s1 = smov [#allocation11]  }
 0xd26   : > { %s3450_s26 = sshll.u32 %s4069_s1, 4  ;;  %s4070_s2 = smov [#allocation13]   ;;  %s3451_s26 = int_to_ptr.vmem [resolvable:$true] %s3450_s26 }
 0xd27   : > { %s3464_s3 = sshll.u32 %s4070_s2, 4  ;;  %s3944_s16 = scalar_lea.vmem %s3451_s26, 32  ;;  %s3465_s3 = int_to_ptr.vmem [resolvable:$true] %s3464_s3 }
 0xd28   : > { %p3945_p12 = scmp.ne.s32.totalorder %s3451_s26, %s3944_s16  ;;  %p3951_p1 = scmp.lt.s32.totalorder %s3451_s26, %s3451_s26 }
 0xd29   : > { %p3952_p2 = scmp.lt.s32.totalorder %s3944_s16, %s3944_s16 }
 0xd2a   : > { %p3946_p13 = pnand %p3945_p12, %p3813_p11 }
 0xd2b   : > { %p3953_p3 = por %p3952_p2, %p3951_p1 }
 0xd2c   : > { %p3947_p0 = pneg %p3946_p13 }
 0xd2e   : > { %p3954_p4 = pnand %p3953_p3, %p3947_p0 }
 0xd30   : > { %3957 = shalt.err (!%p3954_p4)
}
 0xd31   : > { %s5656_s22 = sld [smem:[#allocation29_spill]]  ;;  %s3968_s18 = scalar_lea.vmem %s3465_s3, 32 }
 0xd32   : > { %p3969_p5 = scmp.ne.s32.totalorder %s3465_s3, %s3968_s18  ;;  %p3975_p8 = scmp.lt.s32.totalorder %s3465_s3, %s3465_s3 }
 0xd33   : > { %p3976_p9 = scmp.lt.s32.totalorder %s3968_s18, %s3968_s18 }
 0xd34   : > { %p3970_p6 = pnand %p3969_p5, %p3813_p11 }
 0xd35   : > { %p3977_p10 = por %p3976_p9, %p3975_p8 }
 0xd36   : > { %p3971_p7 = pneg %p3970_p6 }
 0xd37   : > { %3806 = dma.vmem_to_hbm [thread:$0]  (%p3813_p11), %s3451_s26, 32, %s5656_s22, [#allocation12]  }
 0xd38   : > { %p3978_p12 = pnand %p3977_p10, %p3971_p7 }
 0xd3a   : > { %3981 = shalt.err (!%p3978_p12)
}
 0xd3b   : > { %s5657_s1 = sld [smem:[#allocation31_spill]] }
 0xd41   : > { %3808 = dma.vmem_to_hbm [thread:$0]  (%p3813_p11), %s3465_s3, 32, %s5657_s1, [#allocation14]  }
 0xd42   : > { %4005 = dma.done.wait (%p3813_p11), [#allocation12], 32  }
 0xd43   : > { %4007 = vsyncadd (%p3813_p11), [#allocation12], 4294967264 }
 0xd44   : > { %4009 = dma.done.wait (%p3813_p11), [#allocation14], 32  }
 0xd45   : > { %4011 = vsyncadd (%p3813_p11), [#allocation14], 4294967264 }
 0xd46 PF: > { %s5658_s26 = sld [smem:[#allocation32_spill]]  ;;  %p73_p13 = scmp.ge.s32.totalorder %s4255_s28, 4  }
 0xd47   : > { %s5659_s22 = smov %s4018_s23 }
 0xd48   :  { %75 = sbr.rel (!%p73_p13) target bundleno = 57 (0x39), region = 343 }
 0xd4c   : > { %s5660_s23 = smov %s5658_s26  ;;  %s5661_s26 = smov %s4255_s28 }
 0xd4d   :  { %3511 = vsyncpa [#allocation12], 1 }
 0xd4e   :  { %3513 = vsyncpa [#allocation12 + $0x1], 1 }
 0xd4f   :  { %3514 = vsyncpa [#allocation14], 1 }

</bundles_post_ra>
